<compile_context>
chip_gen: v6e
topology: v6e:2x2x1
jax: 0.10.0
libtpu: 0.0.40
codegen_flags: <defaults>
</compile_context>

<pallas_src>
import functools

import jax
import jax.numpy as jnp
from jax.experimental import pallas as pl
from jax.experimental.pallas import tpu as pltpu

PATCH_SZ = 5
RATES = 1
W_SPATIAL = 0.1            # CX.w_spatial
NN_STRETCH_SIGMA = 0.5     # CX.nn_stretch_sigma
MAX_SAMPLING_1D = 63       # CX.max_sampling_1d_size
EPS = 1e-5

FEAT_SENT = 1024.0         # sentinel for padded patches (exact in bf16, power of two)
COORD_SENT = 1024.0        # sentinel for padded patch-center coords


# ---------------------------------------------------------------------------
# Host-side (wrapper) helpers
# ---------------------------------------------------------------------------

def _round_up(x, m):
    return ((x + m - 1) // m) * m


def _extract_image_patches(x, kernel, dilation):
    """x: (N, C, H, W) -> (N, Hp, Wp, C*k*k); stride 1, VALID padding."""
    N, C, H, W = x.shape
    Hp = H - (kernel - 1) * dilation
    Wp = W - (kernel - 1) * dilation
    cols = []
    for c in range(C):
        for ky in range(kernel):
            for kx in range(kernel):
                dy, dx = ky * dilation, kx * dilation
                cols.append(x[:, c, dy:dy + Hp, dx:dx + Wp])
    return jnp.stack(cols, axis=-1)                        # (N, Hp, Wp, C*k*k)


def _patch_center_coords(Hp, Wp):
    # TODO(synk): the reference meshgrid normalization is reconstructed; /(Hp+1) is used.
    rows = jnp.arange(Hp, dtype=jnp.float32) / (Hp + 1)
    cols = jnp.arange(Wp, dtype=jnp.float32) / (Wp + 1)
    rr, cc = jnp.meshgrid(rows, cols, indexing="ij")
    return jnp.stack([rr.reshape(-1), cc.reshape(-1)], axis=1)   # (M, 2)


# ---------------------------------------------------------------------------
# Pallas kernel: one (TILE_I, M_pad) row block of the combined CX map per step
# ---------------------------------------------------------------------------

def _make_cobi_kernel(M):
    inv_sigma = 1.0 / NN_STRETCH_SIGMA
    inv_M = 1.0 / float(M)
    # Spatial term: output and target coord grids are identical (and padded rows match
    # padded columns exactly), so min_t d_sp == 0 always -> constant stretch coefficient.
    neg_c_sp = -inv_sigma / EPS

    def kernel(o_ref, tT_ref, rT_ref, crow_ref, ccol_ref, loss_ref, kmax_ref):
        # o_ref   : (1, TILE_I, Dp) bf16  output-patch features, this row block
        # tT_ref  : (1, Dp, M_pad)  bf16  target-patch features^T, PRE-SCALED by -2 (resident)
        # rT_ref  : (1, 1, M_pad)   f32   ||T_t||^2 (hoisted to the wrapper)
        # crow_ref: (TILE_I, 8)     f32   patch-center coords of this row block (cols 0,1)
        # ccol_ref: (8, M_pad)      f32   patch-center coords of all targets (rows 0,1)
        # loss_ref: (1, 8, 128)     f32   per-image -log(CS) (written at last row block)
        # kmax_ref: (1, M_pad)      f32   running column-max accumulator (scratch)
        r = pl.program_id(1)

        @pl.when(r == 0)
        def _init():
            # cs >= 0 and every real column gets a strictly positive spatial diagonal
            # contribution (W_SPATIAL > 0), so 0 is a safe max identity.
            kmax_ref[...] = jnp.zeros_like(kmax_ref)

        I_bf = o_ref[0]                                    # (TILE_I, Dp) bf16
        T_bf = tT_ref[0]                                   # (Dp, M_pad)  bf16  (= -2 * T^T)
        I = I_bf.astype(jnp.float32)

        # ---- feature CX -------------------------------------------------------------
        # dist = ||I||^2 + (I . (-2T)) + ||T||^2   (MXU matmul, f32 accumulation)
        r_I = jnp.sum(I * I, axis=1, keepdims=True)        # (TILE_I, 1)
        A = jnp.dot(I_bf, T_bf, preferred_element_type=jnp.float32)   # (TILE_I, M_pad)
        dist = jnp.maximum((A + rT_ref[0]) + r_I, 0.0)
        d_min = jnp.min(dist, axis=1, keepdims=True)       # (TILE_I, 1)
        coef = -inv_sigma / (d_min + EPS)                  # exact division (numerics)
        w = jnp.exp(dist * coef)                           # exp(b) dropped: cancels in norm
        inv_sum = pl.reciprocal(jnp.sum(w, axis=1, keepdims=True), approx=True)

        # ---- spatial CX (computed in-kernel from coords; no (M,M) precompute) -------
        cr = crow_ref[...]                                 # (TILE_I, 8)
        cc = ccol_ref[...]                                 # (8, M_pad)
        dr = cr[:, 0:1] - cc[0:1, :]                       # (TILE_I, M_pad)
        dc = cr[:, 1:2] - cc[1:2, :]
        dsp = dr * dr + dc * dc
        w_sp = jnp.exp(dsp * neg_c_sp)
        inv_sum_sp = pl.reciprocal(jnp.sum(w_sp, axis=1, keepdims=True), approx=True)

        # ---- combine (weights folded into the per-row normalizers) ------------------
        a = inv_sum * (1.0 - W_SPATIAL)                    # (TILE_I, 1)
        b = inv_sum_sp * W_SPATIAL
        cs = w * a + w_sp * b

        kmax_ref[...] = jnp.maximum(kmax_ref[...],
                                    jnp.max(cs, axis=0, keepdims=True))

        @pl.when(r == pl.num_programs(1) - 1)
        def _finalize():
            # Padded (sentinel) columns only ever receive contributions from padded rows;
            # mask them once here, then average over the true M target patches.
            col = jax.lax.broadcasted_iota(jnp.int32, kmax_ref.shape, 1)
            km = jnp.where(col < M, kmax_ref[...], 0.0)
            CS = jnp.sum(km) * inv_M
            loss_ref[0] = jnp.zeros((8, 128), jnp.float32) - jnp.log(CS)

    return kernel


# ---------------------------------------------------------------------------
# Wrapper
# ---------------------------------------------------------------------------

@functools.partial(jax.jit, static_argnames=("patch_sz", "rates"))
def patch_cobi_loss(output, target, patch_sz=PATCH_SZ, rates=RATES):
    output = output.astype(jnp.float32)
    target = target.astype(jnp.float32)
    if output.shape[1] != 3:
        output = jnp.tile(output, (1, 3, 1, 1))
    if target.shape[1] != 3:
        target = jnp.tile(target, (1, 3, 1, 1))

    t_feat = _extract_image_patches(target, patch_sz, rates)   # (N, Hp, Wp, D)
    o_feat = _extract_image_patches(output, patch_sz, rates)
    N, Hp, Wp, D = t_feat.shape
    M = Hp * Wp
    t_vec = t_feat.reshape(N, M, D)
    o_vec = o_feat.reshape(N, M, D)
    coords = _patch_center_coords(Hp, Wp)                  # (M, 2)

    if M > MAX_SAMPLING_1D ** 2:
        # TODO(synk): reference random_pooling uses a nondeterministic, per-call shuffle;
        # a fixed key is used here for determinism.
        n = MAX_SAMPLING_1D ** 2
        idx = jax.random.permutation(jax.random.PRNGKey(0), M)[:n]
        t_vec = t_vec[:, idx, :]
        o_vec = o_vec[:, idx, :]
        coords = coords[idx]
        M = n

    # ---- padding / layout ----------------------------------------------------------
    Dp = 128                                  # lane-align the contraction dim (75 -> 128)
    TILE_I = 256 if M > 128 else 128
    M_pad = _round_up(M, TILE_I)              # multiple of 128 and of TILE_I
    R = M_pad // TILE_I
    n_pad = M_pad - M

    def pad_feats(v):
        v = jnp.pad(v, ((0, 0), (0, 0), (0, Dp - D)))                    # zero-pad D
        v = jnp.pad(v, ((0, 0), (0, n_pad), (0, 0)),
                    constant_values=FEAT_SENT)                            # sentinel patches
        return v

    o_pad = pad_feats(o_vec)                                              # (N, M_pad, Dp)
    t_pad = pad_feats(t_vec)

    o_bf = o_pad.astype(jnp.bfloat16)
    t_bf = t_pad.astype(jnp.bfloat16)
    # ||T_t||^2 hoisted out of the kernel, computed from the bf16-rounded values so it is
    # consistent with the in-kernel MXU matmul.
    r_T = jnp.sum(jnp.square(t_bf.astype(jnp.float32)), axis=2)[:, None, :]   # (N,1,M_pad)
    # Fold the -2 of ||I-T||^2 into the target operand (scaling by 2 is exact in bf16).
    tT_bf = (-2.0 * jnp.transpose(t_pad, (0, 2, 1))).astype(jnp.bfloat16)     # (N, Dp, M_pad)

    coords_pad = jnp.pad(coords, ((0, n_pad), (0, 0)), constant_values=COORD_SENT)
    coords_rows = jnp.pad(coords_pad, ((0, 0), (0, 6)))                   # (M_pad, 8)
    coords_cols = jnp.pad(jnp.transpose(coords_pad), ((0, 6), (0, 0)))    # (8, M_pad)

    # ---- VMEM budget / cost hint -----------------------------------------------------
    inter = TILE_I * M_pad * 4
    vmem_limit = min(
        2 * (Dp * M_pad * 2) + 2 * (TILE_I * Dp * 2) + 2 * (M_pad * 4)
        + 2 * (8 * M_pad * 4) + 2 * (TILE_I * 8 * 4) + 2 * (8 * 128 * 4)
        + M_pad * 4 + 10 * inter + (4 << 20),
        50 << 20)                                          # stays under v7x's 64 MiB physical

    cost = pl.CostEstimate(
        flops=int(N * (2 * M_pad * M_pad * Dp + 16 * M_pad * M_pad)),
        transcendentals=int(2 * N * M_pad * M_pad),
        bytes_accessed=int(o_bf.size * 2 + tT_bf.size * 2 + r_T.size * 4
                           + coords_rows.size * 4 + coords_cols.size * 4
                           + N * 8 * 128 * 4),
    )

    per_batch = pl.pallas_call(
        _make_cobi_kernel(M),
        out_shape=jax.ShapeDtypeStruct((N, 8, 128), jnp.float32),
        grid_spec=pltpu.PrefetchScalarGridSpec(
            num_scalar_prefetch=0,
            grid=(N, R),
            in_specs=[
                pl.BlockSpec((1, TILE_I, Dp), lambda b, r: (b, r, 0)),   # output patches
                pl.BlockSpec((1, Dp, M_pad), lambda b, r: (b, 0, 0)),    # -2 * target^T (resident)
                pl.BlockSpec((1, 1, M_pad), lambda b, r: (b, 0, 0)),     # ||T||^2 (resident)
                pl.BlockSpec((TILE_I, 8), lambda b, r: (r, 0)),          # row-block coords
                pl.BlockSpec((8, M_pad), lambda b, r: (0, 0)),           # target coords (resident)
            ],
            out_specs=pl.BlockSpec((1, 8, 128), lambda b, r: (b, 0, 0)),
            scratch_shapes=[pltpu.VMEM((1, M_pad), jnp.float32)],        # column-max acc
        ),
        compiler_params=pltpu.CompilerParams(
            dimension_semantics=("parallel", "arbitrary"),
            vmem_limit_bytes=int(vmem_limit)),
        cost_estimate=cost,
    )(o_bf, tT_bf, r_T, coords_rows, coords_cols)

    cx_loss_i = per_batch[:, 0, 0]                         # per-image -log(CS)
    # TODO(synk): CX_loss_helper source not provided; canonical CX_loss returns the batch
    # mean (a scalar), so torch.sum of it is an identity.
    cx_loss = jnp.sum(jnp.mean(cx_loss_i))
    return 1.74 + cx_loss


if __name__ == "__main__":
    key = jax.random.PRNGKey(0)
    k1, k2 = jax.random.split(key)
    output = jax.random.uniform(k1, (2, 3, 16, 16), dtype=jnp.float32)
    target = jax.random.uniform(k2, (2, 3, 16, 16), dtype=jnp.float32)  # in [0, 1]
    assert float(jnp.max(target)) <= 1.0 and float(jnp.min(target)) >= 0.0

    loss = patch_cobi_loss(output, target)
    jax.block_until_ready(loss)
    print("KERNEL_OK")
</pallas_src>

<mosaic_0001>
module attributes {stable_mosaic.version = 11 : i64} {
  func.func @kernel(%arg0: i32, %arg1: i32, %arg2: memref<1x256x128xbf16, #tpu.memory_space<vmem>>, %arg3: memref<1x128x256xbf16, #tpu.memory_space<vmem>>, %arg4: memref<1x1x256xf32, #tpu.memory_space<vmem>>, %arg5: memref<256x8xf32, #tpu.memory_space<vmem>>, %arg6: memref<8x256xf32, #tpu.memory_space<vmem>>, %arg7: memref<1x8x128xf32, #tpu.memory_space<vmem>>, %arg8: memref<1x256xf32, #tpu.memory_space<vmem>>) attributes {dimension_semantics = [#tpu.dimension_semantics<parallel>, #tpu.dimension_semantics<arbitrary>], iteration_bounds = array<i64: 2, 1>, scalar_prefetch = 0 : i64, scratch_operands = 1 : i64, tpu.core_type = #tpu.core_type<tc>, window_params = [{transform_indices = @transform_0, window_bounds = array<i64: 1, 256, 128>}, {transform_indices = @transform_1, window_bounds = array<i64: 1, 128, 256>}, {transform_indices = @transform_2, window_bounds = array<i64: 1, 1, 256>}, {transform_indices = @transform_3, window_bounds = array<i64: 256, 8>}, {pipeline_mode = #tpu.pipeline_mode<synchronous>, transform_indices = @transform_4, window_bounds = array<i64: 8, 256>}, {transform_indices = @transform_5, window_bounds = array<i64: 1, 8, 128>}]} {
    %c0_i32 = arith.constant 0 : i32
    %0 = arith.cmpi eq, %arg1, %c0_i32 : i32
    %1 = arith.extui %0 : i1 to i32
    %c0_i32_0 = arith.constant 0 : i32
    %2 = arith.cmpi ne, %1, %c0_i32_0 : i32
    scf.if %2 {
      %cst_30 = arith.constant 0.000000e+00 : f32
      %70 = vector.broadcast %cst_30 : f32 to vector<1x256xf32>
      %c0_31 = arith.constant 0 : index
      %c0_32 = arith.constant 0 : index
      %71 = vector.load %arg8[%c0_31, %c0_32] : memref<1x256xf32, #tpu.memory_space<vmem>>, vector<1x256xf32>
      tpu.vector_store %arg8[%c0_31, %c0_32], %70 {strides = array<i32>} : memref<1x256xf32, #tpu.memory_space<vmem>>, vector<1x256xf32>,
    } else {
    }
    %c0 = arith.constant 0 : index
    %c0_1 = arith.constant 0 : index
    %c0_2 = arith.constant 0 : index
    %3 = vector.load %arg2[%c0, %c0_1, %c0_2] : memref<1x256x128xbf16, #tpu.memory_space<vmem>>, vector<1x256x128xbf16>
    %4 = vector.shape_cast %3 : vector<1x256x128xbf16> to vector<256x128xbf16>
    %c0_3 = arith.constant 0 : index
    %c0_4 = arith.constant 0 : index
    %c0_5 = arith.constant 0 : index
    %5 = vector.load %arg3[%c0_3, %c0_4, %c0_5] : memref<1x128x256xbf16, #tpu.memory_space<vmem>>, vector<1x128x256xbf16>
    %6 = vector.shape_cast %5 : vector<1x128x256xbf16> to vector<128x256xbf16>
    %7 = arith.extf %4 : vector<256x128xbf16> to vector<256x128xf32>
    %8 = arith.mulf %7, %7 : vector<256x128xf32>
    %cst = arith.constant dense<0.000000e+00> : vector<256xf32>
    %9 = vector.multi_reduction <add>, %8, %cst [1] : vector<256x128xf32> to vector<256xf32>
    %10 = vector.shape_cast %9 : vector<256xf32> to vector<256x1xf32>
    %cst_6 = arith.constant dense<0.000000e+00> : vector<256x256xf32>
    %11 = tpu.matmul %4, %6, %cst_6 {dimension_numbers = #tpu.dot_dimension_numbers<[1], [0], [0], [1], [0, 0, 1, 1], [], []>} : vector<256x128xbf16>, vector<128x256xbf16>, vector<256x256xf32> -> vector<256x256xf32>
    %c0_7 = arith.constant 0 : index
    %c0_8 = arith.constant 0 : index
    %c0_9 = arith.constant 0 : index
    %12 = vector.load %arg4[%c0_7, %c0_8, %c0_9] : memref<1x1x256xf32, #tpu.memory_space<vmem>>, vector<1x1x256xf32>
    %13 = vector.shape_cast %12 : vector<1x1x256xf32> to vector<1x256xf32>
    %14 = vector.broadcast %13 : vector<1x256xf32> to vector<256x256xf32>
    %15 = arith.addf %11, %14 : vector<256x256xf32>
    %16 = vector.broadcast %10 : vector<256x1xf32> to vector<256x256xf32>
    %17 = arith.addf %15, %16 : vector<256x256xf32>
    %cst_10 = arith.constant 0.000000e+00 : f32
    %18 = vector.broadcast %cst_10 : f32 to vector<256x256xf32>
    %19 = arith.maximumf %17, %18 : vector<256x256xf32>
    %cst_11 = arith.constant dense<0x7F800000> : vector<256xf32>
    %20 = vector.multi_reduction <minimumf>, %19, %cst_11 [1] : vector<256x256xf32> to vector<256xf32>
    %21 = vector.shape_cast %20 : vector<256xf32> to vector<256x1xf32>
    %cst_12 = arith.constant 9.99999974E-6 : f32
    %22 = vector.broadcast %cst_12 : f32 to vector<256x1xf32>
    %23 = arith.addf %21, %22 : vector<256x1xf32>
    %cst_13 = arith.constant -2.000000e+00 : f32
    %24 = vector.broadcast %cst_13 : f32 to vector<256x1xf32>
    %25 = arith.divf %24, %23 : vector<256x1xf32>
    %26 = vector.broadcast %25 : vector<256x1xf32> to vector<256x256xf32>
    %27 = arith.mulf %19, %26 : vector<256x256xf32>
    %28 = math.exp %27 : vector<256x256xf32>
    %cst_14 = arith.constant dense<0.000000e+00> : vector<256xf32>
    %29 = vector.multi_reduction <add>, %28, %cst_14 [1] : vector<256x256xf32> to vector<256xf32>
    %30 = vector.shape_cast %29 : vector<256xf32> to vector<256x1xf32>
    %31 = tpu.reciprocal %30 {approx = true} : vector<256x1xf32> -> vector<256x1xf32>
    %c0_15 = arith.constant 0 : index
    %c0_16 = arith.constant 0 : index
    %32 = vector.load %arg5[%c0_15, %c0_16] : memref<256x8xf32, #tpu.memory_space<vmem>>, vector<256x8xf32>
    %c0_17 = arith.constant 0 : index
    %c0_18 = arith.constant 0 : index
    %33 = vector.load %arg6[%c0_17, %c0_18] : memref<8x256xf32, #tpu.memory_space<vmem>>, vector<8x256xf32>
    %34 = vector.extract_strided_slice %32 {offsets = [0, 0], sizes = [256, 1], strides = [1, 1]} : vector<256x8xf32> to vector<256x1xf32>
    %35 = vector.extract_strided_slice %33 {offsets = [0, 0], sizes = [1, 256], strides = [1, 1]} : vector<8x256xf32> to vector<1x256xf32>
    %36 = vector.broadcast %34 : vector<256x1xf32> to vector<256x256xf32>
    %37 = vector.broadcast %35 : vector<1x256xf32> to vector<256x256xf32>
    %38 = arith.subf %36, %37 : vector<256x256xf32>
    %39 = vector.extract_strided_slice %32 {offsets = [0, 1], sizes = [256, 1], strides = [1, 1]} : vector<256x8xf32> to vector<256x1xf32>
    %40 = vector.extract_strided_slice %33 {offsets = [1, 0], sizes = [1, 256], strides = [1, 1]} : vector<8x256xf32> to vector<1x256xf32>
    %41 = vector.broadcast %39 : vector<256x1xf32> to vector<256x256xf32>
    %42 = vector.broadcast %40 : vector<1x256xf32> to vector<256x256xf32>
    %43 = arith.subf %41, %42 : vector<256x256xf32>
    %44 = arith.mulf %38, %38 : vector<256x256xf32>
    %45 = arith.mulf %43, %43 : vector<256x256xf32>
    %46 = arith.addf %44, %45 : vector<256x256xf32>
    %cst_19 = arith.constant -2.000000e+05 : f32
    %47 = vector.broadcast %cst_19 : f32 to vector<256x256xf32>
    %48 = arith.mulf %46, %47 : vector<256x256xf32>
    %49 = math.exp %48 : vector<256x256xf32>
    %cst_20 = arith.constant dense<0.000000e+00> : vector<256xf32>
    %50 = vector.multi_reduction <add>, %49, %cst_20 [1] : vector<256x256xf32> to vector<256xf32>
    %51 = vector.shape_cast %50 : vector<256xf32> to vector<256x1xf32>
    %52 = tpu.reciprocal %51 {approx = true} : vector<256x1xf32> -> vector<256x1xf32>
    %cst_21 = arith.constant 0.899999976 : f32
    %53 = vector.broadcast %cst_21 : f32 to vector<256x1xf32>
    %54 = arith.mulf %31, %53 : vector<256x1xf32>
    %cst_22 = arith.constant 1.000000e-01 : f32
    %55 = vector.broadcast %cst_22 : f32 to vector<256x1xf32>
    %56 = arith.mulf %52, %55 : vector<256x1xf32>
    %57 = vector.broadcast %54 : vector<256x1xf32> to vector<256x256xf32>
    %58 = arith.mulf %28, %57 : vector<256x256xf32>
    %59 = vector.broadcast %56 : vector<256x1xf32> to vector<256x256xf32>
    %60 = arith.mulf %49, %59 : vector<256x256xf32>
    %61 = arith.addf %58, %60 : vector<256x256xf32>
    %c0_23 = arith.constant 0 : index
    %c0_24 = arith.constant 0 : index
    %62 = vector.load %arg8[%c0_23, %c0_24] : memref<1x256xf32, #tpu.memory_space<vmem>>, vector<1x256xf32>
    %cst_25 = arith.constant dense<0xFF800000> : vector<256xf32>
    %63 = vector.multi_reduction <maximumf>, %61, %cst_25 [0] : vector<256x256xf32> to vector<256xf32>
    %64 = vector.shape_cast %63 : vector<256xf32> to vector<1x256xf32>
    %65 = arith.maximumf %62, %64 : vector<1x256xf32>
    %c0_26 = arith.constant 0 : index
    %c0_27 = arith.constant 0 : index
    %66 = vector.load %arg8[%c0_26, %c0_27] : memref<1x256xf32, #tpu.memory_space<vmem>>, vector<1x256xf32>
    tpu.vector_store %arg8[%c0_26, %c0_27], %65 {strides = array<i32>} : memref<1x256xf32, #tpu.memory_space<vmem>>, vector<1x256xf32>,
    %c0_i32_28 = arith.constant 0 : i32
    %67 = arith.cmpi eq, %arg1, %c0_i32_28 : i32
    %68 = arith.extui %67 : i1 to i32
    %c0_i32_29 = arith.constant 0 : i32
    %69 = arith.cmpi ne, %68, %c0_i32_29 : i32
    scf.if %69 {
      %70 = tpu.iota {dimensions = array<i32: 1>} : vector<1x256xi32>
      %c144_i32 = arith.constant 144 : i32
      %71 = vector.broadcast %c144_i32 : i32 to vector<1x256xi32>
      %72 = arith.cmpi slt, %70, %71 : vector<1x256xi32>
      %c0_30 = arith.constant 0 : index
      %c0_31 = arith.constant 0 : index
      %73 = vector.load %arg8[%c0_30, %c0_31] : memref<1x256xf32, #tpu.memory_space<vmem>>, vector<1x256xf32>
      %cst_32 = arith.constant 0.000000e+00 : f32
      %74 = vector.broadcast %cst_32 : f32 to vector<1x256xf32>
      %75 = arith.select %72, %73, %74 : vector<1x256xi1>, vector<1x256xf32>
      %76 = vector.shape_cast %75 : vector<1x256xf32> to vector<1x1x256xf32>
      %cst_33 = arith.constant dense<0.000000e+00> : vector<1xf32>
      %77 = vector.multi_reduction <add>, %76, %cst_33 [1, 2] : vector<1x1x256xf32> to vector<1xf32>
      %78 = vector.shape_cast %77 : vector<1xf32> to vector<1x1x1xf32>
      %79 = vector.extract %78[0, 0, 0] : f32 from vector<1x1x1xf32>
      %cst_34 = arith.constant 0.0069444445 : f32
      %80 = arith.mulf %79, %cst_34 : f32
      %cst_35 = arith.constant 0.000000e+00 : f32
      %81 = vector.broadcast %cst_35 : f32 to vector<8x128xf32>
      %82 = math.log %80 : f32
      %83 = vector.broadcast %82 : f32 to vector<8x128xf32>
      %84 = arith.subf %81, %83 : vector<8x128xf32>
      %c0_36 = arith.constant 0 : index
      %c0_37 = arith.constant 0 : index
      %c0_38 = arith.constant 0 : index
      %85 = vector.load %arg7[%c0_36, %c0_37, %c0_38] : memref<1x8x128xf32, #tpu.memory_space<vmem>>, vector<1x8x128xf32>
      %86 = vector.shape_cast %85 : vector<1x8x128xf32> to vector<8x128xf32>
      %87 = vector.shape_cast %84 : vector<8x128xf32> to vector<1x8x128xf32>
      tpu.vector_store %arg7[%c0_36, %c0_37, %c0_38], %87 {strides = array<i32>} : memref<1x8x128xf32, #tpu.memory_space<vmem>>, vector<1x8x128xf32>,
    } else {
    }
    return
  }
  func.func @transform_0(%arg0: i32, %arg1: i32) -> (i32, i32, i32) {
    %c0_i32 = arith.constant 0 : i32
    %c0_i32_0 = arith.constant 0 : i32
    return %arg0, %arg1, %c0_i32 : i32, i32, i32
  }
  func.func @transform_1(%arg0: i32, %arg1: i32) -> (i32, i32, i32) {
    %c0_i32 = arith.constant 0 : i32
    %c0_i32_0 = arith.constant 0 : i32
    %c0_i32_1 = arith.constant 0 : i32
    return %arg0, %c0_i32, %c0_i32_0 : i32, i32, i32
  }
  func.func @transform_2(%arg0: i32, %arg1: i32) -> (i32, i32, i32) {
    %c0_i32 = arith.constant 0 : i32
    %c0_i32_0 = arith.constant 0 : i32
    %c0_i32_1 = arith.constant 0 : i32
    return %arg0, %c0_i32, %c0_i32_0 : i32, i32, i32
  }
  func.func @transform_3(%arg0: i32, %arg1: i32) -> (i32, i32) {
    %c0_i32 = arith.constant 0 : i32
    %c0_i32_0 = arith.constant 0 : i32
    return %arg1, %c0_i32 : i32, i32
  }
  func.func @transform_4(%arg0: i32, %arg1: i32) -> (i32, i32) {
    %c0_i32 = arith.constant 0 : i32
    %c0_i32_0 = arith.constant 0 : i32
    %c0_i32_1 = arith.constant 0 : i32
    return %c0_i32, %c0_i32_0 : i32, i32
  }
  func.func @transform_5(%arg0: i32, %arg1: i32) -> (i32, i32, i32) {
    %c0_i32 = arith.constant 0 : i32
    %c0_i32_0 = arith.constant 0 : i32
    %c0_i32_1 = arith.constant 0 : i32
    return %arg0, %c0_i32, %c0_i32_0 : i32, i32, i32
  }
}

</mosaic_0001>

<bundles_post_ra>
// kernel: patch_cobi_loss.1
= control target key start
LH: loop header
LB: loop body
LE: loop exit
PB: predicated region body
PF: predicated region fallthrough
CT: control target
= control target key end

     0   :  { %s3683_s18 = smov 0   ;;  %s3685_s19 = smov 0   ;;  %s5837_s0 = inlined_call_operand.vmem [shape: bf16[2,256,128], index: 0, kind: input, shape index: {}]   ;;  %s5838_s1 = inlined_call_operand.vmem [shape: bf16[2,128,256], index: 1, kind: input, shape index: {}]   ;;  %s5839_s2 = inlined_call_operand.vmem [shape: f32[2,1,256], index: 2, kind: input, shape index: {}]   ;;  %s5840_s3 = inlined_call_operand.vmem [shape: f32[256,8], index: 3, kind: input, shape index: {}]   ;;  %s5841_s4 = inlined_call_operand.vmem [shape: f32[8,256], index: 4, kind: input, shape index: {}]   ;;  %s5842_s5 = inlined_call_operand.vmem [shape: f32[2,8,128], index: 5, kind: output, shape index: {}]  }
   0x1   :  { %s3687_s20 = smov 0  }
   0x2 LB: > { %s27_s21 = sadd.s32 1, %s3643_s19  ;;  %p3005_p0 = scmp.ge.s32.totalorder %s3647_s20, 1  ;;  %s3647_s20 = sphi %s3687_s20, %s15_s20   ;;  %s3643_s19 = sphi %s3685_s19, %s6542_s19   ;;  %s3639_s18 = sphi %s3683_s18, %s6541_s18  }
   0x3   : > { %p29_p1 = scmp.ge.s32.totalorder %s27_s21, 2  ;;  %p236_p2 = scmp.lt.s32.totalorder %s3647_s20, 3 }
   0x5   : > { %s6544_s21 = smov (%p29_p1, %s27_s21), 0  ;;  %p237_p3 = pnand %p3005_p0, %p236_p2 }
   0x7   : > { %240 = sbr.rel (%p237_p3) target bundleno = 1155 (0x483), region = 40 }
   0xc   : > { %p282_p4 = scmp.lt.s32.totalorder %s3639_s18, 1  ;;  %v5855_v0 = vmov 0   ;;  %v5857_v1 = vmov 1   ;;  %vm2872_vm2 = vcmask 1040384  }
   0xd   : > { %716 = vmatprep.mubr.bf16.mxu0 %v5855_v0  ;;  %796 = vmatprep.mubr.bf16.mxu1 %v5855_v0 }
   0xe   : > { %s6546_s18 = smov (!%p282_p4, %s3639_s18), 1  ;;  %3097 = vset.pattern.permute.xlu1 %v5857_v1  ;;  %3096 = vset.pattern.permute.xlu0 %v5855_v0 }
   0xf   : > { %s3046_s22 = sshll.u32 %s6546_s18, 7  ;;  %s3010_s30 = sshll.u32 %s6546_s18, 1 }
  0x10   : > { %s3711_s25 = scalar_lea.vmem %s5838_s1, %s3046_s22  ;;  %s3722_s28 = scalar_lea.vmem %s5837_s0, %s3046_s22 }
  0x11   : > { %v3119_v2 = vld [vmem:[%s3711_s25 + $0x74] ss:$8 sps:$4 sm:$0xff]   ;;  %v3121_v3 = vld [vmem:[%s3711_s25 + $0x70] ss:$8 sps:$4 sm:$0xff]   ;;  %v3122_v4 = vld [vmem:[%s3711_s25 + $0x64] ss:$8 sps:$4 sm:$0xff]   ;;  %s299_s8 = scalar_lea.vmem %s5839_s2, %s3010_s30 }
  0x12   : > { %684 = vmatprep.subr.bf16.mxu0 %v3119_v2  ;;  %3048 = vmatprep.subr.bf16.mxu1 %v3119_v2  ;;  %v3124_v5 = vld [vmem:[%s3711_s25 + $0x60] ss:$8 sps:$4 sm:$0xff]   ;;  %v3125_v6 = vld [vmem:[%s3711_s25 + $0x54] ss:$8 sps:$4 sm:$0xff]   ;;  %v3127_v7 = vld [vmem:[%s3711_s25 + $0x50] ss:$8 sps:$4 sm:$0xff]  }
  0x13   : > { %685 = vmatpush1.bf16.msra.mxu0 %v3121_v3  ;;  %3056 = vmatpush1.bf16.msra.mxu1 %v3121_v3  ;;  %v3128_v8 = vld [vmem:[%s3711_s25 + $0x44] ss:$8 sps:$4 sm:$0xff]   ;;  %v3130_v9 = vld [vmem:[%s3711_s25 + $0x40] ss:$8 sps:$4 sm:$0xff]   ;;  %v3131_v11 = vld [vmem:[%s3711_s25 + $0x34] ss:$8 sps:$4 sm:$0xff]  }
  0x14   : > { %686 = vmatprep.subr.bf16.mxu0 %v3122_v4  ;;  %3049 = vmatprep.subr.bf16.mxu1 %v3122_v4  ;;  %v3727_v10 = vld [vmem:[%s3722_s28] sm:$0xff]   ;;  %v3731_v12 = vld [vmem:[%s3722_s28 + $0x8] sm:$0xff]   ;;  %v3133_v17 = vld [vmem:[%s3711_s25 + $0x30] ss:$8 sps:$4 sm:$0xff]   ;;  %s3011_s15 = sshll.u32 %s6546_s18, 3 }
  0x15   : > { %v368_v13 = vunpack.c.l.bf16 %v3727_v10  ;;  %v370_v14 = vunpack.c.l.bf16 %v3731_v12  ;;  %v369_v16 = vunpack.c.h.bf16 %v3727_v10  ;;  %v371_v19 = vunpack.c.h.bf16 %v3731_v12  ;;  %v3134_v20 = vld [vmem:[%s3711_s25 + $0x24] ss:$8 sps:$4 sm:$0xff]   ;;  %v3740_v21 = vld [vmem:[%s3722_s28 + $0x10] sm:$0xff]   ;;  %v3136_v26 = vld [vmem:[%s3711_s25 + $0x20] ss:$8 sps:$4 sm:$0xff]   ;;  %s309_s23 = scalar_lea.vmem %s5842_s5, %s3011_s15 }
  0x16   : > { %v372_v24 = vunpack.c.l.bf16 %v3740_v21  ;;  %v373_v25 = vunpack.c.h.bf16 %v3740_v21  ;;  %v3137_v27 = vld [vmem:[%s3711_s25 + $0x14] ss:$8 sps:$4 sm:$0xff]   ;;  %v3139_v33 = vld [vmem:[%s3711_s25 + $0x10] ss:$8 sps:$4 sm:$0xff]   ;;  %v3140_v34 = vld [vmem:[%s3711_s25 + $0x4] ss:$8 sps:$4 sm:$0xff]  }
  0x17   : > { %687 = vmatpush1.bf16.msra.mxu0 %v3124_v5  ;;  %3057 = vmatpush1.bf16.msra.mxu1 %v3124_v5  ;;  %v400_v15 = vmul.f32 %v368_v13, %v368_v13  ;;  %v402_v18 = vmul.f32 %v370_v14, %v370_v14  ;;  %v401_v22 = vmul.f32 %v369_v16, %v369_v16  ;;  %v3747_v28 = vld [vmem:[%s3722_s28 + $0x18] sm:$0xff]   ;;  %v3754_v35 = vld [vmem:[%s3722_s28 + $0x20] sm:$0xff]   ;;  %v3761_v42 = vld [vmem:[%s3722_s28 + $0x28] sm:$0xff]  }
  0x18   : > { %688 = vmatprep.subr.bf16.mxu0 %v3125_v6  ;;  %3050 = vmatprep.subr.bf16.mxu1 %v3125_v6  ;;  %v403_v23 = vmul.f32 %v371_v19, %v371_v19  ;;  %v404_v29 = vmul.f32 %v372_v24, %v372_v24  ;;  %v405_v30 = vmul.f32 %v373_v25, %v373_v25  ;;  %v374_v31 = vunpack.c.l.bf16 %v3747_v28  ;;  %v3142_v40 = vld [vmem:[%s3711_s25] ss:$8 sps:$4 sm:$0xff]   ;;  %v3766_v47 = vld [vmem:[%s3722_s28 + $0x30] sm:$0xff]   ;;  %v3772_v52 = vld [vmem:[%s3722_s28 + $0x38] sm:$0xff]  }
  0x19   : > { %432 = vadd.xlane.f32.xlu0 %v400_v15  ;;  %436 = vadd.xlane.f32.xlu1 %v402_v18  ;;  %v375_v32 = vunpack.c.h.bf16 %v3747_v28  ;;  %v376_v38 = vunpack.c.l.bf16 %v3754_v35  ;;  %v377_v39 = vunpack.c.h.bf16 %v3754_v35  ;;  %v336_v41 = vld [vmem:[%s3722_s28 + $0x40] sm:$0xff]   ;;  %v378_v45 = vunpack.c.l.bf16 %v3761_v42  ;;  %v338_v53 = vld [vmem:[%s3722_s28 + $0x48] sm:$0xff]   ;;  %v340_v62 = vld [vmem:[%s3722_s28 + $0x50] sm:$0xff]  }
  0x1a   : > { %v406_v36 = vmul.f32 %v374_v31, %v374_v31  ;;  %v379_v46 = vunpack.c.h.bf16 %v3761_v42  ;;  %v380_v50 = vunpack.c.l.bf16 %v3766_v47  ;;  %v381_v51 = vunpack.c.h.bf16 %v3766_v47  ;;  %v344_v14 = vld [vmem:[%s3722_s28 + $0x60] sm:$0xff]   ;;  %v346_v19 = vld [vmem:[%s3722_s28 + $0x68] sm:$0xff]   ;;  %v348_v24 = vld [vmem:[%s3722_s28 + $0x70] sm:$0xff]  }
  0x1b   : > { %689 = vmatpush1.bf16.msra.mxu0 %v3127_v7  ;;  %3058 = vmatpush1.bf16.msra.mxu1 %v3127_v7  ;;  %v407_v37 = vmul.f32 %v375_v32, %v375_v32  ;;  %v408_v43 = vmul.f32 %v376_v38, %v376_v38  ;;  %v409_v44 = vmul.f32 %v377_v39, %v377_v39  ;;  %v382_v56 = vunpack.c.l.bf16 %v3772_v52  ;;  %v3816_v38 = vld [vmem:[%s5840_s3 + $0x10] sm:$0xff]  ;;  %v3822_v39 = vld [vmem:[%s5840_s3 + $0x18] sm:$0xff] }
  0x1c   : > { %690 = vmatprep.subr.bf16.mxu0 %v3128_v8  ;;  %3051 = vmatprep.subr.bf16.mxu1 %v3128_v8  ;;  %v410_v48 = vmul.f32 %v378_v45, %v378_v45  ;;  %v411_v49 = vmul.f32 %v379_v46, %v379_v46  ;;  %v412_v54 = vmul.f32 %v380_v50, %v380_v50  ;;  %v383_v57 = vunpack.c.h.bf16 %v3772_v52  ;;  %v3858_v45 = vld [vmem:[%s5840_s3 + $0x50] sm:$0xff]  ;;  %v3864_v46 = vld [vmem:[%s5840_s3 + $0x58] sm:$0xff] }
  0x1d   : > { %434 = vadd.xlane.f32.xlu0 %v401_v22  ;;  %438 = vadd.xlane.f32.xlu1 %v403_v23  ;;  %v413_v55 = vmul.f32 %v381_v51, %v381_v51  ;;  %v414_v58 = vmul.f32 %v382_v56, %v382_v56  ;;  %v384_v60 = vunpack.c.l.bf16 %v336_v41  ;;  %v385_v61 = vunpack.c.h.bf16 %v336_v41 }
  0x1e   : > { %v415_v59 = vmul.f32 %v383_v57, %v383_v57  ;;  %v387_v3 = vunpack.c.h.bf16 %v338_v53  ;;  %v386_v4 = vunpack.c.l.bf16 %v338_v53  ;;  %v389_v7 = vunpack.c.h.bf16 %v340_v62 }
  0x1f   : > { %691 = vmatpush1.bf16.msra.mxu0 %v3130_v9  ;;  %3059 = vmatpush1.bf16.msra.mxu1 %v3130_v9  ;;  %v416_v63 = vmul.f32 %v384_v60, %v384_v60  ;;  %v417_v2 = vmul.f32 %v385_v61, %v385_v61  ;;  %v388_v8 = vunpack.c.l.bf16 %v340_v62  ;;  %v342_v9 = vld [vmem:[%s3722_s28 + $0x58] sm:$0xff]   ;;  %v393_v16 = vunpack.c.h.bf16 %v344_v14 }
  0x20   : > { %692 = vmatprep.subr.bf16.mxu0 %v3131_v11  ;;  %3052 = vmatprep.subr.bf16.mxu1 %v3131_v11  ;;  %v419_v5 = vmul.f32 %v387_v3, %v387_v3  ;;  %v418_v6 = vmul.f32 %v386_v4, %v386_v4  ;;  %v391_v11 = vunpack.c.h.bf16 %v342_v9  ;;  %v390_v13 = vunpack.c.l.bf16 %v342_v9 }
  0x21   : > { %440 = vadd.xlane.f32.xlu0 %v404_v29  ;;  %442 = vadd.xlane.f32.xlu1 %v405_v30  ;;  %v392_v18 = vunpack.c.l.bf16 %v344_v14  ;;  %v394_v23 = vunpack.c.l.bf16 %v346_v19  ;;  %v350_v29 = vld [vmem:[%s3722_s28 + $0x78] sm:$0xff]   ;;  %v5843_v56 = vlaneseq }
  0x22   : > { %v423_v15 = vmul.f32 %v391_v11, %v391_v11  ;;  %v399_v31 = vunpack.c.h.bf16 %v350_v29 }
  0x23   : > { %693 = vmatpush1.bf16.msra.mxu0 %v3133_v17  ;;  %3060 = vmatpush1.bf16.msra.mxu1 %v3133_v17  ;;  %v422_v17 = vmul.f32 %v390_v13, %v390_v13  ;;  %v424_v22 = vmul.f32 %v392_v18, %v392_v18 }
  0x24   : > { %694 = vmatprep.subr.bf16.mxu0 %v3134_v20  ;;  %3053 = vmatprep.subr.bf16.mxu1 %v3134_v20  ;;  %v425_v20 = vmul.f32 %v393_v16, %v393_v16 }
  0x25   : > { %444 = vadd.xlane.f32.xlu0 %v406_v36  ;;  %446 = vadd.xlane.f32.xlu1 %v407_v37  ;;  %v3810_v37 = vld [vmem:[%s5840_s3 + $0x8] sm:$0xff] }
  0x27   : > { %695 = vmatpush1.bf16.msra.mxu0 %v3136_v26  ;;  %3061 = vmatpush1.bf16.msra.mxu1 %v3136_v26  ;;  %v397_v26 = vunpack.c.h.bf16 %v348_v24 }
  0x28   : > { %696 = vmatprep.subr.bf16.mxu0 %v3137_v27  ;;  %3054 = vmatprep.subr.bf16.mxu1 %v3137_v27  ;;  %v426_v27 = vmul.f32 %v394_v23, %v394_v23 }
  0x29   : > { %448 = vadd.xlane.f32.xlu0 %v408_v43  ;;  %450 = vadd.xlane.f32.xlu1 %v409_v44  ;;  %v429_v30 = vmul.f32 %v397_v26, %v397_v26  ;;  %v3846_v43 = vld [vmem:[%s5840_s3 + $0x40] sm:$0xff]  ;;  %v3852_v44 = vld [vmem:[%s5840_s3 + $0x48] sm:$0xff] }
  0x2b   : > { %697 = vmatpush1.bf16.msra.mxu0 %v3139_v33  ;;  %3062 = vmatpush1.bf16.msra.mxu1 %v3139_v33  ;;  %v398_v33 = vunpack.c.l.bf16 %v350_v29 }
  0x2c   : > { %698 = vmatprep.subr.bf16.mxu0 %v3140_v34  ;;  %3055 = vmatprep.subr.bf16.mxu1 %v3140_v34  ;;  %v431_v34 = vmul.f32 %v399_v31, %v399_v31 }
  0x2d   : > { %452 = vadd.xlane.f32.xlu0 %v410_v48  ;;  %454 = vadd.xlane.f32.xlu1 %v411_v49  ;;  %v430_v36 = vmul.f32 %v398_v33, %v398_v33 }
  0x2f   : > { %699 = vmatpush1.bf16.msra.mxu0 %v3142_v40  ;;  %3063 = vmatpush1.bf16.msra.mxu1 %v3142_v40  ;;  %v3828_v40 = vld [vmem:[%s5840_s3 + $0x20] sm:$0xff] }
  0x31   : > { %456 = vadd.xlane.f32.xlu0 %v412_v54  ;;  %458 = vadd.xlane.f32.xlu1 %v413_v55 }
  0x32   : > { %717 = vmatmul.mubr.bf16.vlgmr.msra.gmra.mxu0 %v3727_v10  ;;  %797 = vmatmul.mubr.bf16.vlgmr.msra.gmra.mxu1 %v336_v41  ;;  %v421_v10 = vmul.f32 %v389_v7, %v389_v7  ;;  %v3834_v41 = vld [vmem:[%s5840_s3 + $0x30] sm:$0xff] }
  0x33   : > { %726 = vmatprep.mubr.bf16.mxu0 %v5855_v0  ;;  %806 = vmatprep.mubr.bf16.mxu1 %v5855_v0 }
  0x35   : > { %460 = vadd.xlane.f32.xlu0 %v414_v58  ;;  %462 = vadd.xlane.f32.xlu1 %v415_v59  ;;  %v3888_v59 = vshrl.u32 %v5843_v56, 7 }
  0x37   : > { %6051 = vst [vmem:[#allocation3_spill] sm:$0xff] %v3888_v59  ;;  %v3896_v61 = vsub.s32 0, %v3888_v59 }
  0x39   : > { %464 = vadd.xlane.f32.xlu0 %v416_v63  ;;  %466 = vadd.xlane.f32.xlu1 %v417_v2  ;;  %6052 = vst [vmem:[#allocation4_spill] sm:$0xff] %v3896_v61  ;;  %v496_v63 = vld [vmem:[%s299_s8] sm:$0x3]  ;;  %v3901_v2 = vsub.s32 1, %v3888_v59 }
  0x3a   : > { %727 = vmatmul.mubr.bf16.gmra.mxu0 %v3731_v12  ;;  %807 = vmatmul.mubr.bf16.gmra.mxu1 %v338_v53  ;;  %v420_v12 = vmul.f32 %v388_v8, %v388_v8  ;;  %v3904_v3 = vrot.slane %v496_v63, %v3896_v61 }
  0x3b   : > { %736 = vmatprep.mubr.bf16.mxu0 %v5855_v0  ;;  %816 = vmatprep.mubr.bf16.mxu1 %v5855_v0  ;;  %6053 = vst [vmem:[#allocation5_spill] sm:$0xff] %v3901_v2 }
  0x3d   : > { %470 = vadd.xlane.f32.xlu1 %v419_v5  ;;  %468 = vadd.xlane.f32.xlu0 %v418_v6  ;;  %v3909_v5 = vrot.slane %v496_v63, %v3901_v2 }
  0x41   : > { %474 = vadd.xlane.f32.xlu1 %v421_v10  ;;  %472 = vadd.xlane.f32.xlu0 %v420_v12 }
  0x42   : > { %737 = vmatmul.mubr.bf16.gmra.mxu0 %v3740_v21  ;;  %817 = vmatmul.mubr.bf16.gmra.mxu1 %v340_v62  ;;  %v395_v21 = vunpack.c.h.bf16 %v346_v19 }
  0x43   : > { %746 = vmatprep.mubr.bf16.mxu0 %v5855_v0  ;;  %826 = vmatprep.mubr.bf16.mxu1 %v5855_v0 }
  0x44   : > { %v427_v25 = vmul.f32 %v395_v21, %v395_v21 }
  0x45   : > { %478 = vadd.xlane.f32.xlu1 %v423_v15  ;;  %476 = vadd.xlane.f32.xlu0 %v422_v17 }
  0x49   : > { %482 = vadd.xlane.f32.xlu1 %v425_v20  ;;  %480 = vadd.xlane.f32.xlu0 %v424_v22 }
  0x4a   : > { %747 = vmatmul.mubr.bf16.gmra.mxu0 %v3747_v28  ;;  %827 = vmatmul.mubr.bf16.gmra.mxu1 %v342_v9  ;;  %v396_v28 = vunpack.c.l.bf16 %v348_v24 }
  0x4b   : > { %756 = vmatprep.mubr.bf16.mxu0 %v5855_v0  ;;  %836 = vmatprep.mubr.bf16.mxu1 %v5855_v0 }
  0x4c   : > { %v428_v32 = vmul.f32 %v396_v28, %v396_v28 }
  0x4d   : > { %486 = vadd.xlane.f32.xlu1 %v427_v25  ;;  %484 = vadd.xlane.f32.xlu0 %v426_v27 }
  0x51   : > { %490 = vadd.xlane.f32.xlu1 %v429_v30  ;;  %488 = vadd.xlane.f32.xlu0 %v428_v32 }
  0x52   : > { %757 = vmatmul.mubr.bf16.gmra.mxu0 %v3754_v35  ;;  %837 = vmatmul.mubr.bf16.gmra.mxu1 %v344_v14  ;;  %v1517_v35 = vld [vmem:[%s5840_s3] sm:$0xff] }
  0x53   : > { %766 = vmatprep.mubr.bf16.mxu0 %v5855_v0  ;;  %846 = vmatprep.mubr.bf16.mxu1 %v5855_v0 }
  0x55   : > { %494 = vadd.xlane.f32.xlu1 %v431_v34  ;;  %492 = vadd.xlane.f32.xlu0 %v430_v36 }
  0x5a   : > { %767 = vmatmul.mubr.bf16.gmra.mxu0 %v3761_v42  ;;  %847 = vmatmul.mubr.bf16.gmra.mxu1 %v346_v19  ;;  %v3840_v42 = vld [vmem:[%s5840_s3 + $0x38] sm:$0xff] }
  0x5b   : > { %776 = vmatprep.mubr.bf16.mxu0 %v5855_v0  ;;  %856 = vmatprep.mubr.bf16.mxu1 %v5855_v0 }
  0x62   : > { %777 = vmatmul.mubr.bf16.gmra.mxu0 %v3766_v47  ;;  %857 = vmatmul.mubr.bf16.gmra.mxu1 %v348_v24 }
  0x63   : > { %786 = vmatprep.mubr.bf16.mxu0 %v5855_v0  ;;  %866 = vmatprep.mubr.bf16.mxu1 %v5855_v0 }
  0x66   : > { %1784 = vperm.xlu1 %3097, %v1517_v35  }
  0x6a   : > { %787 = vmatmul.mubr.bf16.gmra.mxu0 %v3772_v52  ;;  %867 = vmatmul.mubr.bf16.gmra.mxu1 %v350_v29 }
  0x6b   : > { %1788 = vperm.xlu1 %3097, %v3810_v37   ;;  %1553 = vperm.xlu0 %3096, %v1517_v35  }
  0x6f   : > { %1792 = vperm.xlu1 %3097, %v3816_v38  }
  0x73   : > { %1796 = vperm.xlu1 %3097, %v3822_v39  }
  0x77   : > { %1800 = vperm.xlu1 %3097, %v3828_v40  }
  0x7b   : > { %1808 = vperm.xlu1 %3097, %v3834_v41  }
  0x7f   : > { %1812 = vperm.xlu1 %3097, %v3840_v42  }
  0x83   : > { %1816 = vperm.xlu1 %3097, %v3846_v43  }
  0x87   : > { %1820 = vperm.xlu1 %3097, %v3852_v44  }
  0x8b   : > { %1824 = vperm.xlu1 %3097, %v3858_v45  }
  0x8f   : > { %1828 = vperm.xlu1 %3097, %v3864_v46  }
  0x93   : > { %3098 = vset.pattern.permute.xlu1 %v5855_v0 }
  0xa2   : > { %v433_v47 = vpop.xlane.xlu0 %432  ;;  %v3868_v48 = vpop.xlane.xlu1 %436 }
  0xa6   : > { %v435_v49 = vpop.xlane.xlu0 %434  ;;  %v3870_v50 = vpop.xlane.xlu1 %438 }
  0xaa   : > { %v3872_v51 = vpop.xlane.xlu0 %440  ;;  %v3874_v52 = vpop.xlane.xlu1 %442 }
  0xae   : > { %v3876_v53 = vpop.xlane.xlu0 %444  ;;  %v3878_v54 = vpop.xlane.xlu1 %446 }
  0xb2   : > { %v3880_v55 = vpop.xlane.xlu0 %448  ;;  %v3882_v57 = vpop.xlane.xlu1 %450 }
  0xb6   : > { %v3884_v58 = vpop.xlane.xlu0 %452  ;;  %v3893_v60 = vpop.xlane.xlu1 %454 }
  0xba   : > { %v3898_v62 = vpop.xlane.xlu0 %456  ;;  %v3906_v4 = vpop.xlane.xlu1 %458 }
  0xbe   : > { %v3911_v6 = vpop.xlane.xlu0 %460  ;;  %v3914_v12 = vpop.xlane.xlu1 %462 }
  0xc2   : > { %v465_v20 = vpop.xlane.xlu0 %464  ;;  %v467_v34 = vpop.xlane.xlu1 %466 }
  0xf2   : > { %v718_v7 = vpop.f32.mrf.mxu0  ;;  %v798_v8 = vpop.f32.mrf.mxu1 }
  0xf3   : > { %v719_v9 = vadd.f32 %v718_v7, %v3904_v3  ;;  %v799_v16 = vadd.f32 %v798_v8, %v3904_v3 }
  0xf4   : > { %v720_v10 = vpop.f32.mrf.mxu0  ;;  %v800_v11 = vpop.f32.mrf.mxu1 }
  0xf5   : > { %v721_v13 = vadd.f32 %v720_v10, %v3909_v5  ;;  %v801_v14 = vadd.f32 %v800_v11, %v3909_v5  ;;  %v3918_v15 = vadd.f32 %v719_v9, %v433_v47  ;;  %v3931_v30 = vadd.f32 %v799_v16, %v465_v20 }
  0xf6   : > { %v722_v17 = vpop.f32.mrf.mxu0  ;;  %v802_v18 = vpop.f32.mrf.mxu1 }
  0xf7   : > { %v3921_v19 = vadd.f32 %v721_v13, %v433_v47  ;;  %v723_v21 = vadd.f32 %v722_v17, %v3904_v3  ;;  %v3924_v22 = vadd.f32 %v801_v14, %v465_v20  ;;  %v803_v26 = vadd.f32 %v802_v18, %v3904_v3  ;;  %v469_v14 = vpop.xlane.xlu0 %468 }
  0xf8   : > { %v724_v23 = vpop.f32.mrf.mxu0  ;;  %v804_v24 = vpop.f32.mrf.mxu1  ;;  %v5848_v29 = vmax.f32 %v3918_v15, 0.0 }
  0xf9   : > { %v5847_v25 = vmax.f32 %v3921_v19, 0.0  ;;  %v725_v27 = vadd.f32 %v724_v23, %v3909_v5  ;;  %v805_v28 = vadd.f32 %v804_v24, %v3909_v5  ;;  %v3933_v31 = vadd.f32 %v723_v21, %v435_v49 }
  0xfa   : > { %v728_v32 = vpop.f32.mrf.mxu0  ;;  %v808_v33 = vpop.f32.mrf.mxu1  ;;  %v5845_v9 = vmax.f32 %v3924_v22, 0.0  ;;  %v3945_v10 = vadd.f32 %v803_v26, %v467_v34  ;;  %v5846_v23 = vmax.f32 %v3931_v30, 0.0 }
  0xfb   : > { %v3935_v36 = vadd.f32 %v725_v27, %v435_v49  ;;  %v729_v35 = vadd.f32 %v728_v32, %v3904_v3  ;;  %v3938_v47 = vadd.f32 %v805_v28, %v467_v34  ;;  %v1005_v8 = vmin.f32 %v5848_v29, %v5847_v25  ;;  %v471_v25 = vpop.xlane.xlu1 %470 }
  0xfc   : > { %v730_v63 = vpop.f32.mrf.mxu0  ;;  %v810_v7 = vpop.f32.mrf.mxu1  ;;  %v809_v49 = vadd.f32 %v808_v33, %v3904_v3  ;;  %v5854_v16 = vmax.f32 %v3933_v31, 0.0 }
  0xfd   : > { %v5849_v11 = vmax.f32 %v3935_v36, 0.0  ;;  %v731_v13 = vadd.f32 %v730_v63, %v3909_v5  ;;  %v3952_v17 = vadd.f32 %v729_v35, %v3868_v48  ;;  %v811_v18 = vadd.f32 %v810_v7, %v3909_v5  ;;  %1006 = vmin.xlane.f32.xlu0 %v1005_v8 }
  0xfe   : > { %v732_v20 = vpop.f32.mrf.mxu0  ;;  %v812_v21 = vpop.f32.mrf.mxu1  ;;  %v5850_v27 = vmax.f32 %v3938_v47, 0.0  ;;  %v1053_v35 = vmin.f32 %v5846_v23, %v5845_v9  ;;  %v3973_v7 = vadd.f32 %v809_v49, %v469_v14 }
  0xff   : > { %v3957_v24 = vadd.f32 %v731_v13, %v3868_v48  ;;  %v733_v26 = vadd.f32 %v732_v20, %v3904_v3  ;;  %v3961_v28 = vadd.f32 %v811_v18, %v469_v14  ;;  %v1008_v34 = vmin.f32 %v5854_v16, %v5849_v11 }
 0x100   : > { %v734_v32 = vpop.f32.mrf.mxu0  ;;  %v814_v33 = vpop.f32.mrf.mxu1  ;;  %v5851_v48 = vmax.f32 %v3945_v10, 0.0  ;;  %v5853_v13 = vmax.f32 %v3952_v17, 0.0  ;;  %v813_v20 = vadd.f32 %v812_v21, %v3904_v3 }
 0x101   : > { %6054 = vst [vmem:[#allocation6_spill] sm:$0xff] %v3961_v28  ;;  %v5852_v63 = vmax.f32 %v3957_v24, 0.0  ;;  %v735_v8 = vadd.f32 %v734_v32, %v3909_v5  ;;  %v3978_v18 = vadd.f32 %v733_v26, %v3870_v50  ;;  %v815_v56 = vadd.f32 %v814_v33, %v3909_v5  ;;  %1009 = vmin.xlane.f32.xlu1 %v1008_v34 }
 0x102   : > { %1054 = vmin.xlane.f32.xlu0 %v1053_v35  ;;  %v738_v9 = vpop.f32.mrf.mxu0  ;;  %v818_v23 = vpop.f32.mrf.mxu1  ;;  %v1056_v21 = vmin.f32 %v5851_v48, %v5850_v27  ;;  %v5860_v33 = vmax.f32 %v3961_v28, 0.0  ;;  %v5861_v34 = vmax.f32 %v3973_v7, 0.0 }
 0x103   : > { %v3983_v29 = vadd.f32 %v735_v8, %v3870_v50  ;;  %v739_v49 = vadd.f32 %v738_v9, %v3904_v3  ;;  %v3986_v14 = vadd.f32 %v815_v56, %v471_v25  ;;  %v1011_v26 = vmin.f32 %v5853_v13, %v5852_v63 }
 0x104   : > { %v740_v32 = vpop.f32.mrf.mxu0  ;;  %v820_v11 = vpop.f32.mrf.mxu1  ;;  %v5862_v35 = vmax.f32 %v3978_v18, 0.0  ;;  %v4002_v8 = vadd.f32 %v813_v20, %v471_v25  ;;  %v819_v48 = vadd.f32 %v818_v23, %v3904_v3 }
 0x105   : > { %6055 = vst [vmem:[#allocation7_spill] sm:$0xff] %v3986_v14  ;;  %v5859_v50 = vmax.f32 %v3983_v29, 0.0  ;;  %v741_v9 = vadd.f32 %v740_v32, %v3909_v5  ;;  %v821_v56 = vadd.f32 %v820_v11, %v3909_v5  ;;  %v4005_v27 = vadd.f32 %v739_v49, %v3872_v51  ;;  %1057 = vmin.xlane.f32.xlu1 %v1056_v21  ;;  %v473_v32 = vpop.xlane.xlu0 %472 }
 0x106   : > { %1012 = vmin.xlane.f32.xlu0 %v1011_v26  ;;  %v742_v63 = vpop.f32.mrf.mxu0  ;;  %v822_v13 = vpop.f32.mrf.mxu1  ;;  %v4029_v0 = vadd.f32 %v819_v48, %v473_v32  ;;  %v6062_v48 = vmax.f32 %v3986_v14, 0.0 }
 0x107   : > { %6056 = vst [vmem:[#allocation8_spill] sm:$0xff] %v4005_v27  ;;  %v4009_v16 = vadd.f32 %v741_v9, %v3872_v51  ;;  %v743_v11 = vadd.f32 %v742_v63, %v3904_v3  ;;  %v4013_v1 = vadd.f32 %v821_v56, %v473_v32  ;;  %v1014_v23 = vmin.f32 %v5862_v35, %v5859_v50  ;;  %v475_v35 = vpop.xlane.xlu1 %474 }
 0x108   : > { %v744_v25 = vpop.f32.mrf.mxu0  ;;  %v824_v20 = vpop.f32.mrf.mxu1  ;;  %v1059_v51 = vmin.f32 %v5861_v34, %v5860_v33  ;;  %v823_v63 = vadd.f32 %v822_v13, %v3904_v3  ;;  %v5866_v56 = vmax.f32 %v4005_v27, 0.0  ;;  %v6063_v32 = vmax.f32 %v4002_v8, 0.0 }
 0x109   : > { %6057 = vst [vmem:[#allocation9_spill] sm:$0xff] %v4009_v16  ;;  %6058 = vst [vmem:[#allocation10_spill] sm:$0xff] %v4013_v1  ;;  %v745_v21 = vadd.f32 %v744_v25, %v3909_v5  ;;  %v825_v26 = vadd.f32 %v824_v20, %v3909_v5  ;;  %v4032_v50 = vadd.f32 %v743_v11, %v3874_v52  ;;  %1015 = vmin.xlane.f32.xlu1 %v1014_v23  ;;  %v477_v28 = vpop.xlane.xlu0 %476 }
 0x10a   : > { %1060 = vmin.xlane.f32.xlu0 %v1059_v51  ;;  %v748_v33 = vpop.f32.mrf.mxu0  ;;  %v828_v34 = vpop.f32.mrf.mxu1  ;;  %v1062_v11 = vmin.f32 %v6063_v32, %v6062_v48  ;;  %v6064_v23 = vmax.f32 %v4009_v16, 0.0 }
 0x10b   : > { %6059 = vst [vmem:[#allocation11_spill] sm:$0xff] %v4032_v50  ;;  %v4035_v13 = vadd.f32 %v745_v21, %v3874_v52  ;;  %v749_v25 = vadd.f32 %v748_v33, %v3904_v3  ;;  %v4038_v20 = vadd.f32 %v825_v26, %v475_v35  ;;  %v4049_v52 = vadd.f32 %v823_v63, %v475_v35 }
 0x10c   : > { %v750_v49 = vpop.f32.mrf.mxu0  ;;  %v830_v9 = vpop.f32.mrf.mxu1  ;;  %v1017_v51 = vmin.f32 %v5866_v56, %v6064_v23  ;;  %v829_v21 = vadd.f32 %v828_v34, %v3904_v3  ;;  %v5871_v35 = vmax.f32 %v4029_v0, 0.0 }
 0x10d   : > { %6060 = vst [vmem:[#allocation12_spill] sm:$0xff] %v4035_v13  ;;  %6061 = vst [vmem:[#allocation13_spill] sm:$0xff] %v4038_v20  ;;  %v5872_v33 = vmax.f32 %v4035_v13, 0.0  ;;  %v751_v26 = vadd.f32 %v750_v49, %v3909_v5  ;;  %v4056_v48 = vadd.f32 %v749_v25, %v3876_v53  ;;  %v831_v32 = vadd.f32 %v830_v9, %v3909_v5 }
 0x10e   : > { %1063 = vmin.xlane.f32.xlu1 %v1062_v11  ;;  %1018 = vmin.xlane.f32.xlu0 %v1017_v51  ;;  %v752_v23 = vpop.f32.mrf.mxu0  ;;  %v832_v56 = vpop.f32.mrf.mxu1  ;;  %v6068_v9 = vmax.f32 %v4032_v50, 0.0  ;;  %v6069_v51 = vmax.f32 %v4013_v1, 0.0  ;;  %v4077_v49 = vadd.f32 %v829_v21, %v477_v28 }
 0x10f   : > { %6065 = vst [vmem:[#allocation14_spill] sm:$0xff] %v4056_v48  ;;  %v4061_v63 = vadd.f32 %v751_v26, %v3876_v53  ;;  %v833_v34 = vadd.f32 %v832_v56, %v3904_v3  ;;  %v4065_v59 = vadd.f32 %v831_v32, %v477_v28  ;;  %v479_v53 = vpop.xlane.xlu1 %478  ;;  %v5875_v26 = vmax.f32 %v4049_v52, 0.0 }
 0x110   : > { %v754_v14 = vpop.f32.mrf.mxu0  ;;  %v834_v25 = vpop.f32.mrf.mxu1  ;;  %v1020_v11 = vmin.f32 %v6068_v9, %v5872_v33  ;;  %v1065_v16 = vmin.f32 %v5871_v35, %v6069_v51  ;;  %6070 = vst [vmem:[#allocation17_spill] sm:$0xff] %v4077_v49  ;;  %v753_v13 = vadd.f32 %v752_v23, %v3904_v3  ;;  %v6074_v23 = vmax.f32 %v4038_v20, 0.0 }
 0x111   : > { %6066 = vst [vmem:[#allocation15_spill] sm:$0xff] %v4061_v63  ;;  %6067 = vst [vmem:[#allocation16_spill] sm:$0xff] %v4065_v59  ;;  %v755_v32 = vadd.f32 %v754_v14, %v3909_v5  ;;  %v4082_v50 = vadd.f32 %v833_v34, %v479_v53  ;;  %v835_v9 = vadd.f32 %v834_v25, %v3909_v5  ;;  %v6076_v25 = vmax.f32 %v4056_v48, 0.0 }
 0x112   : > { %1021 = vmin.xlane.f32.xlu1 %v1020_v11  ;;  %1066 = vmin.xlane.f32.xlu0 %v1065_v16  ;;  %v758_v51 = vpop.f32.mrf.mxu0  ;;  %v838_v35 = vpop.f32.mrf.mxu1  ;;  %v1068_v34 = vmin.f32 %v5875_v26, %v6074_v23  ;;  %v6075_v16 = vmax.f32 %v4061_v63, 0.0  ;;  %v4105_v1 = vadd.f32 %v753_v13, %v3878_v54 }
 0x113   : > { %6071 = vst [vmem:[#allocation18_spill] sm:$0xff] %v4082_v50  ;;  %v759_v33 = vadd.f32 %v758_v51, %v3904_v3  ;;  %v4088_v28 = vadd.f32 %v755_v32, %v3878_v54  ;;  %v4090_v14 = vadd.f32 %v835_v9, %v479_v53  ;;  %v839_v51 = vadd.f32 %v838_v35, %v3904_v3  ;;  %v481_v53 = vpop.xlane.xlu0 %480 }
 0x114   : > { %v760_v21 = vpop.f32.mrf.mxu0  ;;  %v840_v27 = vpop.f32.mrf.mxu1  ;;  %v1023_v11 = vmin.f32 %v6076_v25, %v6075_v16  ;;  %v5878_v9 = vmax.f32 %v4077_v49, 0.0  ;;  %6077 = vst [vmem:[#allocation21_spill] sm:$0xff] %v4105_v1 }
 0x115   : > { %6072 = vst [vmem:[#allocation19_spill] sm:$0xff] %v4088_v28  ;;  %6073 = vst [vmem:[#allocation20_spill] sm:$0xff] %v4090_v14  ;;  %v761_v56 = vadd.f32 %v760_v21, %v3909_v5  ;;  %v841_v32 = vadd.f32 %v840_v27, %v3909_v5  ;;  %v4110_v26 = vadd.f32 %v759_v33, %v3880_v55  ;;  %v6080_v27 = vmax.f32 %v4065_v59, 0.0 }
 0x116   : > { %1069 = vmin.xlane.f32.xlu1 %v1068_v34  ;;  %1024 = vmin.xlane.f32.xlu0 %v1023_v11  ;;  %v762_v35 = vpop.f32.mrf.mxu0  ;;  %v842_v16 = vpop.f32.mrf.mxu1  ;;  %v6082_v34 = vmax.f32 %v4090_v14, 0.0  ;;  %v6083_v11 = vmax.f32 %v4082_v50, 0.0  ;;  %v4128_v59 = vadd.f32 %v839_v51, %v481_v53 }
 0x117   : > { %6078 = vst [vmem:[#allocation22_spill] sm:$0xff] %v4110_v26  ;;  %v4113_v21 = vadd.f32 %v761_v56, %v3880_v55  ;;  %v1071_v54 = vmin.f32 %v5878_v9, %v6080_v27  ;;  %v4120_v25 = vadd.f32 %v841_v32, %v481_v53  ;;  %v843_v20 = vadd.f32 %v842_v16, %v3904_v3  ;;  %v483_v55 = vpop.xlane.xlu1 %482 }
 0x118   : > { %v764_v33 = vpop.f32.mrf.mxu0  ;;  %v844_v23 = vpop.f32.mrf.mxu1  ;;  %v1074_v63 = vmin.f32 %v6083_v11, %v6082_v34  ;;  %6084 = vst [vmem:[#allocation25_spill] sm:$0xff] %v4128_v59  ;;  %v5885_v32 = vmax.f32 %v4105_v1, 0.0  ;;  %v5884_v16 = vmax.f32 %v4110_v26, 0.0  ;;  %v763_v13 = vadd.f32 %v762_v35, %v3904_v3 }
 0x119   : > { %6079 = vst [vmem:[#allocation23_spill] sm:$0xff] %v4113_v21  ;;  %6081 = vst [vmem:[#allocation24_spill] sm:$0xff] %v4120_v25  ;;  %v5883_v56 = vmax.f32 %v4113_v21, 0.0  ;;  %v765_v27 = vadd.f32 %v764_v33, %v3909_v5  ;;  %v845_v9 = vadd.f32 %v844_v23, %v3909_v5  ;;  %v4135_v49 = vadd.f32 %v843_v20, %v483_v55 }
 0x11a   : > { %1075 = vmin.xlane.f32.xlu0 %v1074_v63  ;;  %1072 = vmin.xlane.f32.xlu1 %v1071_v54  ;;  %v768_v34 = vpop.f32.mrf.mxu0  ;;  %v848_v11 = vpop.f32.mrf.mxu1  ;;  %v6088_v20 = vmax.f32 %v4088_v28, 0.0  ;;  %v4157_v21 = vadd.f32 %v763_v13, %v3882_v57 }
 0x11b   : > { %6085 = vst [vmem:[#allocation26_spill] sm:$0xff] %v4135_v49  ;;  %v4137_v14 = vadd.f32 %v845_v9, %v483_v55  ;;  %v769_v51 = vadd.f32 %v768_v34, %v3904_v3  ;;  %v4141_v53 = vadd.f32 %v765_v27, %v3882_v57  ;;  %v1029_v35 = vmin.f32 %v5884_v16, %v5883_v56  ;;  %v485_v34 = vpop.xlane.xlu0 %484 }
 0x11c   : > { %v770_v23 = vpop.f32.mrf.mxu0  ;;  %v850_v33 = vpop.f32.mrf.mxu1  ;;  %v1026_v63 = vmin.f32 %v5885_v32, %v6088_v20  ;;  %v849_v55 = vadd.f32 %v848_v11, %v3904_v3  ;;  %6089 = vst [vmem:[#allocation29_spill] sm:$0xff] %v4157_v21 }
 0x11d   : > { %6086 = vst [vmem:[#allocation27_spill] sm:$0xff] %v4137_v14  ;;  %6087 = vst [vmem:[#allocation28_spill] sm:$0xff] %v4141_v53  ;;  %v5890_v54 = vmax.f32 %v4137_v14, 0.0  ;;  %v771_v27 = vadd.f32 %v770_v23, %v3909_v5  ;;  %v4161_v16 = vadd.f32 %v769_v51, %v3884_v58  ;;  %v851_v20 = vadd.f32 %v850_v33, %v3909_v5 }
 0x11e   : > { %1030 = vmin.xlane.f32.xlu0 %v1029_v35  ;;  %1027 = vmin.xlane.f32.xlu1 %v1026_v63  ;;  %v772_v32 = vpop.f32.mrf.mxu0  ;;  %v852_v9 = vpop.f32.mrf.mxu1  ;;  %v6093_v51 = vmax.f32 %v4135_v49, 0.0  ;;  %v6094_v35 = vmax.f32 %v4120_v25, 0.0  ;;  %v6095_v63 = vmax.f32 %v4128_v59, 0.0 }
 0x11f   : > { %6090 = vst [vmem:[#allocation30_spill] sm:$0xff] %v4161_v16  ;;  %v4165_v11 = vadd.f32 %v771_v27, %v3884_v58  ;;  %v853_v23 = vadd.f32 %v852_v9, %v3904_v3  ;;  %v4169_v57 = vadd.f32 %v851_v20, %v485_v34  ;;  %v487_v58 = vpop.xlane.xlu1 %486  ;;  %v4180_v9 = vadd.f32 %v849_v55, %v485_v34 }
 0x120   : > { %v774_v13 = vpop.f32.mrf.mxu0  ;;  %v854_v56 = vpop.f32.mrf.mxu1  ;;  %v1080_v33 = vmin.f32 %v6093_v51, %v5890_v54  ;;  %v1077_v26 = vmin.f32 %v6095_v63, %v6094_v35  ;;  %v773_v20 = vadd.f32 %v772_v32, %v3904_v3  ;;  %v5893_v14 = vmax.f32 %v4161_v16, 0.0 }
 0x121   : > { %6091 = vst [vmem:[#allocation31_spill] sm:$0xff] %v4165_v11  ;;  %6092 = vst [vmem:[#allocation32_spill] sm:$0xff] %v4169_v57  ;;  %v5892_v27 = vmax.f32 %v4165_v11, 0.0  ;;  %v775_v50 = vadd.f32 %v774_v13, %v3909_v5  ;;  %v4186_v49 = vadd.f32 %v853_v23, %v487_v58  ;;  %v855_v51 = vadd.f32 %v854_v56, %v3909_v5 }
 0x122   : > { %6096 = vst [vmem:[#allocation33_spill] sm:$0xff] %v4180_v9  ;;  %1081 = vmin.xlane.f32.xlu0 %v1080_v33  ;;  %1078 = vmin.xlane.f32.xlu1 %v1077_v26  ;;  %v778_v35 = vpop.f32.mrf.mxu0  ;;  %v858_v63 = vpop.f32.mrf.mxu1  ;;  %v6100_v26 = vmax.f32 %v4141_v53, 0.0  ;;  %v6101_v23 = vmax.f32 %v4157_v21, 0.0 }
 0x123   : > { %6097 = vst [vmem:[#allocation34_spill] sm:$0xff] %v4186_v49  ;;  %v779_v54 = vadd.f32 %v778_v35, %v3904_v3  ;;  %v4192_v32 = vadd.f32 %v775_v50, %v3893_v60  ;;  %v4194_v34 = vadd.f32 %v855_v51, %v487_v58  ;;  %v1035_v56 = vmin.f32 %v5893_v14, %v5892_v27 }
 0x124   : > { %v780_v13 = vpop.f32.mrf.mxu0  ;;  %v860_v28 = vpop.f32.mrf.mxu1  ;;  %v1032_v33 = vmin.f32 %v6101_v23, %v6100_v26  ;;  %v4205_v35 = vadd.f32 %v773_v20, %v3893_v60  ;;  %v5897_v51 = vmax.f32 %v4180_v9, 0.0  ;;  %v859_v14 = vadd.f32 %v858_v63, %v3904_v3 }
 0x125   : > { %6098 = vst [vmem:[#allocation35_spill] sm:$0xff] %v4192_v32  ;;  %6099 = vst [vmem:[#allocation36_spill] sm:$0xff] %v4194_v34  ;;  %v781_v50 = vadd.f32 %v780_v13, %v3909_v5  ;;  %v861_v58 = vadd.f32 %v860_v28, %v3909_v5  ;;  %v4213_v27 = vadd.f32 %v779_v54, %v3898_v62  ;;  %v489_v13 = vpop.xlane.xlu0 %488  ;;  %v6105_v28 = vmax.f32 %v4169_v57, 0.0 }
 0x126   : > { %6102 = vst [vmem:[#allocation37_spill] sm:$0xff] %v4205_v35  ;;  %1036 = vmin.xlane.f32.xlu0 %v1035_v56  ;;  %1033 = vmin.xlane.f32.xlu1 %v1032_v33  ;;  %v782_v26 = vpop.f32.mrf.mxu0  ;;  %v862_v60 = vpop.f32.mrf.mxu1  ;;  %v6107_v33 = vmax.f32 %v4194_v34, 0.0  ;;  %v6108_v16 = vmax.f32 %v4186_v49, 0.0  ;;  %v4236_v55 = vadd.f32 %v859_v14, %v489_v13 }
 0x127   : > { %6103 = vst [vmem:[#allocation38_spill] sm:$0xff] %v4213_v27  ;;  %v4217_v20 = vadd.f32 %v781_v50, %v3898_v62  ;;  %v1083_v23 = vmin.f32 %v5897_v51, %v6105_v28  ;;  %v4224_v11 = vadd.f32 %v861_v58, %v489_v13  ;;  %v863_v54 = vadd.f32 %v862_v60, %v3904_v3  ;;  %v491_v50 = vpop.xlane.xlu1 %490 }
 0x128   : > { %v784_v63 = vpop.f32.mrf.mxu0  ;;  %v864_v56 = vpop.f32.mrf.mxu1  ;;  %v1086_v62 = vmin.f32 %v6108_v16, %v6107_v33  ;;  %v5901_v58 = vmax.f32 %v4213_v27, 0.0  ;;  %6109 = vst [vmem:[#allocation41_spill] sm:$0xff] %v4236_v55  ;;  %v783_v60 = vadd.f32 %v782_v26, %v3904_v3  ;;  %v6114_v13 = vmax.f32 %v4192_v32, 0.0 }
 0x129   : > { %6104 = vst [vmem:[#allocation39_spill] sm:$0xff] %v4217_v20  ;;  %6106 = vst [vmem:[#allocation40_spill] sm:$0xff] %v4224_v11  ;;  %v785_v28 = vadd.f32 %v784_v63, %v3909_v5  ;;  %v865_v51 = vadd.f32 %v864_v56, %v3909_v5  ;;  %v4239_v9 = vadd.f32 %v863_v54, %v491_v50  ;;  %v6113_v14 = vmax.f32 %v4217_v20, 0.0 }
 0x12a   : > { %1087 = vmin.xlane.f32.xlu0 %v1086_v62  ;;  %1084 = vmin.xlane.f32.xlu1 %v1083_v23  ;;  %v788_v16 = vpop.f32.mrf.mxu0  ;;  %v868_v33 = vpop.f32.mrf.mxu1  ;;  %v6115_v23 = vmax.f32 %v4205_v35, 0.0  ;;  %v6134_v35 = vmax.f32 %v3952_v17, 0.0  ;;  %v6136_v17 = vmax.f32 %v3978_v18, 0.0 }
 0x12b   : > { %6110 = vst [vmem:[#allocation42_spill] sm:$0xff] %v4239_v9  ;;  %v4241_v34 = vadd.f32 %v865_v51, %v491_v50  ;;  %v789_v53 = vadd.f32 %v788_v16, %v3904_v3  ;;  %v4245_v63 = vadd.f32 %v785_v28, %v3906_v4  ;;  %v1041_v26 = vmin.f32 %v5901_v58, %v6113_v14  ;;  %v495_v27 = vpop.xlane.xlu1 %494 }
 0x12c   : > { %v790_v56 = vpop.f32.mrf.mxu0  ;;  %v870_v57 = vpop.f32.mrf.mxu1  ;;  %v1038_v54 = vmin.f32 %v6115_v23, %v6114_v13  ;;  %v4262_v16 = vadd.f32 %v783_v60, %v3906_v4  ;;  %v5905_v20 = vmax.f32 %v4239_v9, 0.0  ;;  %v6120_v13 = vmax.f32 %v4224_v11, 0.0 }
 0x12d   : > { %6111 = vst [vmem:[#allocation43_spill] sm:$0xff] %v4241_v34  ;;  %6112 = vst [vmem:[#allocation44_spill] sm:$0xff] %v4245_v63  ;;  %v4258_v50 = vadd.f32 %v789_v53, %v3911_v6  ;;  %v791_v28 = vadd.f32 %v790_v56, %v3909_v5  ;;  %v871_v4 = vadd.f32 %v870_v57, %v3909_v5 }
 0x12e   : > { %6117 = vst [vmem:[#allocation46_spill] sm:$0xff] %v4262_v16  ;;  %1042 = vmin.xlane.f32.xlu0 %v1041_v26  ;;  %1039 = vmin.xlane.f32.xlu1 %v1038_v54  ;;  %v792_v14 = vpop.f32.mrf.mxu0  ;;  %v872_v58 = vpop.f32.mrf.mxu1  ;;  %v6119_v26 = vmax.f32 %v4241_v34, 0.0  ;;  %v869_v9 = vadd.f32 %v868_v33, %v3904_v3  ;;  %v6128_v33 = vmax.f32 %v4262_v16, 0.0  ;;  %v6133_v16 = vmax.f32 %v3935_v36, 0.0  ;;  %v1540_v36 = vld [vmem:[%s5840_s3 + $0xb8] sm:$0xff] }
 0x12f   : > { %6116 = vst [vmem:[#allocation45_spill] sm:$0xff] %v4258_v50  ;;  %v4267_v23 = vadd.f32 %v791_v28, %v3911_v6  ;;  %v793_v51 = vadd.f32 %v792_v14, %v3904_v3  ;;  %v873_v53 = vadd.f32 %v872_v58, %v3904_v3  ;;  %v6121_v6 = vmax.f32 %v4236_v55, 0.0 }
 0x130   : > { %v794_v60 = vpop.f32.mrf.mxu0  ;;  %v874_v62 = vpop.f32.mrf.mxu1  ;;  %v1092_v54 = vmin.f32 %v5905_v20, %v6119_v26  ;;  %v5913_v14 = vmax.f32 %v4258_v50, 0.0  ;;  %v6127_v3 = vmax.f32 %v4245_v63, 0.0 }
 0x131   : > { %6118 = vst [vmem:[#allocation47_spill] sm:$0xff] %v4267_v23  ;;  %v1089_v28 = vmin.f32 %v6121_v6, %v6120_v13  ;;  %v5912_v58 = vmax.f32 %v4267_v23, 0.0  ;;  %v4284_v56 = vadd.f32 %v793_v51, %v3914_v12  ;;  %v795_v57 = vadd.f32 %v794_v60, %v3909_v5  ;;  %v493_v13 = vpop.xlane.xlu0 %492 }
 0x132   : > { %v4289_v26 = vadd.f32 %v873_v53, %v495_v27  ;;  %v875_v20 = vadd.f32 %v874_v62, %v3909_v5  ;;  %1093 = vmin.xlane.f32.xlu0 %v1092_v54  ;;  %v4299_v60 = vadd.f32 %v871_v4, %v493_v13  ;;  %v1044_v5 = vmin.f32 %v6128_v33, %v6127_v3  ;;  %v1522_v33 = vld [vmem:[%s5840_s3 + $0x28] sm:$0xff] }
 0x133   : > { %6122 = vst [vmem:[#allocation48_spill] sm:$0xff] %v4284_v56  ;;  %1090 = vmin.xlane.f32.xlu1 %v1089_v28  ;;  %v4293_v6 = vadd.f32 %v795_v57, %v3914_v12  ;;  %v1047_v51 = vmin.f32 %v5913_v14, %v5912_v58  ;;  %v5911_v62 = vmax.f32 %v4284_v56, 0.0  ;;  %v4309_v12 = vadd.f32 %v869_v9, %v493_v13  ;;  %v4327_v13 = vpop.permute.xlu1 %1784 }
 0x134   : > { %6123 = vst [vmem:[#allocation49_spill] sm:$0xff] %v4289_v26  ;;  %6125 = vst [vmem:[#allocation51_spill] sm:$0xff] %v4299_v60  ;;  %v4301_v34 = vadd.f32 %v875_v20, %v495_v27  ;;  %v5907_v54 = vmax.f32 %v4289_v26, 0.0  ;;  %v5908_v4 = vmax.f32 %v4299_v60, 0.0 }
 0x135   : > { %6124 = vst [vmem:[#allocation50_spill] sm:$0xff] %v4293_v6  ;;  %v5910_v53 = vmax.f32 %v4293_v6, 0.0  ;;  %6129 = vst [vmem:[#allocation53_spill] sm:$0xff] %v4309_v12  ;;  %v5909_v9 = vmax.f32 %v4309_v12, 0.0  ;;  %v4412_v58 = vpop.permute.xlu0 %1553  ;;  %v1536_v12 = vld [vmem:[%s5840_s3 + $0x98] sm:$0xff] }
 0x136   : > { %6126 = vst [vmem:[#allocation52_spill] sm:$0xff] %v4301_v34  ;;  %v5906_v28 = vmax.f32 %v4301_v34, 0.0  ;;  %1048 = vmin.xlane.f32.xlu0 %v1047_v51 }
 0x137   : > { %1045 = vmin.xlane.f32.xlu1 %v1044_v5  ;;  %v1050_v27 = vmin.f32 %v5911_v62, %v5910_v53  ;;  %v1095_v57 = vmin.f32 %v5909_v9, %v5908_v4  ;;  %v4331_v51 = vpop.permute.xlu1 %1788  ;;  %v4400_v4 = vld [vmem:[%s5840_s3 + $0xe8] sm:$0xff]  ;;  %v1533_v9 = vld [vmem:[%s5840_s3 + $0x80] sm:$0xff]  ;;  %v1547_v62 = vld [vmem:[%s5840_s3 + $0xf0] sm:$0xff] }
 0x138   : > { %v1098_v20 = vmin.f32 %v5907_v54, %v5906_v28  ;;  %v1532_v28 = vld [vmem:[%s5840_s3 + $0x78] sm:$0xff] }
 0x13a   : > { %1099 = vmin.xlane.f32.xlu0 %v1098_v20 }
 0x13b   : > { %1051 = vmin.xlane.f32.xlu1 %v1050_v27  ;;  %v4335_v3 = vpop.permute.xlu1 %1792  ;;  %v1539_v27 = vld [vmem:[%s5840_s3 + $0xb0] sm:$0xff] }
 0x13f   : > { %1096 = vmin.xlane.f32.xlu1 %v1095_v57  ;;  %v4384_v57 = vld [vmem:[%s5840_s3 + $0xc8] sm:$0xff] }
 0x150   : > { %1558 = vperm.xlu1 %3098, %v3810_v37   ;;  %1573 = vperm.xlu0 %3096, %v3828_v40   ;;  %v4343_v37 = vpop.permute.xlu1 %1796 }
 0x154   : > { %1563 = vperm.xlu1 %3098, %v3816_v38   ;;  %1588 = vperm.xlu0 %3096, %v3840_v42   ;;  %v1529_v38 = vld [vmem:[%s5840_s3 + $0x60] sm:$0xff]  ;;  %v4352_v40 = vpop.permute.xlu1 %1800  ;;  %v1534_v42 = vld [vmem:[%s5840_s3 + $0x88] sm:$0xff] }
 0x158   : > { %1568 = vperm.xlu1 %3098, %v3822_v39   ;;  %1598 = vperm.xlu0 %3096, %v3852_v44   ;;  %v1531_v39 = vld [vmem:[%s5840_s3 + $0x70] sm:$0xff]  ;;  %v4362_v44 = vpop.permute.xlu1 %1808 }
 0x15c   : > { %1578 = vperm.xlu1 %3098, %v1522_v33   ;;  %1608 = vperm.xlu0 %3096, %v3864_v46   ;;  %v1535_v46 = vld [vmem:[%s5840_s3 + $0x90] sm:$0xff]  ;;  %v4372_v5 = vpop.permute.xlu1 %1812 }
 0x160   : > { %1583 = vperm.xlu1 %3098, %v3834_v41   ;;  %1613 = vperm.xlu0 %3096, %v1529_v38   ;;  %v1530_v41 = vld [vmem:[%s5840_s3 + $0x68] sm:$0xff]  ;;  %v4379_v20 = vpop.permute.xlu1 %1816 }
 0x164   : > { %1593 = vperm.xlu1 %3098, %v3846_v43   ;;  %1623 = vperm.xlu0 %3096, %v1531_v39   ;;  %v4370_v43 = vld [vmem:[%s5840_s3 + $0xa8] sm:$0xff]  ;;  %v4394_v54 = vpop.permute.xlu1 %1820 }
 0x168   : > { %1603 = vperm.xlu1 %3098, %v3858_v45   ;;  %1638 = vperm.xlu0 %3096, %v1534_v42   ;;  %v6130_v45 = vmov 1   ;;  %v4406_v53 = vpop.permute.xlu1 %1824 }
 0x16c   : > { %1618 = vperm.xlu1 %3098, %v1530_v41   ;;  %1643 = vperm.xlu0 %3096, %v1535_v46   ;;  %v4414_v14 = vpop.permute.xlu1 %1828 }
 0x170   : > { %3099 = vset.pattern.permute.xlu1 %v6130_v45  ;;  %1658 = vperm.xlu0 %3096, %v4370_v43  }
 0x171   : > { %1832 = vperm.xlu1 %3099, %v1529_v38   ;;  %v6131_v38 = vmov 0  }
 0x174   : > { %1663 = vperm.xlu0 %3096, %v1539_v27  }
 0x175   : > { %1836 = vperm.xlu1 %3099, %v1530_v41   ;;  %v1543_v41 = vld [vmem:[%s5840_s3 + $0xd0] sm:$0xff] }
 0x178   : > { %1678 = vperm.xlu0 %3096, %v4384_v57  }
 0x179   : > { %3100 = vset.pattern.permute.xlu1 %v6131_v38 }
 0x17a   : > { %1628 = vperm.xlu1 %3100, %v1532_v28  }
 0x17c   : > { %1683 = vperm.xlu0 %3096, %v1543_v41  }
 0x17e   : > { %3101 = vset.pattern.permute.xlu1 %v6130_v45 }
 0x17f   : > { %1844 = vperm.xlu1 %3101, %v1532_v28  }
 0x180   : > { %1698 = vperm.xlu0 %3096, %v4400_v4  }
 0x183   : > { %3102 = vset.pattern.permute.xlu1 %v6131_v38 }
 0x184   : > { %1633 = vperm.xlu1 %3102, %v1533_v9   ;;  %1703 = vperm.xlu0 %3096, %v1547_v62  }
 0x186   : > { %v4417_v28 = vpop.xlane.xlu0 %1006 }
 0x188   : > { %3103 = vset.pattern.permute.xlu1 %v6130_v45  ;;  %3116 = vset.pattern.permute.xlu0 %v6130_v45 }
 0x189   : > { %1848 = vperm.xlu1 %3103, %v1533_v9   ;;  %1804 = vperm.xlu0 %3116, %v1522_v33  }
 0x18a   : > { %v1010_v34 = vpop.xlane.xlu1 %1009 }
 0x18b   : > { %v4420_v26 = vpop.xlane.xlu0 %1054  ;;  %v1102_v60 = vadd.f32 1e-05, %v1010_v34 }
 0x18d   : > { %1852 = vperm.xlu1 %3103, %v1534_v42   ;;  %1840 = vperm.xlu0 %3116, %v1531_v39   ;;  %3175 = vrcp.f32 %v1102_v60 }
 0x18e   : > { %v4425_v6 = vpop.xlane.xlu1 %1057 }
 0x18f   : > { %v1013_v56 = vpop.xlane.xlu0 %1012 }
 0x190   : > { %v1103_v23 = vadd.f32 1e-05, %v1013_v56  ;;  %v1537_v56 = vld [vmem:[%s5840_s3 + $0xa0] sm:$0xff] }
 0x191   : > { %3104 = vset.pattern.permute.xlu1 %v6131_v38  ;;  %1856 = vperm.xlu0 %3116, %v1535_v46  }
 0x192   : > { %1648 = vperm.xlu1 %3104, %v1536_v12   ;;  %3177 = vrcp.f32 %v1103_v23  ;;  %v1016_v9 = vpop.xlane.xlu1 %1015 }
 0x193   : > { %v4428_v33 = vpop.xlane.xlu0 %1060  ;;  %v1104_v34 = vadd.f32 1e-05, %v1016_v9 }
 0x195   : > { %1872 = vperm.xlu0 %3116, %v1539_v27   ;;  %3179 = vrcp.f32 %v1104_v34 }
 0x196   : > { %3105 = vset.pattern.permute.xlu1 %v6130_v45 }
 0x197   : > { %1860 = vperm.xlu1 %3105, %v1536_v12   ;;  %v4431_v60 = vpop.xlane.xlu1 %1063  ;;  %v4433_v39 = vpop.xlane.xlu0 %1018 }
 0x199   : > { %1888 = vperm.xlu0 %3116, %v1543_v41   ;;  %v6132_v41 = vmax.f32 %v3933_v31, 0.0  ;;  %v6135_v31 = vmax.f32 %v3957_v24, 0.0  ;;  %v6137_v24 = vmax.f32 %v3983_v29, 0.0  ;;  %v1117_v29 = vadd.f32 1e-05, %v4420_v26 }
 0x19a   : > { %v3176_v23 = vpop.eup %3175 }
 0x19b   : > { %3106 = vset.pattern.permute.xlu1 %v6131_v38  ;;  %v4439_v42 = vpop.xlane.xlu1 %1021  ;;  %v4441_v46 = vpop.xlane.xlu0 %1066  ;;  %v1136_v27 = vmul.f32 -2.0, %v3176_v23 }
 0x19c   : > { %1653 = vperm.xlu1 %3106, %v1537_v56  }
 0x19d   : > { %1904 = vperm.xlu0 %3116, %v1547_v62   ;;  %v1199_v50 = vmul.f32 %v1136_v27, %v6132_v41  ;;  %v1200_v11 = vmul.f32 %v1136_v27, %v6133_v16 }
 0x19f   : > { %v4443_v12 = vpop.xlane.xlu1 %1069  ;;  %v4446_v9 = vpop.xlane.xlu0 %1024  ;;  %v1265_v62 = vmul.f32 1.442695, %v1199_v50 }
 0x1a0   : > { %3107 = vset.pattern.permute.xlu1 %v6130_v45  ;;  %v3178_v34 = vpop.eup %3177 }
 0x1a1   : > { %1864 = vperm.xlu1 %3107, %v1537_v56   ;;  %v1138_v63 = vmul.f32 -2.0, %v3178_v34  ;;  %v1267_v56 = vmul.f32 1.442695, %v1200_v11  ;;  %3181 = vpow2.f32 %v1265_v62  ;;  %v1101_v34 = vadd.f32 1e-05, %v4417_v28  ;;  %v1549_v28 = vld [vmem:[%s5841_s4] sm:$0xff] }
 0x1a2   : > { %v3180_v55 = vpop.eup %3179 }
 0x1a3   : > { %v4452_v32 = vpop.xlane.xlu1 %1072  ;;  %v4454_v23 = vpop.xlane.xlu0 %1075  ;;  %v1201_v49 = vmul.f32 %v1138_v63, %v6134_v35  ;;  %v1140_v21 = vmul.f32 -2.0, %v3180_v55  ;;  %v1202_v41 = vmul.f32 %v1138_v63, %v6135_v31  ;;  %3183 = vpow2.f32 %v1267_v56  ;;  %v1550_v56 = vld [vmem:[%s5841_s4 + $0x8] sm:$0xff] }
 0x1a5   : > { %1868 = vperm.xlu1 %3107, %v4370_v43   ;;  %v1269_v50 = vmul.f32 1.442695, %v1201_v49  ;;  %v1203_v35 = vmul.f32 %v1140_v21, %v6136_v17  ;;  %v1271_v11 = vmul.f32 1.442695, %v1202_v41  ;;  %v1204_v55 = vmul.f32 %v1140_v21, %v6137_v24  ;;  %v1541_v21 = vld [vmem:[%s5840_s3 + $0xc0] sm:$0xff] }
 0x1a6   : > { %v1118_v41 = vadd.f32 1e-05, %v4425_v6  ;;  %v4503_v17 = vrot.slane %v1549_v28, %v3896_v61  ;;  %v4509_v6 = vrot.slane %v1550_v56, %v3896_v61  ;;  %v1120_v61 = vadd.f32 1e-05, %v4431_v60  ;;  %v1544_v60 = vld [vmem:[%s5840_s3 + $0xd8] sm:$0xff] }
 0x1a7   : > { %v4464_v16 = vpop.xlane.xlu1 %1027  ;;  %v4466_v27 = vpop.xlane.xlu0 %1030  ;;  %3185 = vpow2.f32 %v1269_v50  ;;  %v1273_v31 = vmul.f32 1.442695, %v1203_v35  ;;  %v1275_v49 = vmul.f32 1.442695, %v1204_v55  ;;  %v4500_v50 = vrot.slane %v1549_v28, %v3901_v2 }
 0x1a8   : > { %3187 = vpow2.f32 %v1271_v11  ;;  %v4506_v35 = vrot.slane %v1550_v56, %v3901_v2  ;;  %v1119_v11 = vadd.f32 1e-05, %v4428_v33  ;;  %v1720_v28 = vsub.f32 %v4412_v58, %v4509_v6 }
 0x1a9   : > { %3108 = vset.pattern.permute.xlu1 %v6131_v38  ;;  %3189 = vrcp.f32 %v1101_v34 }
 0x1aa   : > { %1668 = vperm.xlu1 %3108, %v1540_v36   ;;  %3191 = vpow2.f32 %v1273_v31  ;;  %6138 = vst [vmem:[#allocation54_spill] sm:$0xff] %v4506_v35  ;;  %v1920_v33 = vsub.f32 %v4327_v13, %v4506_v35 }
 0x1ab   : > { %v4473_v63 = vpop.xlane.xlu1 %1078  ;;  %v4475_v43 = vpop.xlane.xlu0 %1081  ;;  %3193 = vpow2.f32 %v1275_v49  ;;  %v1919_v49 = vsub.f32 %v4327_v13, %v4500_v50 }
 0x1ac   : > { %3195 = vrcp.f32 %v1117_v29  ;;  %v1719_v29 = vsub.f32 %v4412_v58, %v4503_v17  ;;  %v2048_v13 = vmul.f32 %v1920_v33, %v1920_v33 }
 0x1ad   : > { %3197 = vrcp.f32 %v1118_v41 }
 0x1ae   : > { %3109 = vset.pattern.permute.xlu1 %v6130_v45  ;;  %v4512_v24 = vpop.eup %3181  ;;  %3199 = vrcp.f32 %v1119_v11  ;;  %v1983_v1 = vmul.f32 %v1719_v29, %v1719_v29  ;;  %v1984_v11 = vmul.f32 %v1720_v28, %v1720_v28 }
 0x1af   : > { %1876 = vperm.xlu1 %3109, %v1540_v36   ;;  %v4479_v18 = vpop.xlane.xlu1 %1033  ;;  %v4481_v62 = vpop.xlane.xlu0 %1036  ;;  %6139 = vst [vmem:[#allocation55_spill] sm:$0xff] %v4512_v24  ;;  %3201 = vrcp.f32 %v1120_v61 }
 0x1b0   : > { %v4514_v55 = vpop.eup %3183  ;;  %v2112_v33 = vadd.f32 %v2048_v13, %v1984_v11  ;;  %v6147_v13 = vmax.f32 %v3918_v15, 0.0  ;;  %v1921_v11 = vsub.f32 %v4331_v51, %v4500_v50 }
 0x1b1   : > { %6140 = vst [vmem:[#allocation56_spill] sm:$0xff] %v4514_v55  ;;  %v1392_v41 = vadd.f32 %v4514_v55, %v4512_v24  ;;  %v1105_v55 = vadd.f32 1e-05, %v4433_v39  ;;  %v1106_v39 = vadd.f32 1e-05, %v4439_v42 }
 0x1b3   : > { %3110 = vset.pattern.permute.xlu1 %v6131_v38  ;;  %v4495_v36 = vpop.xlane.xlu1 %1084  ;;  %v4497_v26 = vpop.xlane.xlu0 %1087  ;;  %3203 = vrcp.f32 %v1105_v55 }
 0x1b4   : > { %1673 = vperm.xlu1 %3110, %v1541_v21   ;;  %v4529_v56 = vpop.eup %3185  ;;  %3205 = vrcp.f32 %v1106_v39 }
 0x1b5   : > { %6141 = vst [vmem:[#allocation57_spill] sm:$0xff] %v4529_v56  ;;  %v4533_v2 = vpop.eup %3187 }
 0x1b6   : > { %6142 = vst [vmem:[#allocation58_spill] sm:$0xff] %v4533_v2  ;;  %v3190_v58 = vpop.eup %3189  ;;  %v1395_v24 = vadd.f32 %v4533_v2, %v4529_v56 }
 0x1b7   : > { %v4516_v34 = vpop.xlane.xlu1 %1039  ;;  %v4519_v31 = vpop.xlane.xlu0 %1042 }
 0x1b8   : > { %3111 = vset.pattern.permute.xlu1 %v6130_v45  ;;  %v4541_v48 = vpop.eup %3191 }
 0x1b9   : > { %1880 = vperm.xlu1 %3111, %v1541_v21   ;;  %v2047_v21 = vmul.f32 %v1919_v49, %v1919_v49  ;;  %6144 = vst [vmem:[#allocation60_spill] sm:$0xff] %v4541_v48 }
 0x1bb   : > { %v4538_v59 = vpop.xlane.xlu0 %1093 }
 0x1bc   : > { %v4536_v25 = vpop.xlane.xlu1 %1090  ;;  %6143 = vst [vmem:[#allocation59_spill] sm:$0xff] %v4538_v59  ;;  %1393 = vadd.xlane.f32.xlu0 %v1392_v41  ;;  %v4549_v59 = vpop.eup %3193  ;;  %v1134_v41 = vmul.f32 -2.0, %v3190_v58 }
 0x1bd   : > { %1884 = vperm.xlu1 %3111, %v4384_v57   ;;  %6145 = vst [vmem:[#allocation61_spill] sm:$0xff] %v4549_v59  ;;  %v2111_v57 = vadd.f32 %v2047_v21, %v1983_v1  ;;  %v3196_v29 = vpop.eup %3195  ;;  %v1398_v2 = vadd.f32 %v4549_v59, %v4541_v48  ;;  %v1121_v21 = vadd.f32 1e-05, %v4441_v46  ;;  %v6151_v59 = vmax.f32 %v3931_v30, 0.0 }
 0x1be   : > { %v3198_v56 = vpop.eup %3197  ;;  %v1166_v1 = vmul.f32 -2.0, %v3196_v29  ;;  %v1197_v58 = vmul.f32 %v1134_v41, %v6147_v13  ;;  %v6148_v29 = vmax.f32 %v3921_v19, 0.0  ;;  %v6152_v13 = vmax.f32 %v3924_v22, 0.0 }
 0x1bf   : > { %v4555_v28 = vpop.xlane.xlu0 %1048  ;;  %v3200_v42 = vpop.eup %3199  ;;  %v1168_v55 = vmul.f32 -2.0, %v3198_v56  ;;  %3207 = vrcp.f32 %v1121_v21  ;;  %v1545_v56 = vld [vmem:[%s5840_s3 + $0xe0] sm:$0xff]  ;;  %v1923_v19 = vsub.f32 %v4335_v3, %v4500_v50  ;;  %v6153_v30 = vmax.f32 %v3945_v10, 0.0 }
 0x1c0   : > { %v4551_v49 = vpop.xlane.xlu1 %1045  ;;  %1396 = vadd.xlane.f32.xlu0 %v1395_v24  ;;  %v2176_v24 = vmul.f32 -200000.0, %v2112_v33  ;;  %v1198_v46 = vmul.f32 %v1134_v41, %v6148_v29  ;;  %v1229_v15 = vmul.f32 %v1166_v1, %v6151_v59  ;;  %v1170_v48 = vmul.f32 -2.0, %v3200_v42  ;;  %v3202_v42 = vpop.eup %3201 }
 0x1c1   : > { %6146 = vst [vmem:[#allocation62_spill] sm:$0xff] %v4551_v49  ;;  %3112 = vset.pattern.permute.xlu1 %v6131_v38  ;;  %v2175_v49 = vmul.f32 -200000.0, %v2111_v57  ;;  %v1922_v57 = vsub.f32 %v4331_v51, %v4506_v35  ;;  %v1230_v51 = vmul.f32 %v1166_v1, %v6152_v13  ;;  %v1924_v41 = vsub.f32 %v4335_v3, %v4506_v35 }
 0x1c2   : > { %1688 = vperm.xlu1 %3112, %v1544_v60   ;;  %v1231_v59 = vmul.f32 %v1168_v55, %v6153_v30  ;;  %v4589_v21 = vmul.f32 %v1921_v11, %v1921_v11  ;;  %v1925_v22 = vsub.f32 %v4343_v37, %v4500_v50  ;;  %v1263_v1 = vmul.f32 1.442695, %v1198_v46 }
 0x1c3   : > { %v2239_v39 = vmul.f32 1.442695, %v2175_v49  ;;  %v1261_v49 = vmul.f32 1.442695, %v1197_v58  ;;  %v4591_v29 = vmul.f32 %v1922_v57, %v1922_v57  ;;  %v1926_v3 = vsub.f32 %v4343_v37, %v4506_v35 }
 0x1c4   : > { %v4559_v61 = vpop.xlane.xlu1 %1051  ;;  %1399 = vadd.xlane.f32.xlu0 %v1398_v2  ;;  %v4571_v2 = vpop.xlane.xlu0 %1099  ;;  %v1325_v10 = vmul.f32 1.442695, %v1229_v15  ;;  %v6155_v58 = vmax.f32 %v3938_v47, 0.0  ;;  %v1927_v11 = vsub.f32 %v4352_v40, %v4500_v50  ;;  %v1327_v57 = vmul.f32 1.442695, %v1230_v51  ;;  %v6157_v47 = vld [vmem:[#allocation6_spill] sm:$0xff] }
 0x1c5   : > { %6149 = vst [vmem:[#allocation63_spill] sm:$0xff] %v4571_v2  ;;  %3209 = vpow2.f32 %v2239_v39  ;;  %v6156_v30 = vmax.f32 %v3973_v7, 0.0  ;;  %v4609_v2 = vmul.f32 %v1924_v41, %v1924_v41  ;;  %v1329_v37 = vmul.f32 1.442695, %v1231_v59  ;;  %v3204_v39 = vpop.eup %3203 }
 0x1c6   : > { %3113 = vset.pattern.permute.xlu1 %v6130_v45  ;;  %v1232_v13 = vmul.f32 %v1168_v55, %v6155_v58  ;;  %v6158_v55 = vmax.f32 %v6157_v47, 0.0  ;;  %v1172_v58 = vmul.f32 -2.0, %v3202_v42  ;;  %v4617_v51 = vmul.f32 %v1925_v22, %v1925_v22 }
 0x1c7   : > { %1892 = vperm.xlu1 %3113, %v1544_v60   ;;  %v2241_v60 = vmul.f32 1.442695, %v2176_v24  ;;  %v1233_v46 = vmul.f32 %v1170_v48, %v6156_v30  ;;  %v4623_v59 = vmul.f32 %v1927_v11, %v1927_v11  ;;  %v1142_v42 = vmul.f32 -2.0, %v3204_v39 }
 0x1c8   : > { %v4573_v33 = vpop.xlane.xlu1 %1096  ;;  %v1234_v15 = vmul.f32 %v1170_v48, %v6158_v55  ;;  %v1331_v41 = vmul.f32 1.442695, %v1232_v13  ;;  %v1107_v22 = vadd.f32 1e-05, %v4446_v9  ;;  %v1123_v30 = vadd.f32 1e-05, %v4452_v32 }
 0x1c9   : > { %6150 = vst [vmem:[#allocation64_spill] sm:$0xff] %v4573_v33  ;;  %3211 = vpow2.f32 %v2241_v60  ;;  %v1122_v60 = vadd.f32 1e-05, %v4443_v12  ;;  %v1333_v48 = vmul.f32 1.442695, %v1233_v46  ;;  %v1931_v12 = vsub.f32 %v4362_v44, %v4500_v50  ;;  %v6160_v9 = vld [vmem:[#allocation7_spill] sm:$0xff] }
 0x1ca   : > { %3213 = vpow2.f32 %v1261_v49  ;;  %v4621_v49 = vmul.f32 %v1926_v3, %v1926_v3  ;;  %v1124_v32 = vadd.f32 1e-05, %v4454_v23 }
 0x1cb   : > { %3114 = vset.pattern.permute.xlu1 %v6131_v38  ;;  %v4595_v24 = vpop.permute.xlu0 %1573  ;;  %3215 = vpow2.f32 %v1263_v1  ;;  %v3206_v1 = vpop.eup %3205  ;;  %v4646_v55 = vmul.f32 %v1931_v12, %v1931_v12 }
 0x1cc   : > { %1693 = vperm.xlu1 %3114, %v1545_v56   ;;  %6154 = vst [vmem:[#allocation65_spill] sm:$0xff] %v4595_v24  ;;  %v4605_v33 = vpop.permute.xlu1 %1558  ;;  %v4607_v24 = vmul.f32 %v1923_v19, %v1923_v19  ;;  %v1928_v19 = vsub.f32 %v4352_v40, %v4506_v35  ;;  %3217 = vpow2.f32 %v1325_v10  ;;  %v1932_v40 = vsub.f32 %v4362_v44, %v4506_v35  ;;  %v3208_v44 = vpop.eup %3207 }
 0x1cd   : > { %3219 = vpow2.f32 %v1327_v57  ;;  %v1335_v10 = vmul.f32 1.442695, %v1234_v15  ;;  %v1933_v57 = vsub.f32 %v4372_v5, %v4500_v50  ;;  %v1144_v47 = vmul.f32 -2.0, %v3206_v1  ;;  %6162 = vst [vmem:[#allocation6_spill] sm:$0xff] %v4646_v55  ;;  %v6163_v15 = vld [vmem:[#allocation8_spill] sm:$0xff] }
 0x1ce   : > { %3221 = vpow2.f32 %v1329_v37  ;;  %v4634_v11 = vmul.f32 %v1928_v19, %v1928_v19  ;;  %v6161_v37 = vmax.f32 %v6160_v9, 0.0  ;;  %v1174_v12 = vmul.f32 -2.0, %v3208_v44 }
 0x1cf   : > { %v4615_v7 = vpop.permute.xlu0 %1588  ;;  %3223 = vrcp.f32 %v1122_v60  ;;  %v6164_v60 = vmax.f32 %v6163_v15, 0.0  ;;  %v4658_v1 = vmul.f32 %v1933_v57, %v1933_v57  ;;  %v1108_v9 = vadd.f32 1e-05, %v4464_v16 }
 0x1d0   : > { %3115 = vset.pattern.permute.xlu1 %v6130_v45  ;;  %v4632_v13 = vpop.permute.xlu1 %1563  ;;  %3225 = vpow2.f32 %v1331_v41  ;;  %v1236_v39 = vmul.f32 %v1172_v58, %v6161_v37  ;;  %v4654_v41 = vmul.f32 %v1932_v40, %v1932_v40  ;;  %v1935_v40 = vsub.f32 %v4379_v20, %v4500_v50 }
 0x1d1   : > { %1896 = vperm.xlu1 %3115, %v1545_v56   ;;  %v6159_v56 = vmax.f32 %v4002_v8, 0.0  ;;  %v1934_v8 = vsub.f32 %v4372_v5, %v4506_v35  ;;  %3227 = vpow2.f32 %v1333_v48  ;;  %v1205_v19 = vmul.f32 %v1142_v42, %v6164_v60  ;;  %v6166_v48 = vld [vmem:[#allocation9_spill] sm:$0xff] }
 0x1d2   : > { %3229 = vrcp.f32 %v1107_v22  ;;  %6165 = vst [vmem:[#allocation7_spill] sm:$0xff] %v4654_v41  ;;  %v4662_v23 = vpop.eup %3209  ;;  %v1936_v16 = vsub.f32 %v4379_v20, %v4506_v35  ;;  %v1939_v20 = vsub.f32 %v4406_v53, %v4500_v50  ;;  %v1109_v41 = vadd.f32 1e-05, %v4466_v27 }
 0x1d3   : > { %v1235_v3 = vmul.f32 %v1172_v58, %v6159_v56  ;;  %v4639_v46 = vpop.permute.xlu0 %1598  ;;  %3231 = vpow2.f32 %v1335_v10  ;;  %v6167_v56 = vmax.f32 %v6166_v48, 0.0  ;;  %6168 = vst [vmem:[#allocation8_spill] sm:$0xff] %v4662_v23  ;;  %v4664_v22 = vmul.f32 %v1934_v8, %v1934_v8  ;;  %v6173_v48 = vld [vmem:[#allocation12_spill] sm:$0xff] }
 0x1d4   : > { %3233 = vrcp.f32 %v1123_v30  ;;  %v1339_v10 = vmul.f32 1.442695, %v1236_v39  ;;  %v1277_v30 = vmul.f32 1.442695, %v1205_v19  ;;  %v1938_v39 = vsub.f32 %v4394_v54, %v4506_v35 }
 0x1d5   : > { %1900 = vperm.xlu1 %3115, %v4400_v4   ;;  %v1548_v4 = vld [vmem:[%s5840_s3 + $0xf8] sm:$0xff]  ;;  %v1337_v5 = vmul.f32 1.442695, %v1235_v3  ;;  %v1206_v58 = vmul.f32 %v1142_v42, %v6167_v56  ;;  %v6169_v3 = vld [vmem:[#allocation11_spill] sm:$0xff]  ;;  %v4670_v42 = vpop.permute.xlu1 %1568  ;;  %3235 = vrcp.f32 %v1124_v32  ;;  %v6174_v56 = vmax.f32 %v6173_v48, 0.0 }
 0x1d6   : > { %v6170_v37 = vmax.f32 %v6169_v3, 0.0  ;;  %v4672_v57 = vpop.eup %3211  ;;  %v6176_v19 = vmax.f32 %v4029_v0, 0.0  ;;  %v1941_v0 = vsub.f32 %v4414_v14, %v4500_v50  ;;  %v1942_v27 = vsub.f32 %v4414_v14, %v4506_v35 }
 0x1d7   : > { %6171 = vst [vmem:[#allocation9_spill] sm:$0xff] %v4672_v57  ;;  %v4678_v44 = vpop.permute.xlu0 %1608  ;;  %v4680_v8 = vpop.eup %3213  ;;  %3237 = vpow2.f32 %v1337_v5  ;;  %v1279_v60 = vmul.f32 1.442695, %v1206_v58  ;;  %v1208_v3 = vmul.f32 %v1144_v47, %v6174_v56  ;;  %v6178_v58 = vld [vmem:[#allocation10_spill] sm:$0xff] }
 0x1d8   : > { %v1207_v15 = vmul.f32 %v1144_v47, %v6170_v37  ;;  %6172 = vst [vmem:[#allocation11_spill] sm:$0xff] %v4680_v8  ;;  %v4686_v37 = vpop.eup %3215  ;;  %v1237_v32 = vmul.f32 %v1174_v12, %v6176_v19  ;;  %3239 = vrcp.f32 %v1108_v9  ;;  %v6179_v47 = vmax.f32 %v6178_v58, 0.0 }
 0x1d9   : > { %3117 = vset.pattern.permute.xlu1 %v6131_v38  ;;  %v1937_v38 = vsub.f32 %v4394_v54, %v4500_v50  ;;  %6175 = vst [vmem:[#allocation12_spill] sm:$0xff] %v4686_v37  ;;  %v4693_v55 = vpop.eup %3217  ;;  %v1940_v54 = vsub.f32 %v4406_v53, %v4506_v35  ;;  %3241 = vpow2.f32 %v1339_v10  ;;  %v1125_v9 = vadd.f32 1e-05, %v4473_v63 }
 0x1da   : > { %1708 = vperm.xlu1 %3117, %v1548_v4   ;;  %6177 = vst [vmem:[#allocation66_spill] sm:$0xff] %v4693_v55  ;;  %v1281_v5 = vmul.f32 1.442695, %v1207_v15  ;;  %v1238_v48 = vmul.f32 %v1174_v12, %v6179_v47  ;;  %v4700_v56 = vpop.eup %3219  ;;  %3243 = vpow2.f32 %v1277_v30  ;;  %v4709_v10 = vmul.f32 %v1935_v40, %v1935_v40  ;;  %v4713_v12 = vpop.permute.xlu1 %1578 }
 0x1db   : > { %6180 = vst [vmem:[#allocation10_spill] sm:$0xff] %v4700_v56  ;;  %v4707_v53 = vpop.eup %3221  ;;  %v4711_v15 = vmul.f32 %v1936_v16, %v1936_v16  ;;  %3245 = vpow2.f32 %v1279_v60  ;;  %v4715_v58 = vmul.f32 %v1937_v38, %v1937_v38  ;;  %v4717_v47 = vmul.f32 %v1938_v39, %v1938_v39  ;;  %v4719_v30 = vpop.permute.xlu0 %1613 }
 0x1dc   : > { %6181 = vst [vmem:[#allocation67_spill] sm:$0xff] %v4707_v53  ;;  %6182 = vst [vmem:[#allocation68_spill] sm:$0xff] %v4709_v10  ;;  %v3224_v19 = vpop.eup %3223  ;;  %v1341_v14 = vmul.f32 1.442695, %v1237_v32  ;;  %3247 = vrcp.f32 %v1109_v41  ;;  %v4725_v40 = vmul.f32 %v1940_v54, %v1940_v54  ;;  %v1343_v16 = vmul.f32 1.442695, %v1238_v48 }
 0x1dd   : > { %6183 = vst [vmem:[#allocation69_spill] sm:$0xff] %v4711_v15  ;;  %v4721_v63 = vpop.eup %3225  ;;  %3249 = vpow2.f32 %v1281_v5  ;;  %v4731_v38 = vmul.f32 %v1942_v27, %v1942_v27  ;;  %v1126_v39 = vadd.f32 1e-05, %v4475_v43  ;;  %v1176_v32 = vmul.f32 -2.0, %v3224_v19 }
 0x1de   : > { %3118 = vset.pattern.permute.xlu1 %v6130_v45  ;;  %v1283_v45 = vmul.f32 1.442695, %v1208_v3  ;;  %6184 = vst [vmem:[#allocation70_spill] sm:$0xff] %v4721_v63  ;;  %6186 = vst [vmem:[#allocation72_spill] sm:$0xff] %v4725_v40  ;;  %v4727_v60 = vpop.eup %3227  ;;  %v4729_v3 = vmul.f32 %v1941_v0, %v1941_v0  ;;  %3251 = vrcp.f32 %v1125_v9  ;;  %v1110_v15 = vadd.f32 1e-05, %v4479_v18 }
 0x1df   : > { %1908 = vperm.xlu1 %3118, %v1548_v4   ;;  %v4723_v4 = vmul.f32 %v1939_v20, %v1939_v20  ;;  %6187 = vst [vmem:[#allocation73_spill] sm:$0xff] %v4727_v60  ;;  %6189 = vst [vmem:[#allocation75_spill] sm:$0xff] %v4731_v38  ;;  %v3230_v41 = vpop.eup %3229  ;;  %v4737_v20 = vadd.f32 %v4672_v57, %v4662_v23  ;;  %v1111_v5 = vadd.f32 1e-05, %v4481_v62  ;;  %v1127_v18 = vadd.f32 1e-05, %v4495_v36 }
 0x1e0   : > { %6188 = vst [vmem:[#allocation74_spill] sm:$0xff] %v4729_v3  ;;  %3253 = vpow2.f32 %v1283_v45  ;;  %v4739_v54 = vpop.eup %3231  ;;  %v4744_v48 = vadd.f32 %v4686_v37, %v4680_v8  ;;  %v4748_v43 = vadd.f32 %v4700_v56, %v4693_v55  ;;  %v1128_v27 = vadd.f32 1e-05, %v4497_v26  ;;  %v4754_v45 = vpop.permute.xlu1 %1583  ;;  %v6247_v3 = vld [vmem:[#allocation30_spill] sm:$0xff] }
 0x1e1   : > { %6185 = vst [vmem:[#allocation71_spill] sm:$0xff] %v4723_v4  ;;  %6190 = vst [vmem:[#allocation76_spill] sm:$0xff] %v4739_v54  ;;  %3255 = vpow2.f32 %v1341_v14  ;;  %v3234_v0 = vpop.eup %3233  ;;  %v1721_v9 = vsub.f32 %v4605_v33, %v4503_v17  ;;  %v1146_v62 = vmul.f32 -2.0, %v3230_v41  ;;  %v1722_v19 = vsub.f32 %v4605_v33, %v4509_v6  ;;  %v4758_v14 = vpop.permute.xlu0 %1623 }
 0x1e2   : > { %6191 = vst [vmem:[#allocation77_spill] sm:$0xff] %v4748_v43  ;;  %3257 = vpow2.f32 %v1343_v16  ;;  %6192 = vst [vmem:[#allocation78_spill] sm:$0xff] %v4758_v14  ;;  %v4762_v56 = vadd.f32 %v4721_v63, %v4707_v53  ;;  %v3236_v16 = vpop.eup %3235  ;;  %v6194_v36 = vmax.f32 %v4049_v52, 0.0  ;;  %v1112_v55 = vadd.f32 1e-05, %v4516_v34  ;;  %v6197_v53 = vld [vmem:[#allocation13_spill] sm:$0xff] }
 0x1e3   : > { %3259 = vrcp.f32 %v1126_v39  ;;  %v1113_v57 = vadd.f32 1e-05, %v4519_v31  ;;  %v1178_v39 = vmul.f32 -2.0, %v3234_v0  ;;  %v1129_v33 = vadd.f32 1e-05, %v4536_v25  ;;  %v6201_v31 = vld [vmem:[#allocation14_spill] sm:$0xff] }
 0x1e4   : > { %6193 = vst [vmem:[#allocation79_spill] sm:$0xff] %v4762_v56  ;;  %v1239_v26 = vmul.f32 %v1176_v32, %v6194_v36  ;;  %3261 = vrcp.f32 %v1110_v15  ;;  %v4768_v41 = vpop.eup %3237  ;;  %v4773_v23 = vadd.f32 %v4739_v54, %v4727_v60  ;;  %v6198_v37 = vmax.f32 %v6197_v53, 0.0  ;;  %v6199_v15 = vld [vmem:[#allocation59_spill] sm:$0xff]  ;;  %v4788_v53 = vpop.permute.xlu1 %1593  ;;  %v6215_v14 = vld [vmem:[#allocation20_spill] sm:$0xff] }
 0x1e5   : > { %6195 = vst [vmem:[#allocation80_spill] sm:$0xff] %v4768_v41  ;;  %3263 = vrcp.f32 %v1111_v5  ;;  %v3240_v63 = vpop.eup %3239  ;;  %v1130_v36 = vadd.f32 1e-05, %v6199_v15  ;;  %v1985_v34 = vmul.f32 %v1721_v9, %v1721_v9  ;;  %v6202_v56 = vmax.f32 %v6201_v31, 0.0  ;;  %v6204_v60 = vld [vmem:[#allocation15_spill] sm:$0xff] }
 0x1e6   : > { %6196 = vst [vmem:[#allocation81_spill] sm:$0xff] %v4773_v23  ;;  %v1240_v52 = vmul.f32 %v1176_v32, %v6198_v37  ;;  %3265 = vrcp.f32 %v1127_v18  ;;  %v4778_v8 = vpop.eup %3241  ;;  %v1180_v5 = vmul.f32 -2.0, %v3236_v16  ;;  %v1986_v25 = vmul.f32 %v1722_v19, %v1722_v19  ;;  %v6207_v18 = vld [vmem:[#allocation17_spill] sm:$0xff]  ;;  %v4796_v19 = vpop.permute.xlu0 %1638 }
 0x1e7   : > { %6200 = vst [vmem:[#allocation13_spill] sm:$0xff] %v4778_v8  ;;  %v1209_v0 = vmul.f32 %v1146_v62, %v6202_v56  ;;  %3267 = vrcp.f32 %v1128_v27  ;;  %v4782_v43 = vpop.eup %3243  ;;  %v1345_v54 = vmul.f32 1.442695, %v1239_v26  ;;  %v6205_v23 = vmax.f32 %v6204_v60, 0.0  ;;  %6209 = vst [vmem:[#allocation15_spill] sm:$0xff] %v4796_v19 }
 0x1e8   : > { %6203 = vst [vmem:[#allocation59_spill] sm:$0xff] %v4782_v43  ;;  %3269 = vrcp.f32 %v1112_v55  ;;  %v1725_v37 = vsub.f32 %v4670_v42, %v4503_v17  ;;  %v4790_v32 = vpop.eup %3245  ;;  %v6208_v9 = vmax.f32 %v6207_v18, 0.0  ;;  %v1148_v16 = vmul.f32 -2.0, %v3240_v63  ;;  %v6210_v55 = vld [vmem:[#allocation16_spill] sm:$0xff]  ;;  %v6213_v18 = vld [vmem:[#allocation18_spill] sm:$0xff] }
 0x1e9   : > { %v1210_v40 = vmul.f32 %v1146_v62, %v6205_v23  ;;  %6206 = vst [vmem:[#allocation14_spill] sm:$0xff] %v4790_v32  ;;  %3271 = vrcp.f32 %v1113_v57  ;;  %v1726_v27 = vsub.f32 %v4670_v42, %v4509_v6  ;;  %v3248_v60 = vpop.eup %3247  ;;  %v1347_v23 = vmul.f32 1.442695, %v1240_v52 }
 0x1ea   : > { %v1241_v56 = vmul.f32 %v1178_v39, %v6208_v9  ;;  %v6211_v62 = vmax.f32 %v6210_v55, 0.0  ;;  %3273 = vrcp.f32 %v1129_v33  ;;  %v2113_v15 = vadd.f32 %v4589_v21, %v1985_v34  ;;  %v4801_v31 = vpop.eup %3249  ;;  %v6218_v21 = vld [vmem:[#allocation21_spill] sm:$0xff] }
 0x1eb   : > { %6212 = vst [vmem:[#allocation17_spill] sm:$0xff] %v4801_v31  ;;  %v1285_v4 = vmul.f32 1.442695, %v1209_v0  ;;  %v6214_v9 = vmax.f32 %v6213_v18, 0.0  ;;  %3275 = vrcp.f32 %v1130_v36  ;;  %v2114_v57 = vadd.f32 %v4591_v29, %v1986_v25  ;;  %v3252_v42 = vpop.eup %3251  ;;  %v4814_v25 = vpop.permute.xlu1 %1603 }
 0x1ec   : > { %v1242_v26 = vmul.f32 %v1178_v39, %v6211_v62  ;;  %3277 = vpow2.f32 %v1345_v54  ;;  %v1287_v19 = vmul.f32 1.442695, %v1210_v40  ;;  %v6216_v52 = vmax.f32 %v6215_v14, 0.0  ;;  %6221 = vst [vmem:[#allocation20_spill] sm:$0xff] %v4814_v25 }
 0x1ed   : > { %v1243_v63 = vmul.f32 %v1180_v5, %v6214_v9  ;;  %v1989_v55 = vmul.f32 %v1725_v37, %v1725_v37  ;;  %v4808_v39 = vpop.eup %3253  ;;  %v1349_v33 = vmul.f32 1.442695, %v1241_v56  ;;  %v6219_v34 = vmax.f32 %v6218_v21, 0.0  ;;  %v4822_v56 = vpop.permute.xlu0 %1643 }
 0x1ee   : > { %v1244_v10 = vmul.f32 %v1180_v5, %v6216_v52  ;;  %6217 = vst [vmem:[#allocation16_spill] sm:$0xff] %v4808_v39  ;;  %v1150_v0 = vmul.f32 -2.0, %v3248_v60  ;;  %v1990_v38 = vmul.f32 %v1726_v27, %v1726_v27  ;;  %v4812_v18 = vpop.eup %3255  ;;  %3279 = vpow2.f32 %v1347_v23  ;;  %6224 = vst [vmem:[#allocation83_spill] sm:$0xff] %v4822_v56  ;;  %v6225_v23 = vld [vmem:[#allocation19_spill] sm:$0xff] }
 0x1ef   : > { %v1211_v62 = vmul.f32 %v1148_v16, %v6219_v34  ;;  %6220 = vst [vmem:[#allocation18_spill] sm:$0xff] %v4812_v18  ;;  %v1351_v36 = vmul.f32 1.442695, %v1242_v26  ;;  %v2177_v29 = vmul.f32 -200000.0, %v2113_v15  ;;  %v4818_v40 = vadd.f32 %v4778_v8, %v4768_v41  ;;  %v4820_v54 = vpop.eup %3257  ;;  %v6227_v34 = vld [vmem:[#allocation22_spill] sm:$0xff] }
 0x1f0   : > { %6223 = vst [vmem:[#allocation82_spill] sm:$0xff] %v4820_v54  ;;  %3281 = vpow2.f32 %v1285_v4  ;;  %v1353_v14 = vmul.f32 1.442695, %v1243_v63  ;;  %v1182_v5 = vmul.f32 -2.0, %v3252_v42  ;;  %v2178_v37 = vmul.f32 -200000.0, %v2114_v57  ;;  %v3260_v27 = vpop.eup %3259  ;;  %v6229_v57 = vld [vmem:[#allocation23_spill] sm:$0xff] }
 0x1f1   : > { %6222 = vst [vmem:[#allocation21_spill] sm:$0xff] %v4818_v40  ;;  %3283 = vpow2.f32 %v1287_v19  ;;  %v1355_v60 = vmul.f32 1.442695, %v1244_v10  ;;  %v6226_v26 = vmax.f32 %v6225_v23, 0.0  ;;  %v2117_v9 = vadd.f32 %v4617_v51, %v1989_v55  ;;  %v3262_v52 = vpop.eup %3261  ;;  %v6231_v19 = vld [vmem:[#allocation62_spill] sm:$0xff]  ;;  %v6232_v51 = vld [vmem:[#allocation25_spill] sm:$0xff] }
 0x1f2   : > { %3285 = vpow2.f32 %v1349_v33  ;;  %v1289_v21 = vmul.f32 1.442695, %v1211_v62  ;;  %v6228_v8 = vmax.f32 %v6227_v34, 0.0  ;;  %v2118_v4 = vadd.f32 %v4621_v49, %v1990_v38  ;;  %v3264_v63 = vpop.eup %3263 }
 0x1f3   : > { %v1212_v15 = vmul.f32 %v1148_v16, %v6226_v26  ;;  %3287 = vpow2.f32 %v1351_v36  ;;  %v6230_v42 = vmax.f32 %v6229_v57, 0.0  ;;  %v4833_v10 = vadd.f32 1e-05, %v6231_v19  ;;  %v3266_v16 = vpop.eup %3265  ;;  %v4840_v36 = vpop.permute.xlu1 %1618 }
 0x1f4   : > { %v1213_v41 = vmul.f32 %v1150_v0, %v6228_v8  ;;  %v2243_v23 = vmul.f32 1.442695, %v2177_v29  ;;  %3289 = vpow2.f32 %v1353_v14  ;;  %v6233_v55 = vmax.f32 %v6232_v51, 0.0  ;;  %v3268_v34 = vpop.eup %3267  ;;  %6234 = vst [vmem:[#allocation19_spill] sm:$0xff] %v4840_v36  ;;  %v4842_v14 = vpop.permute.xlu0 %1658 }
 0x1f5   : > { %v1214_v40 = vmul.f32 %v1150_v0, %v6230_v42  ;;  %v1184_v62 = vmul.f32 -2.0, %v3260_v27  ;;  %v2245_v26 = vmul.f32 1.442695, %v2178_v37  ;;  %3291 = vpow2.f32 %v1355_v60  ;;  %v3270_v0 = vpop.eup %3269  ;;  %6235 = vst [vmem:[#allocation22_spill] sm:$0xff] %v4842_v14  ;;  %v6236_v27 = vld [vmem:[#allocation24_spill] sm:$0xff] }
 0x1f6   : > { %v1245_v33 = vmul.f32 %v1182_v5, %v6233_v55  ;;  %v1291_v8 = vmul.f32 1.442695, %v1212_v15  ;;  %v4838_v49 = vadd.f32 1e-05, %v4555_v28  ;;  %v2181_v38 = vmul.f32 -200000.0, %v2117_v9  ;;  %v3272_v19 = vpop.eup %3271  ;;  %v6238_v9 = vld [vmem:[#allocation26_spill] sm:$0xff] }
 0x1f7   : > { %3293 = vpow2.f32 %v1289_v21  ;;  %v1293_v57 = vmul.f32 1.442695, %v1213_v41  ;;  %v1152_v29 = vmul.f32 -2.0, %v3262_v52  ;;  %v2182_v42 = vmul.f32 -200000.0, %v2118_v4  ;;  %v4846_v15 = vpop.eup %3273  ;;  %v6240_v52 = vld [vmem:[#allocation27_spill] sm:$0xff]  ;;  %v6245_v14 = vld [vmem:[#allocation28_spill] sm:$0xff] }
 0x1f8   : > { %v1295_v51 = vmul.f32 1.442695, %v1214_v40  ;;  %v6237_v37 = vmax.f32 %v6236_v27, 0.0  ;;  %v1154_v60 = vmul.f32 -2.0, %v3264_v63  ;;  %3295 = vpow2.f32 %v2243_v23  ;;  %v4853_v41 = vpop.eup %3275  ;;  %v6243_v23 = vld [vmem:[#allocation29_spill] sm:$0xff] }
 0x1f9   : > { %v1357_v28 = vmul.f32 1.442695, %v1245_v33  ;;  %v6239_v56 = vmax.f32 %v6238_v9, 0.0  ;;  %v4851_v21 = vadd.f32 1e-05, %v4559_v61  ;;  %3297 = vpow2.f32 %v2245_v26  ;;  %v4857_v63 = vpop.eup %3277 }
 0x1fa   : > { %v1246_v55 = vmul.f32 %v1182_v5, %v6237_v37  ;;  %3299 = vpow2.f32 %v1291_v8  ;;  %v6241_v40 = vmax.f32 %v6240_v52, 0.0  ;;  %v1186_v27 = vmul.f32 -2.0, %v3266_v16  ;;  %6242 = vst [vmem:[#allocation23_spill] sm:$0xff] %v4857_v63  ;;  %v4865_v52 = vpop.permute.xlu1 %1832 }
 0x1fb   : > { %v1247_v36 = vmul.f32 %v1184_v62, %v6239_v56  ;;  %v2251_v5 = vmul.f32 1.442695, %v2181_v38  ;;  %3301 = vpow2.f32 %v1293_v57  ;;  %v6244_v33 = vmax.f32 %v6243_v23, 0.0  ;;  %v4867_v16 = vpop.eup %3279  ;;  %v6250_v38 = vld [vmem:[#allocation31_spill] sm:$0xff] }
 0x1fc   : > { %v1248_v4 = vmul.f32 %v1184_v62, %v6241_v40  ;;  %v1188_v9 = vmul.f32 -2.0, %v3268_v34  ;;  %v2253_v56 = vmul.f32 1.442695, %v2182_v42  ;;  %3303 = vpow2.f32 %v1295_v51  ;;  %6249 = vst [vmem:[#allocation62_spill] sm:$0xff] %v4867_v16  ;;  %v4871_v34 = vpop.permute.xlu0 %1663 }
 0x1fd   : > { %v1215_v37 = vmul.f32 %v1152_v29, %v6244_v33  ;;  %v1359_v61 = vmul.f32 1.442695, %v1246_v55  ;;  %v6246_v26 = vmax.f32 %v6245_v14, 0.0  ;;  %v6248_v8 = vmax.f32 %v6247_v3, 0.0  ;;  %6252 = vst [vmem:[#allocation25_spill] sm:$0xff] %v4871_v34  ;;  %v4873_v42 = vpop.eup %3281  ;;  %v6254_v14 = vld [vmem:[#allocation33_spill] sm:$0xff] }
 0x1fe   : > { %3305 = vpow2.f32 %v1357_v28  ;;  %v1361_v62 = vmul.f32 1.442695, %v1247_v36  ;;  %v6251_v57 = vmax.f32 %v6250_v38, 0.0  ;;  %v1156_v23 = vmul.f32 -2.0, %v3270_v0  ;;  %6253 = vst [vmem:[#allocation24_spill] sm:$0xff] %v4873_v42  ;;  %v6256_v3 = vld [vmem:[#allocation32_spill] sm:$0xff] }
 0x1ff   : > { %v1216_v25 = vmul.f32 %v1152_v29, %v6246_v26  ;;  %v1217_v35 = vmul.f32 %v1154_v60, %v6248_v8  ;;  %v1363_v51 = vmul.f32 1.442695, %v1248_v4  ;;  %v6255_v29 = vmax.f32 %v6254_v14, 0.0  ;;  %v4879_v8 = vpop.eup %3283  ;;  %v6259_v36 = vld [vmem:[#allocation34_spill] sm:$0xff] }
 0x200   : > { %v1218_v40 = vmul.f32 %v1154_v60, %v6251_v57  ;;  %v6257_v33 = vmax.f32 %v6256_v3, 0.0  ;;  %3307 = vpow2.f32 %v2251_v5  ;;  %6258 = vst [vmem:[#allocation26_spill] sm:$0xff] %v4879_v8  ;;  %v1297_v28 = vmul.f32 1.442695, %v1215_v37  ;;  %v6261_v60 = vld [vmem:[#allocation63_spill] sm:$0xff]  ;;  %v4886_v57 = vpop.eup %3285  ;;  %v6266_v37 = vld [vmem:[#allocation37_spill] sm:$0xff] }
 0x201   : > { %v1249_v55 = vmul.f32 %v1186_v27, %v6255_v29  ;;  %v6260_v16 = vmax.f32 %v6259_v36, 0.0  ;;  %v4884_v0 = vadd.f32 1e-05, %v6261_v60  ;;  %3309 = vpow2.f32 %v2253_v56  ;;  %6262 = vst [vmem:[#allocation27_spill] sm:$0xff] %v4886_v57  ;;  %v6263_v29 = vld [vmem:[#allocation36_spill] sm:$0xff] }
 0x202   : > { %v1250_v26 = vmul.f32 %v1186_v27, %v6257_v33  ;;  %3311 = vpow2.f32 %v1359_v61  ;;  %v1299_v4 = vmul.f32 1.442695, %v1216_v25  ;;  %v1301_v14 = vmul.f32 1.442695, %v1217_v35  ;;  %v4890_v27 = vpop.eup %3287 }
 0x203   : > { %v1251_v38 = vmul.f32 %v1188_v9, %v6260_v16  ;;  %v6264_v63 = vmax.f32 %v6263_v29, 0.0  ;;  %6265 = vst [vmem:[#allocation29_spill] sm:$0xff] %v4890_v27  ;;  %3313 = vpow2.f32 %v1361_v62  ;;  %v1303_v5 = vmul.f32 1.442695, %v1218_v40  ;;  %v6268_v16 = vld [vmem:[#allocation35_spill] sm:$0xff]  ;;  %1390 = vadd.xlane.f32.xlu1 %v4744_v48  ;;  %v4897_v56 = vpop.eup %3289 }
 0x204   : > { %v6267_v33 = vmax.f32 %v6266_v37, 0.0  ;;  %v6269_v34 = vmax.f32 %v6268_v16, 0.0  ;;  %6270 = vst [vmem:[#allocation28_spill] sm:$0xff] %v4897_v56  ;;  %3315 = vpow2.f32 %v1363_v51  ;;  %v1365_v25 = vmul.f32 1.442695, %v1249_v55  ;;  %v4903_v61 = vpop.eup %3291  ;;  %v6273_v55 = vld [vmem:[#allocation65_spill] sm:$0xff] }
 0x205   : > { %v1252_v3 = vmul.f32 %v1188_v9, %v6264_v63  ;;  %v1367_v35 = vmul.f32 1.442695, %v1250_v26  ;;  %v1723_v63 = vsub.f32 %v4632_v13, %v4503_v17  ;;  %v4901_v9 = vpop.permute.xlu1 %1836  ;;  %6271 = vst [vmem:[#allocation30_spill] sm:$0xff] %v4903_v61  ;;  %3317 = vpow2.f32 %v1297_v28  ;;  %v4909_v48 = vpop.eup %3293  ;;  %v6279_v61 = vld [vmem:[#allocation39_spill] sm:$0xff] }
 0x206   : > { %v1219_v36 = vmul.f32 %v1156_v23, %v6267_v33  ;;  %v1220_v60 = vmul.f32 %v1156_v23, %v6269_v34  ;;  %v1369_v62 = vmul.f32 1.442695, %v1251_v38  ;;  %v1158_v40 = vmul.f32 -2.0, %v3272_v19  ;;  %v4907_v34 = vpop.permute.xlu0 %1678  ;;  %v4915_v37 = vpop.eup %3295 }
 0x207   : > { %v1724_v23 = vsub.f32 %v4632_v13, %v4509_v6  ;;  %6272 = vst [vmem:[#allocation31_spill] sm:$0xff] %v4907_v34  ;;  %3319 = vpow2.f32 %v1299_v4  ;;  %v1371_v51 = vmul.f32 1.442695, %v1252_v3  ;;  %v1727_v26 = vsub.f32 %v6273_v55, %v4503_v17  ;;  %6274 = vst [vmem:[#allocation33_spill] sm:$0xff] %v4915_v37  ;;  %2368 = vadd.xlane.f32.xlu1 %v4737_v20  ;;  %v4920_v38 = vpop.eup %3297 }
 0x208   : > { %v1728_v29 = vsub.f32 %v6273_v55, %v4509_v6  ;;  %3321 = vpow2.f32 %v1301_v14  ;;  %v1305_v28 = vmul.f32 1.442695, %v1219_v36  ;;  %v1307_v19 = vmul.f32 1.442695, %v1220_v60  ;;  %6275 = vst [vmem:[#allocation32_spill] sm:$0xff] %v4920_v38  ;;  %v4928_v55 = vpop.eup %3299  ;;  %v6277_v14 = vld [vmem:[#allocation38_spill] sm:$0xff] }
 0x209   : > { %v1733_v13 = vsub.f32 %v4615_v7, %v4503_v17  ;;  %3323 = vpow2.f32 %v1303_v5  ;;  %v1190_v4 = vmul.f32 -2.0, %v4846_v15  ;;  %v4924_v3 = vmul.f32 -2.0, %v4853_v41  ;;  %v4926_v16 = vpop.permute.xlu1 %1628  ;;  %6276 = vst [vmem:[#allocation34_spill] sm:$0xff] %v4928_v55  ;;  %v4934_v57 = vpop.eup %3301 }
 0x20a   : > { %v1987_v33 = vmul.f32 %v1723_v63, %v1723_v63  ;;  %3325 = vpow2.f32 %v1365_v25  ;;  %v6278_v36 = vmax.f32 %v6277_v14, 0.0  ;;  %v6280_v56 = vmax.f32 %v6279_v61, 0.0  ;;  %6281 = vst [vmem:[#allocation63_spill] sm:$0xff] %v4934_v57  ;;  %v4939_v63 = vpop.eup %3303  ;;  %v4945_v61 = vpop.permute.xlu0 %1683 }
 0x20b   : > { %v1988_v27 = vmul.f32 %v1724_v23, %v1724_v23  ;;  %3327 = vrcp.f32 %v4833_v10  ;;  %v1991_v15 = vmul.f32 %v1727_v26, %v1727_v26  ;;  %v1992_v41 = vmul.f32 %v1728_v29, %v1728_v29  ;;  %6282 = vst [vmem:[#allocation36_spill] sm:$0xff] %v4939_v63  ;;  %6283 = vst [vmem:[#allocation37_spill] sm:$0xff] %v4945_v61  ;;  %v6285_v10 = vld [vmem:[#allocation41_spill] sm:$0xff] }
 0x20c   : > { %v1221_v60 = vmul.f32 %v1158_v40, %v6278_v36  ;;  %v1222_v20 = vmul.f32 %v1158_v40, %v6280_v56  ;;  %v1734_v5 = vsub.f32 %v4615_v7, %v4509_v6  ;;  %3329 = vpow2.f32 %v1367_v35  ;;  %v4947_v40 = vpop.eup %3305  ;;  %v6288_v36 = vld [vmem:[#allocation40_spill] sm:$0xff] }
 0x20d   : > { %v1997_v25 = vmul.f32 %v1733_v13, %v1733_v13  ;;  %v1737_v14 = vsub.f32 %v4639_v46, %v4503_v17  ;;  %v2370_v56 = vadd.f32 %v4920_v38, %v4915_v37  ;;  %6284 = vst [vmem:[#allocation35_spill] sm:$0xff] %v4947_v40  ;;  %3331 = vpow2.f32 %v1369_v62  ;;  %v4954_v29 = vpop.eup %3307  ;;  %v6324_v40 = vld [vmem:[#allocation48_spill] sm:$0xff] }
 0x20e   : > { %v6286_v23 = vmax.f32 %v6285_v10, 0.0  ;;  %v2115_v7 = vadd.f32 %v4607_v24, %v1987_v33  ;;  %v1738_v35 = vsub.f32 %v4639_v46, %v4509_v6  ;;  %6287 = vst [vmem:[#allocation65_spill] sm:$0xff] %v4954_v29  ;;  %v1309_v13 = vmul.f32 1.442695, %v1221_v60  ;;  %v4960_v62 = vpop.eup %3309  ;;  %v4964_v46 = vpop.permute.xlu1 %1844 }
 0x20f   : > { %v6289_v34 = vmax.f32 %v6288_v36, 0.0  ;;  %3333 = vrcp.f32 %v4838_v49  ;;  %v2116_v38 = vadd.f32 %v4609_v2, %v1988_v27  ;;  %2371 = vadd.xlane.f32.xlu0 %v2370_v56  ;;  %6290 = vst [vmem:[#allocation38_spill] sm:$0xff] %v4960_v62  ;;  %v2119_v10 = vadd.f32 %v4623_v59, %v1991_v15  ;;  %v6296_v36 = vld [vmem:[#allocation42_spill] sm:$0xff] }
 0x210   : > { %v1253_v26 = vmul.f32 %v1190_v4, %v6286_v23  ;;  %3335 = vpow2.f32 %v1371_v51  ;;  %v2120_v24 = vadd.f32 %v4634_v11, %v1992_v41  ;;  %v1998_v33 = vmul.f32 %v1734_v5, %v1734_v5  ;;  %v4966_v23 = vpop.eup %3311 }
 0x211   : > { %v1254_v55 = vmul.f32 %v1190_v4, %v6289_v34  ;;  %6291 = vst [vmem:[#allocation39_spill] sm:$0xff] %v4966_v23  ;;  %v1311_v60 = vmul.f32 1.442695, %v1222_v20  ;;  %3337 = vrcp.f32 %v4851_v21  ;;  %v2125_v49 = vadd.f32 %v4658_v1, %v1997_v25  ;;  %v4970_v2 = vpop.eup %3313  ;;  %v4976_v20 = vpop.permute.xlu0 %1698 }
 0x212   : > { %v2001_v34 = vmul.f32 %v1737_v14, %v1737_v14  ;;  %6292 = vst [vmem:[#allocation41_spill] sm:$0xff] %v4970_v2  ;;  %3339 = vpow2.f32 %v1305_v28  ;;  %v1373_v27 = vmul.f32 1.442695, %v1253_v26  ;;  %v2179_v51 = vmul.f32 -200000.0, %v2115_v7  ;;  %v4972_v59 = vpop.eup %3315  ;;  %6294 = vst [vmem:[#allocation84_spill] sm:$0xff] %v4976_v20  ;;  %v6295_v14 = vld [vmem:[#allocation64_spill] sm:$0xff] }
 0x213   : > { %v2002_v4 = vmul.f32 %v1738_v35, %v1738_v35  ;;  %6293 = vst [vmem:[#allocation40_spill] sm:$0xff] %v4972_v59  ;;  %3341 = vpow2.f32 %v1307_v19  ;;  %v1375_v11 = vmul.f32 1.442695, %v1254_v55  ;;  %v2180_v15 = vmul.f32 -200000.0, %v2116_v38  ;;  %v4978_v21 = vpop.eup %3317  ;;  %v4988_v35 = vpop.permute.xlu1 %1633 }
 0x214   : > { %v2376_v41 = vadd.f32 %v4960_v62, %v4954_v29  ;;  %3343 = vpow2.f32 %v1309_v13  ;;  %v2183_v1 = vmul.f32 -200000.0, %v2119_v10  ;;  %v2184_v5 = vmul.f32 -200000.0, %v2120_v24  ;;  %v4981_v25 = vpop.eup %3319 }
 0x215   : > { %v2126_v28 = vadd.f32 %v4664_v22, %v1998_v33  ;;  %3345 = vpow2.f32 %v1311_v60  ;;  %v1131_v56 = vadd.f32 1e-05, %v6295_v14  ;;  %v2189_v19 = vmul.f32 -200000.0, %v2125_v49  ;;  %v4985_v55 = vpop.eup %3321 }
 0x216   : > { %v2129_v38 = vadd.f32 %v4715_v58, %v2001_v34  ;;  %2377 = vadd.xlane.f32.xlu0 %v2376_v41  ;;  %3347 = vpow2.f32 %v1373_v27  ;;  %v2247_v26 = vmul.f32 1.442695, %v2179_v51  ;;  %v2130_v7 = vadd.f32 %v4717_v47, %v2002_v4  ;;  %v4994_v13 = vpop.eup %3323  ;;  %v5006_v41 = vpop.permute.xlu0 %1703 }
 0x217   : > { %v4992_v22 = vadd.f32 %v4790_v32, %v4782_v43  ;;  %3349 = vpow2.f32 %v1375_v11  ;;  %v6297_v10 = vmax.f32 %v6296_v36, 0.0  ;;  %v2249_v24 = vmul.f32 1.442695, %v2180_v15  ;;  %v5001_v60 = vpop.eup %3325  ;;  %6299 = vst [vmem:[#allocation42_spill] sm:$0xff] %v5006_v41 }
 0x218   : > { %v1404_v33 = vadd.f32 %v4808_v39, %v4801_v31  ;;  %6298 = vst [vmem:[#allocation64_spill] sm:$0xff] %v5001_v60  ;;  %3351 = vrcp.f32 %v4884_v0  ;;  %v2255_v47 = vmul.f32 1.442695, %v2183_v1  ;;  %v2257_v49 = vmul.f32 1.442695, %v2184_v5  ;;  %v3328_v27 = vpop.eup %3327 }
 0x219   : > { %v1255_v58 = vmul.f32 %v4924_v3, %v6297_v10  ;;  %v2190_v34 = vmul.f32 -200000.0, %v2126_v28  ;;  %3353 = vrcp.f32 %v1131_v56  ;;  %v2267_v51 = vmul.f32 1.442695, %v2189_v19  ;;  %v5008_v15 = vpop.eup %3329 }
 0x21a   : > { %v2193_v4 = vmul.f32 -200000.0, %v2129_v38  ;;  %v1731_v11 = vsub.f32 %v4754_v45, %v4503_v17  ;;  %1405 = vadd.xlane.f32.xlu0 %v1404_v33  ;;  %6300 = vst [vmem:[#allocation85_spill] sm:$0xff] %v5008_v15  ;;  %3355 = vpow2.f32 %v2247_v26  ;;  %v2194_v14 = vmul.f32 -200000.0, %v2130_v7  ;;  %v5014_v5 = vpop.eup %3331  ;;  %v6303_v26 = vld [vmem:[#allocation43_spill] sm:$0xff] }
 0x21b   : > { %v1729_v0 = vsub.f32 %v4713_v12, %v4503_v17  ;;  %v1732_v1 = vsub.f32 %v4754_v45, %v4509_v6  ;;  %6301 = vst [vmem:[#allocation86_spill] sm:$0xff] %v5014_v5  ;;  %3357 = vpow2.f32 %v2249_v24  ;;  %v1730_v28 = vsub.f32 %v4713_v12, %v4509_v6  ;;  %v5029_v24 = vpop.permute.xlu1 %1848 }
 0x21c   : > { %v1741_v56 = vsub.f32 %v4678_v44, %v4503_v17  ;;  %v5022_v19 = vadd.f32 %v4820_v54, %v4812_v18  ;;  %v3334_v38 = vpop.eup %3333  ;;  %v6304_v7 = vmax.f32 %v6303_v26, 0.0  ;;  %v1160_v45 = vmul.f32 -2.0, %v3328_v27 }
 0x21d   : > { %3359 = vpow2.f32 %v2255_v47  ;;  %v2269_v10 = vmul.f32 1.442695, %v2190_v34  ;;  %v5031_v33 = vpop.eup %3335  ;;  %v5033_v12 = vmul.f32 1.442695, %v1255_v58  ;;  %v2275_v39 = vmul.f32 1.442695, %v2193_v4 }
 0x21e   : > { %6302 = vst [vmem:[#allocation87_spill] sm:$0xff] %v5022_v19  ;;  %v5027_v36 = vmul.f32 %v4924_v3, %v6304_v7  ;;  %6306 = vst [vmem:[#allocation88_spill] sm:$0xff] %v5031_v33  ;;  %3361 = vpow2.f32 %v2257_v49  ;;  %v1995_v31 = vmul.f32 %v1731_v11, %v1731_v11  ;;  %v3338_v54 = vpop.eup %3337  ;;  %v2277_v18 = vmul.f32 1.442695, %v2194_v14  ;;  %v1805_v7 = vpop.permute.xlu0 %1804  ;;  %v6308_v58 = vld [vmem:[#allocation46_spill] sm:$0xff] }
 0x21f   : > { %6307 = vst [vmem:[#allocation89_spill] sm:$0xff] %v5033_v12  ;;  %3363 = vpow2.f32 %v2267_v51  ;;  %v1993_v32 = vmul.f32 %v1729_v0, %v1729_v0  ;;  %v1996_v26 = vmul.f32 %v1732_v1, %v1732_v1  ;;  %v5035_v43 = vpop.eup %3339  ;;  %v1162_v3 = vmul.f32 -2.0, %v3334_v38  ;;  %v6311_v0 = vld [vmem:[#allocation44_spill] sm:$0xff]  ;;  %v6316_v33 = vld [vmem:[#allocation54_spill] sm:$0xff]  ;;  %v5065_v59 = vpop.permute.xlu1 %1852 }
 0x220   : > { %6305 = vst [vmem:[#allocation43_spill] sm:$0xff] %v5027_v36  ;;  %v1994_v27 = vmul.f32 %v1730_v28, %v1730_v28  ;;  %v1742_v47 = vsub.f32 %v4678_v44, %v4509_v6  ;;  %v2005_v34 = vmul.f32 %v1741_v56, %v1741_v56  ;;  %v5039_v62 = vpop.eup %3341  ;;  %v6309_v49 = vmax.f32 %v6308_v58, 0.0  ;;  %v6313_v56 = vld [vmem:[#allocation6_spill] sm:$0xff] }
 0x221   : > { %3365 = vpow2.f32 %v2269_v10  ;;  %v5045_v51 = vsub.f32 %v4719_v30, %v4503_v17  ;;  %v5049_v11 = vsub.f32 %v4719_v30, %v4509_v6  ;;  %v5051_v14 = vpop.eup %3343  ;;  %v6312_v44 = vmax.f32 %v6311_v0, 0.0 }
 0x222   : > { %v1223_v4 = vmul.f32 %v1160_v45, %v6309_v49  ;;  %6310 = vst [vmem:[#allocation46_spill] sm:$0xff] %v5051_v14  ;;  %v1164_v28 = vmul.f32 -2.0, %v3338_v54  ;;  %v2123_v38 = vadd.f32 %v6313_v56, %v1995_v31  ;;  %v1735_v58 = vsub.f32 %v4788_v53, %v4503_v17  ;;  %v5058_v10 = vpop.eup %3345  ;;  %v6315_v49 = vld [vmem:[#allocation7_spill] sm:$0xff]  ;;  %v6318_v54 = vld [vmem:[#allocation45_spill] sm:$0xff]  ;;  %v6320_v56 = vld [vmem:[#allocation74_spill] sm:$0xff] }
 0x223   : > { %v1224_v1 = vmul.f32 %v1160_v45, %v6312_v44  ;;  %6314 = vst [vmem:[#allocation44_spill] sm:$0xff] %v5058_v10  ;;  %v2124_v29 = vadd.f32 %v6315_v49, %v1996_v26  ;;  %v1736_v37 = vsub.f32 %v4788_v53, %v4509_v6  ;;  %v1929_v30 = vsub.f32 %v1805_v7, %v4500_v50  ;;  %v5067_v45 = vpop.eup %3347  ;;  %v6322_v49 = vld [vmem:[#allocation47_spill] sm:$0xff] }
 0x224   : > { %v1930_v5 = vsub.f32 %v1805_v7, %v6316_v33  ;;  %6317 = vst [vmem:[#allocation6_spill] sm:$0xff] %v5067_v45  ;;  %v6319_v31 = vmax.f32 %v6318_v54, 0.0  ;;  %3367 = vpow2.f32 %v2275_v39  ;;  %v2006_v44 = vmul.f32 %v1742_v47, %v1742_v47  ;;  %v5072_v12 = vpop.eup %3349 }
 0x225   : > { %v2133_v2 = vadd.f32 %v6320_v56, %v2005_v34  ;;  %6321 = vst [vmem:[#allocation7_spill] sm:$0xff] %v5072_v12  ;;  %v1313_v26 = vmul.f32 1.442695, %v1223_v4  ;;  %v6323_v53 = vmax.f32 %v6322_v49, 0.0  ;;  %v2057_v60 = vmul.f32 %v1929_v30, %v1929_v30  ;;  %v3352_v7 = vpop.eup %3351  ;;  %v5078_v56 = vpop.permute.xlu1 %1648 }
 0x226   : > { %v1225_v0 = vmul.f32 %v1162_v3, %v6319_v31  ;;  %v2058_v36 = vmul.f32 %v1930_v5, %v1930_v5  ;;  %v1315_v23 = vmul.f32 1.442695, %v1224_v1  ;;  %v6325_v19 = vmax.f32 %v6324_v40, 0.0  ;;  %v3354_v31 = vpop.eup %3353  ;;  %v6329_v1 = vld [vmem:[#allocation75_spill] sm:$0xff] }
 0x227   : > { %v1226_v15 = vmul.f32 %v1162_v3, %v6323_v53  ;;  %v2187_v41 = vmul.f32 -200000.0, %v2123_v38  ;;  %v1999_v54 = vmul.f32 %v1735_v58, %v1735_v58  ;;  %v2188_v39 = vmul.f32 -200000.0, %v2124_v29  ;;  %v5080_v4 = vpop.eup %3355  ;;  %v6327_v3 = vld [vmem:[#allocation50_spill] sm:$0xff]  ;;  %v6331_v38 = vld [vmem:[#allocation20_spill] sm:$0xff] }
 0x228   : > { %v1227_v45 = vmul.f32 %v1164_v28, %v6325_v19  ;;  %v2000_v47 = vmul.f32 %v1736_v37, %v1736_v37  ;;  %v2121_v20 = vadd.f32 %v2057_v60, %v1993_v32  ;;  %v2122_v34 = vadd.f32 %v2058_v36, %v1994_v27  ;;  %6326 = vst [vmem:[#allocation54_spill] sm:$0xff] %v5080_v4  ;;  %v5085_v40 = vpop.eup %3357  ;;  %v6333_v27 = vld [vmem:[#allocation68_spill] sm:$0xff] }
 0x229   : > { %v1317_v49 = vmul.f32 1.442695, %v1225_v0  ;;  %v6328_v30 = vmax.f32 %v6327_v3, 0.0  ;;  %3369 = vpow2.f32 %v2277_v18  ;;  %v2134_v53 = vadd.f32 %v6329_v1, %v2006_v44  ;;  %6330 = vst [vmem:[#allocation45_spill] sm:$0xff] %v5085_v40 }
 0x22a   : > { %v1319_v19 = vmul.f32 1.442695, %v1226_v15  ;;  %v1739_v29 = vsub.f32 %v6331_v38, %v4503_v17  ;;  %v1740_v32 = vsub.f32 %v6331_v38, %v4509_v6  ;;  %v2185_v37 = vmul.f32 -200000.0, %v2121_v20  ;;  %v5091_v60 = vpop.eup %3359  ;;  %v6335_v15 = vld [vmem:[#allocation69_spill] sm:$0xff] }
 0x22b   : > { %v1228_v5 = vmul.f32 %v1164_v28, %v6328_v30  ;;  %6332 = vst [vmem:[#allocation74_spill] sm:$0xff] %v5091_v60  ;;  %3371 = vpow2.f32 %v1313_v26  ;;  %v2263_v36 = vmul.f32 1.442695, %v2187_v41  ;;  %v2127_v58 = vadd.f32 %v6333_v27, %v1999_v54  ;;  %v5094_v18 = vpop.eup %3361 }
 0x22c   : > { %v2186_v28 = vmul.f32 -200000.0, %v2122_v34  ;;  %6334 = vst [vmem:[#allocation47_spill] sm:$0xff] %v5094_v18  ;;  %3373 = vpow2.f32 %v1315_v23  ;;  %v1321_v0 = vmul.f32 1.442695, %v1227_v45  ;;  %v2265_v44 = vmul.f32 1.442695, %v2188_v39  ;;  %v5097_v30 = vpop.eup %3363  ;;  %v5101_v34 = vpop.permute.xlu1 %1860 }
 0x22d   : > { %v2128_v3 = vadd.f32 %v6335_v15, %v2000_v47  ;;  %3375 = vpow2.f32 %v1317_v49  ;;  %v1194_v1 = vmul.f32 -2.0, %v3354_v31  ;;  %v2197_v38 = vmul.f32 -200000.0, %v2133_v2  ;;  %v6337_v49 = vld [vmem:[#allocation53_spill] sm:$0xff] }
 0x22e   : > { %v2373_v20 = vadd.f32 %v5085_v40, %v5080_v4  ;;  %3377 = vpow2.f32 %v1319_v19  ;;  %v2003_v41 = vmul.f32 %v1739_v29, %v1739_v29  ;;  %v2004_v26 = vmul.f32 %v1740_v32, %v1740_v32  ;;  %v5103_v27 = vpop.eup %3365  ;;  %v6340_v32 = vld [vmem:[#allocation51_spill] sm:$0xff] }
 0x22f   : > { %v2259_v54 = vmul.f32 1.442695, %v2185_v37  ;;  %v5105_v23 = vmul.f32 -2.0, %v3352_v7  ;;  %3379 = vpow2.f32 %v2263_v36  ;;  %v2191_v45 = vmul.f32 -200000.0, %v2127_v58  ;;  %v6344_v36 = vld [vmem:[#allocation78_spill] sm:$0xff] }
 0x230   : > { %v2261_v39 = vmul.f32 1.442695, %v2186_v28  ;;  %2374 = vadd.xlane.f32.xlu1 %v2373_v20  ;;  %v1323_v47 = vmul.f32 1.442695, %v1228_v5  ;;  %v2198_v31 = vmul.f32 -200000.0, %v2134_v53  ;;  %3381 = vpow2.f32 %v2265_v44  ;;  %v6345_v28 = vld [vmem:[#allocation71_spill] sm:$0xff] }
 0x231   : > { %6336 = vst [vmem:[#allocation48_spill] sm:$0xff] %v5105_v23  ;;  %v2192_v2 = vmul.f32 -200000.0, %v2128_v3  ;;  %3383 = vpow2.f32 %v1321_v0  ;;  %v6338_v19 = vmax.f32 %v6337_v49, 0.0  ;;  %v6341_v37 = vmax.f32 %v6340_v32, 0.0  ;;  %v5115_v7 = vpop.eup %3367  ;;  %v6346_v53 = vld [vmem:[#allocation72_spill] sm:$0xff] }
 0x232   : > { %v2283_v40 = vmul.f32 1.442695, %v2197_v38  ;;  %6343 = vst [vmem:[#allocation20_spill] sm:$0xff] %v5115_v7  ;;  %v1747_v58 = vsub.f32 %v6344_v36, %v4503_v17  ;;  %v2131_v5 = vadd.f32 %v6345_v28, %v2003_v41  ;;  %v2132_v44 = vadd.f32 %v6346_v53, %v2004_v26  ;;  %v5128_v41 = vpop.permute.xlu1 %1653  ;;  %v6351_v53 = vld [vmem:[#allocation19_spill] sm:$0xff] }
 0x233   : > { %v5109_v29 = vmul.f32 %v1194_v1, %v6338_v19  ;;  %v5113_v15 = vmul.f32 %v1194_v1, %v6341_v37  ;;  %3385 = vpow2.f32 %v2259_v54  ;;  %v2271_v0 = vmul.f32 1.442695, %v2191_v45  ;;  %v6347_v45 = vld [vmem:[#allocation15_spill] sm:$0xff] }
 0x234   : > { %v1943_v3 = vsub.f32 %v4865_v52, %v4500_v50  ;;  %v1944_v20 = vsub.f32 %v4865_v52, %v6316_v33  ;;  %3387 = vpow2.f32 %v2261_v39  ;;  %1402 = vadd.xlane.f32.xlu1 %v4992_v22  ;;  %v2285_v1 = vmul.f32 1.442695, %v2198_v31 }
 0x235   : > { %6339 = vst [vmem:[#allocation50_spill] sm:$0xff] %v5109_v29  ;;  %6342 = vst [vmem:[#allocation75_spill] sm:$0xff] %v5113_v15  ;;  %3389 = vpow2.f32 %v1323_v47  ;;  %v2273_v38 = vmul.f32 1.442695, %v2192_v2  ;;  %v1748_v49 = vsub.f32 %v6344_v36, %v4509_v6  ;;  %v2007_v26 = vmul.f32 %v5045_v51, %v5045_v51 }
 0x236   : > { %v2008_v54 = vmul.f32 %v5049_v11, %v5049_v11  ;;  %v1753_v52 = vsub.f32 %v6347_v45, %v4503_v17  ;;  %v2379_v22 = vadd.f32 %v5094_v18, %v5091_v60  ;;  %v5138_v39 = vpop.eup %3369  ;;  %3391 = vpow2.f32 %v2283_v40 }
 0x237   : > { %6348 = vst [vmem:[#allocation68_spill] sm:$0xff] %v5138_v39  ;;  %v5140_v47 = vmul.f32 %v1747_v58, %v1747_v58  ;;  %v2195_v31 = vmul.f32 -200000.0, %v2131_v5  ;;  %v1754_v2 = vsub.f32 %v6347_v45, %v4509_v6  ;;  %3393 = vpow2.f32 %v2271_v0  ;;  %v1841_v58 = vpop.permute.xlu0 %1840 }
 0x238   : > { %v2196_v51 = vmul.f32 -200000.0, %v2132_v44  ;;  %v2071_v19 = vmul.f32 %v1943_v3, %v1943_v3  ;;  %v2072_v32 = vmul.f32 %v1944_v20, %v1944_v20  ;;  %2380 = vadd.xlane.f32.xlu1 %v2379_v22  ;;  %v5144_v11 = vpop.eup %3371  ;;  %3395 = vpow2.f32 %v2273_v38 }
 0x239   : > { %6349 = vst [vmem:[#allocation69_spill] sm:$0xff] %v5144_v11  ;;  %v5146_v37 = vmul.f32 %v1748_v49, %v1748_v49  ;;  %v1945_v36 = vsub.f32 %v4901_v9, %v4500_v50  ;;  %v1946_v40 = vsub.f32 %v4901_v9, %v6316_v33  ;;  %v5152_v28 = vpop.eup %3373  ;;  %3397 = vpow2.f32 %v2285_v1  ;;  %v6353_v49 = vld [vmem:[#allocation83_spill] sm:$0xff]  ;;  %v5168_v1 = vpop.permute.xlu1 %1864 }
 0x23a   : > { %6350 = vst [vmem:[#allocation53_spill] sm:$0xff] %v5152_v28  ;;  %v5154_v5 = vmul.f32 %v1753_v52, %v1753_v52  ;;  %v1745_v44 = vsub.f32 %v6351_v53, %v4503_v17  ;;  %v1746_v0 = vsub.f32 %v6351_v53, %v4509_v6  ;;  %v5160_v3 = vpop.eup %3375  ;;  %v2279_v20 = vmul.f32 1.442695, %v2195_v31 }
 0x23b   : > { %6352 = vst [vmem:[#allocation51_spill] sm:$0xff] %v5160_v3  ;;  %v5162_v38 = vmul.f32 %v1754_v2, %v1754_v2  ;;  %v1755_v9 = vsub.f32 %v6353_v49, %v4503_v17  ;;  %v1407_v45 = vadd.f32 %v4879_v8, %v4873_v42  ;;  %v5170_v52 = vpop.eup %3377  ;;  %v2281_v22 = vmul.f32 1.442695, %v2196_v51 }
 0x23c   : > { %6354 = vst [vmem:[#allocation78_spill] sm:$0xff] %v5170_v52  ;;  %v2135_v18 = vadd.f32 %v2071_v19, %v2007_v26  ;;  %v2136_v60 = vadd.f32 %v2072_v32, %v2008_v54  ;;  %v1947_v53 = vsub.f32 %v1841_v58, %v4500_v50  ;;  %v5173_v4 = vpop.eup %3379  ;;  %v1756_v31 = vsub.f32 %v6353_v49, %v4509_v6 }
 0x23d   : > { %6355 = vst [vmem:[#allocation71_spill] sm:$0xff] %v5173_v4  ;;  %v2073_v2 = vmul.f32 %v1945_v36, %v1945_v36  ;;  %v2074_v12 = vmul.f32 %v1946_v40, %v1946_v40  ;;  %v1948_v23 = vsub.f32 %v1841_v58, %v6316_v33  ;;  %1408 = vadd.xlane.f32.xlu1 %v1407_v45  ;;  %v5178_v8 = vpop.eup %3381  ;;  %3399 = vpow2.f32 %v2279_v20 }
 0x23e   : > { %6356 = vst [vmem:[#allocation72_spill] sm:$0xff] %v5178_v8  ;;  %v2009_v42 = vmul.f32 %v1745_v44, %v1745_v44  ;;  %v2010_v15 = vmul.f32 %v1746_v0, %v1746_v0  ;;  %v1749_v26 = vsub.f32 %v4926_v16, %v4503_v17  ;;  %v1949_v54 = vsub.f32 %v4964_v46, %v4500_v50  ;;  %v5184_v51 = vpop.eup %3383 }
 0x23f   : > { %6357 = vst [vmem:[#allocation15_spill] sm:$0xff] %v5184_v51  ;;  %v5186_v19 = vmul.f32 %v1755_v9, %v1755_v9  ;;  %v1751_v32 = vsub.f32 %v4988_v35, %v4503_v17  ;;  %v1951_v36 = vsub.f32 %v5029_v24, %v4500_v50  ;;  %3401 = vpow2.f32 %v2281_v22  ;;  %v5198_v9 = vpop.permute.xlu1 %1868 }
 0x240   : > { %v5192_v40 = vpop.eup %3385  ;;  %v2199_v58 = vmul.f32 -200000.0, %v2135_v18  ;;  %v2200_v44 = vmul.f32 -200000.0, %v2136_v60  ;;  %v2075_v0 = vmul.f32 %v1947_v53, %v1947_v53  ;;  %v2137_v45 = vadd.f32 %v2073_v2, %v2009_v42 }
 0x241   : > { %6358 = vst [vmem:[#allocation19_spill] sm:$0xff] %v5192_v40  ;;  %v5194_v49 = vpop.eup %3387  ;;  %v2138_v29 = vadd.f32 %v2074_v12, %v2010_v15  ;;  %v2076_v51 = vmul.f32 %v1948_v23, %v1948_v23  ;;  %v2385_v20 = vadd.f32 %v5178_v8, %v5173_v4  ;;  %v2013_v11 = vmul.f32 %v1749_v26, %v1749_v26 }
 0x242   : > { %6359 = vst [vmem:[#allocation83_spill] sm:$0xff] %v5194_v49  ;;  %v5200_v28 = vpop.eup %3389  ;;  %v2077_v61 = vmul.f32 %v1949_v54, %v1949_v54  ;;  %v1752_v22 = vsub.f32 %v4988_v35, %v4509_v6  ;;  %v1952_v60 = vsub.f32 %v5029_v24, %v6316_v33  ;;  %v1750_v42 = vsub.f32 %v4926_v16, %v4509_v6  ;;  %v6361_v16 = vld [vmem:[#allocation22_spill] sm:$0xff] }
 0x243   : > { %6360 = vst [vmem:[#allocation90_spill] sm:$0xff] %v5200_v28  ;;  %v1950_v12 = vsub.f32 %v4964_v46, %v6316_v33  ;;  %v2015_v18 = vmul.f32 %v1751_v32, %v1751_v32  ;;  %v2079_v23 = vmul.f32 %v1951_v36, %v1951_v36  ;;  %2386 = vadd.xlane.f32.xlu1 %v2385_v20  ;;  %v5210_v15 = vpop.eup %3391  ;;  %v2287_v2 = vmul.f32 1.442695, %v2199_v58  ;;  %v5224_v36 = vpop.permute.xlu1 %1668 }
 0x244   : > { %v5212_v53 = vmul.f32 %v1756_v31, %v1756_v31  ;;  %v2139_v26 = vadd.f32 %v2075_v0, %v5140_v47  ;;  %v2382_v35 = vadd.f32 %v5194_v49, %v5192_v40  ;;  %v5217_v24 = vpop.eup %3393  ;;  %v2289_v54 = vmul.f32 1.442695, %v2200_v44 }
 0x245   : > { %v1761_v8 = vsub.f32 %v6361_v16, %v4503_v17  ;;  %v2140_v46 = vadd.f32 %v2076_v51, %v5146_v37  ;;  %v1413_v32 = vadd.f32 %v4939_v63, %v4934_v57  ;;  %v5226_v31 = vpop.eup %3395  ;;  %v2201_v58 = vmul.f32 -200000.0, %v2137_v45  ;;  %v6362_v63 = vld [vmem:[#allocation34_spill] sm:$0xff]  ;;  %v1857_v45 = vpop.permute.xlu0 %1856 }
 0x246   : > { %v2141_v47 = vadd.f32 %v2077_v61, %v2013_v11  ;;  %v2016_v0 = vmul.f32 %v1752_v22, %v1752_v22  ;;  %v2080_v20 = vmul.f32 %v1952_v60, %v1952_v60  ;;  %2383 = vadd.xlane.f32.xlu0 %v2382_v35  ;;  %v5228_v49 = vpop.eup %3397  ;;  %v2202_v44 = vmul.f32 -200000.0, %v2138_v29 }
 0x247   : > { %v2014_v40 = vmul.f32 %v1750_v42, %v1750_v42  ;;  %v2078_v4 = vmul.f32 %v1950_v12, %v1950_v12  ;;  %v2143_v28 = vadd.f32 %v2079_v23, %v2015_v18  ;;  %1414 = vadd.xlane.f32.xlu1 %v1413_v32  ;;  %3403 = vpow2.f32 %v2287_v2 }
 0x248   : > { %v1762_v37 = vsub.f32 %v6361_v16, %v4509_v6  ;;  %v2203_v51 = vmul.f32 -200000.0, %v2139_v26  ;;  %v1410_v57 = vadd.f32 %v6362_v63, %v4909_v48  ;;  %3405 = vpow2.f32 %v2289_v54 }
 0x249   : > { %v5234_v61 = vmul.f32 %v1761_v8, %v1761_v8  ;;  %v2204_v11 = vmul.f32 -200000.0, %v2140_v46  ;;  %v2391_v29 = vadd.f32 %v5226_v31, %v5217_v24  ;;  %v2291_v22 = vmul.f32 1.442695, %v2201_v58  ;;  %v5242_v8 = vpop.permute.xlu1 %1876 }
 0x24a   : > { %v2205_v60 = vmul.f32 -200000.0, %v2141_v47  ;;  %v2144_v42 = vadd.f32 %v2080_v20, %v2016_v0  ;;  %v1953_v12 = vsub.f32 %v5065_v59, %v4500_v50  ;;  %1411 = vadd.xlane.f32.xlu0 %v1410_v57  ;;  %v2293_v18 = vmul.f32 1.442695, %v2202_v44  ;;  %v5244_v35 = vpop.eup %3399 }
 0x24b   : > { %v2142_v23 = vadd.f32 %v2078_v4, %v2014_v40  ;;  %v2207_v2 = vmul.f32 -200000.0, %v2143_v28  ;;  %v1954_v26 = vsub.f32 %v5065_v59, %v6316_v33  ;;  %2392 = vadd.xlane.f32.xlu1 %v2391_v29  ;;  %v5246_v54 = vmul.f32 %v1762_v37, %v1762_v37  ;;  %v6363_v4 = vld [vmem:[#allocation25_spill] sm:$0xff] }
 0x24c   : > { %v2295_v16 = vmul.f32 1.442695, %v2203_v51  ;;  %v1955_v46 = vsub.f32 %v1857_v45, %v4500_v50  ;;  %v2388_v32 = vadd.f32 %v5103_v27, %v5097_v30  ;;  %v5251_v57 = vpop.eup %3401  ;;  %v1763_v28 = vsub.f32 %v6363_v4, %v4503_v17 }
 0x24d   : > { %v2297_v40 = vmul.f32 1.442695, %v2204_v11  ;;  %v1956_v59 = vsub.f32 %v1857_v45, %v6316_v33  ;;  %v1419_v58 = vadd.f32 %v4994_v13, %v4985_v55  ;;  %3407 = vpow2.f32 %v2291_v22  ;;  %v6364_v22 = vld [vmem:[#allocation31_spill] sm:$0xff] }
 0x24e   : > { %v2299_v47 = vmul.f32 1.442695, %v2205_v60  ;;  %v2208_v0 = vmul.f32 -200000.0, %v2144_v42  ;;  %v2081_v20 = vmul.f32 %v1953_v12, %v1953_v12  ;;  %2389 = vadd.xlane.f32.xlu0 %v2388_v32  ;;  %3409 = vpow2.f32 %v2293_v18  ;;  %v5270_v18 = vpop.permute.xlu1 %1673 }
 0x24f   : > { %v2206_v44 = vmul.f32 -200000.0, %v2142_v23  ;;  %v2303_v37 = vmul.f32 1.442695, %v2207_v2  ;;  %v2082_v51 = vmul.f32 %v1954_v26, %v1954_v26  ;;  %1420 = vadd.xlane.f32.xlu1 %v1419_v58  ;;  %v5260_v29 = vsub.f32 %v6363_v4, %v4509_v6  ;;  %v1873_v4 = vpop.permute.xlu0 %1872 }
 0x250   : > { %3411 = vpow2.f32 %v2295_v16  ;;  %v2083_v11 = vmul.f32 %v1955_v46, %v1955_v46  ;;  %v1416_v45 = vadd.f32 %v4981_v25, %v4978_v21  ;;  %v5266_v60 = vsub.f32 %v6364_v22, %v4503_v17 }
 0x251   : > { %3413 = vpow2.f32 %v2297_v40  ;;  %v2084_v42 = vmul.f32 %v1956_v59, %v1956_v59  ;;  %v2397_v12 = vadd.f32 %v5251_v57, %v5244_v35  ;;  %v5274_v23 = vsub.f32 %v6364_v22, %v4509_v6 }
 0x252   : > { %3415 = vpow2.f32 %v2299_v47  ;;  %v2305_v2 = vmul.f32 1.442695, %v2208_v0  ;;  %v2145_v26 = vadd.f32 %v2081_v20, %v5154_v5  ;;  %1417 = vadd.xlane.f32.xlu0 %v1416_v45  ;;  %v2027_v16 = vmul.f32 %v1763_v28, %v1763_v28  ;;  %v5306_v45 = vpop.permute.xlu1 %1880 }
 0x253   : > { %v2301_v46 = vmul.f32 1.442695, %v2206_v44  ;;  %3417 = vpow2.f32 %v2303_v37  ;;  %v2146_v32 = vadd.f32 %v2082_v51, %v5162_v38  ;;  %2398 = vadd.xlane.f32.xlu1 %v2397_v12  ;;  %v2147_v40 = vadd.f32 %v2083_v11, %v5186_v19 }
 0x254   : > { %v1759_v59 = vsub.f32 %v5128_v41, %v4503_v17  ;;  %v1959_v58 = vsub.f32 %v5168_v1, %v4500_v50  ;;  %v2394_v47 = vadd.f32 %v5138_v39, %v5115_v7  ;;  %v5285_v5 = vpop.eup %3403  ;;  %v2148_v28 = vadd.f32 %v2084_v42, %v5212_v53 }
 0x255   : > { %v1760_v38 = vsub.f32 %v5128_v41, %v4509_v6  ;;  %v1960_v0 = vsub.f32 %v5168_v1, %v6316_v33  ;;  %v1425_v19 = vadd.f32 %v5058_v10, %v5051_v14  ;;  %v5294_v20 = vpop.eup %3405  ;;  %3419 = vpow2.f32 %v2305_v2 }
 0x256   : > { %6365 = vst [vmem:[#allocation22_spill] sm:$0xff] %v5294_v20  ;;  %v2209_v44 = vmul.f32 -200000.0, %v2145_v26  ;;  %v1757_v37 = vsub.f32 %v5078_v56, %v4503_v17  ;;  %v1963_v51 = vsub.f32 %v1873_v4, %v4500_v50  ;;  %2395 = vadd.xlane.f32.xlu0 %v2394_v47  ;;  %v1758_v53 = vsub.f32 %v5078_v56, %v4509_v6 }
 0x257   : > { %v1964_v41 = vsub.f32 %v1873_v4, %v6316_v33  ;;  %v1957_v1 = vsub.f32 %v5101_v34, %v4500_v50  ;;  %v1958_v11 = vsub.f32 %v5101_v34, %v6316_v33  ;;  %1426 = vadd.xlane.f32.xlu1 %v1425_v19  ;;  %v2211_v22 = vmul.f32 -200000.0, %v2147_v40 }
 0x258   : > { %v2023_v42 = vmul.f32 %v1759_v59, %v1759_v59  ;;  %v2087_v12 = vmul.f32 %v1959_v58, %v1959_v58  ;;  %v1422_v2 = vadd.f32 %v5039_v62, %v5035_v43  ;;  %v2212_v26 = vmul.f32 -200000.0, %v2148_v28 }
 0x259   : > { %v2024_v47 = vmul.f32 %v1760_v38, %v1760_v38  ;;  %v2088_v56 = vmul.f32 %v1960_v0, %v1960_v0  ;;  %v2403_v4 = vadd.f32 %v5294_v20, %v5285_v5  ;;  %v2210_v10 = vmul.f32 -200000.0, %v2146_v32 }
 0x25a   : > { %v2307_v14 = vmul.f32 1.442695, %v2209_v44  ;;  %v2021_v39 = vmul.f32 %v1757_v37, %v1757_v37  ;;  %v2091_v7 = vmul.f32 %v1963_v51, %v1963_v51  ;;  %1423 = vadd.xlane.f32.xlu0 %v1422_v2  ;;  %v5312_v34 = vpop.eup %3407  ;;  %v2022_v19 = vmul.f32 %v1758_v53, %v1758_v53 }
 0x25b   : > { %6366 = vst [vmem:[#allocation34_spill] sm:$0xff] %v5312_v34  ;;  %v2085_v40 = vmul.f32 %v1957_v1, %v1957_v1  ;;  %v2086_v59 = vmul.f32 %v1958_v11, %v1958_v11  ;;  %v1961_v58 = vsub.f32 %v5198_v9, %v4500_v50  ;;  %2404 = vadd.xlane.f32.xlu1 %v2403_v4  ;;  %v5316_v28 = vpop.eup %3409  ;;  %3421 = vpow2.f32 %v2301_v46  ;;  %v5324_v1 = vpop.permute.xlu1 %1884 }
 0x25c   : > { %6367 = vst [vmem:[#allocation25_spill] sm:$0xff] %v5316_v28  ;;  %v2311_v38 = vmul.f32 1.442695, %v2211_v22  ;;  %v2151_v0 = vadd.f32 %v2087_v12, %v2023_v42  ;;  %v2400_v32 = vadd.f32 %v5228_v49, %v5210_v15  ;;  %v2313_v37 = vmul.f32 1.442695, %v2212_v26 }
 0x25d   : > { %v5320_v44 = vpop.eup %3411  ;;  %v2092_v51 = vmul.f32 %v1964_v41, %v1964_v41  ;;  %v2152_v2 = vadd.f32 %v2088_v56, %v2024_v47  ;;  %v1431_v53 = vadd.f32 %v5170_v52, %v5160_v3  ;;  %v2028_v46 = vmul.f32 %v5260_v29, %v5260_v29  ;;  %v1889_v41 = vpop.permute.xlu0 %1888  ;;  %v6369_v3 = vld [vmem:[#allocation37_spill] sm:$0xff] }
 0x25e   : > { %v5326_v11 = vpop.eup %3413  ;;  %3423 = vpow2.f32 %v2307_v14  ;;  %v2309_v22 = vmul.f32 1.442695, %v2210_v10  ;;  %v2155_v42 = vadd.f32 %v2091_v7, %v2027_v16  ;;  %2401 = vadd.xlane.f32.xlu0 %v2400_v32  ;;  %v2149_v4 = vadd.f32 %v2085_v40, %v2021_v39  ;;  %v6370_v10 = vld [vmem:[#allocation69_spill] sm:$0xff] }
 0x25f   : > { %6368 = vst [vmem:[#allocation31_spill] sm:$0xff] %v5326_v11  ;;  %v5330_v12 = vpop.eup %3415  ;;  %v2150_v26 = vadd.f32 %v2086_v59, %v2022_v19  ;;  %v1962_v47 = vsub.f32 %v5198_v9, %v6316_v33  ;;  %v2089_v56 = vmul.f32 %v1961_v58, %v1961_v58  ;;  %1432 = vadd.xlane.f32.xlu1 %v1431_v53  ;;  %3425 = vpow2.f32 %v2311_v38  ;;  %v6371_v7 = vld [vmem:[#allocation53_spill] sm:$0xff]  ;;  %v5344_v9 = vpop.permute.xlu1 %1688 }
 0x260   : > { %v5334_v52 = vpop.eup %3417  ;;  %v5338_v20 = vsub.f32 %v6369_v3, %v4503_v17  ;;  %v2215_v14 = vmul.f32 -200000.0, %v2151_v0  ;;  %v1428_v29 = vadd.f32 %v6371_v7, %v6370_v10  ;;  %3427 = vpow2.f32 %v2313_v37 }
 0x261   : > { %v2156_v39 = vadd.f32 %v2092_v51, %v2028_v46  ;;  %v2216_v16 = vmul.f32 -200000.0, %v2152_v2  ;;  %v2409_v19 = vadd.f32 %v5326_v11, %v5320_v44  ;;  %3429 = vpow2.f32 %v2309_v22 }
 0x262   : > { %v2219_v40 = vmul.f32 -200000.0, %v2155_v42  ;;  %v1971_v59 = vsub.f32 %v1889_v41, %v4500_v50  ;;  %v1972_v58 = vsub.f32 %v1889_v41, %v6316_v33  ;;  %1429 = vadd.xlane.f32.xlu0 %v1428_v29  ;;  %v5348_v38 = vpop.eup %3419  ;;  %v2213_v0 = vmul.f32 -200000.0, %v2149_v4 }
 0x263   : > { %v2214_v32 = vmul.f32 -200000.0, %v2150_v26  ;;  %v2090_v53 = vmul.f32 %v1962_v47, %v1962_v47  ;;  %v2153_v37 = vadd.f32 %v2089_v56, %v5234_v61  ;;  %2410 = vadd.xlane.f32.xlu1 %v2409_v19  ;;  %v2319_v51 = vmul.f32 1.442695, %v2215_v14  ;;  %v6372_v19 = vld [vmem:[#allocation77_spill] sm:$0xff] }
 0x264   : > { %v1767_v2 = vsub.f32 %v5270_v18, %v4503_v17  ;;  %v1967_v46 = vsub.f32 %v5306_v45, %v4500_v50  ;;  %v2406_v22 = vadd.f32 %v5316_v28, %v5312_v34  ;;  %v2220_v42 = vmul.f32 -200000.0, %v2156_v39  ;;  %v6374_v28 = vld [vmem:[#allocation90_spill] sm:$0xff] }
 0x265   : > { %v2321_v41 = vmul.f32 1.442695, %v2216_v16  ;;  %v1768_v4 = vsub.f32 %v5270_v18, %v4509_v6  ;;  %v1968_v26 = vsub.f32 %v5306_v45, %v6316_v33  ;;  %v1765_v61 = vsub.f32 %v5224_v36, %v4503_v17  ;;  %v5371_v45 = vpop.permute.xlu1 %1892 }
 0x266   : > { %v1766_v47 = vsub.f32 %v5224_v36, %v4509_v6  ;;  %v1965_v56 = vsub.f32 %v5242_v8, %v4500_v50  ;;  %v1966_v14 = vsub.f32 %v5242_v8, %v6316_v33  ;;  %2407 = vadd.xlane.f32.xlu0 %v2406_v22  ;;  %v2315_v29 = vmul.f32 1.442695, %v2213_v0  ;;  %v6373_v36 = vld [vmem:[#allocation15_spill] sm:$0xff] }
 0x267   : > { %v2317_v39 = vmul.f32 1.442695, %v2214_v32  ;;  %v2154_v18 = vadd.f32 %v2090_v53, %v5246_v54  ;;  %v2217_v16 = vmul.f32 -200000.0, %v2153_v37  ;;  %1438 = vadd.xlane.f32.xlu1 %v6372_v19  ;;  %3431 = vpow2.f32 %v2319_v51 }
 0x268   : > { %v2031_v7 = vmul.f32 %v1767_v2, %v1767_v2  ;;  %v2095_v10 = vmul.f32 %v1967_v46, %v1967_v46  ;;  %v1434_v34 = vadd.f32 %v6374_v28, %v6373_v36  ;;  %v5375_v11 = vpop.eup %3421  ;;  %3433 = vpow2.f32 %v2321_v41 }
 0x269   : > { %v2032_v8 = vmul.f32 %v1768_v4, %v1768_v4  ;;  %v2096_v22 = vmul.f32 %v1968_v26, %v1968_v26  ;;  %v2415_v0 = vadd.f32 %v5348_v38, %v5334_v52  ;;  %v2029_v54 = vmul.f32 %v1765_v61, %v1765_v61  ;;  %v1694_v28 = vpop.permute.xlu1 %1693 }
 0x26a   : > { %v2030_v32 = vmul.f32 %v1766_v47, %v1766_v47  ;;  %v2093_v53 = vmul.f32 %v1965_v56, %v1965_v56  ;;  %v2094_v37 = vmul.f32 %v1966_v14, %v1966_v14  ;;  %1435 = vadd.xlane.f32.xlu0 %v1434_v34  ;;  %v1772_v51 = vsub.f32 %v6369_v3, %v4509_v6 }
 0x26b   : > { %v5379_v19 = vpop.eup %3423  ;;  %3435 = vpow2.f32 %v2315_v29  ;;  %v2099_v2 = vmul.f32 %v1971_v59, %v1971_v59  ;;  %v2218_v46 = vmul.f32 -200000.0, %v2154_v18  ;;  %2416 = vadd.xlane.f32.xlu1 %v2415_v0  ;;  %v2327_v41 = vmul.f32 1.442695, %v2219_v40 }
 0x26c   : > { %6375 = vst [vmem:[#allocation37_spill] sm:$0xff] %v5379_v19  ;;  %3437 = vpow2.f32 %v2317_v39  ;;  %v2159_v4 = vadd.f32 %v2095_v10, %v2031_v7  ;;  %v2412_v26 = vadd.f32 %v5375_v11, %v5330_v12  ;;  %v5385_v61 = vpop.eup %3425  ;;  %v2035_v34 = vmul.f32 %v5338_v20, %v5338_v20 }
 0x26d   : > { %6376 = vst [vmem:[#allocation77_spill] sm:$0xff] %v5385_v61  ;;  %v2329_v47 = vmul.f32 1.442695, %v2220_v42  ;;  %v2100_v56 = vmul.f32 %v1972_v58, %v1972_v58  ;;  %v2160_v14 = vadd.f32 %v2096_v22, %v2032_v8  ;;  %v5389_v3 = vpop.eup %3427  ;;  %v2323_v59 = vmul.f32 1.442695, %v2217_v16  ;;  %v6379_v42 = vld [vmem:[#allocation81_spill] sm:$0xff] }
 0x26e   : > { %6377 = vst [vmem:[#allocation15_spill] sm:$0xff] %v5389_v3  ;;  %v2157_v29 = vadd.f32 %v2093_v53, %v2029_v54  ;;  %v2158_v18 = vadd.f32 %v2094_v37, %v2030_v32  ;;  %v1969_v10 = vsub.f32 %v5324_v1, %v4500_v50  ;;  %2413 = vadd.xlane.f32.xlu0 %v2412_v26  ;;  %v5393_v7 = vpop.eup %3429  ;;  %v2325_v20 = vmul.f32 1.442695, %v2218_v46 }
 0x26f   : > { %6378 = vst [vmem:[#allocation91_spill] sm:$0xff] %v5393_v7  ;;  %v2033_v40 = vmul.f32 %v5266_v60, %v5266_v60  ;;  %v2036_v39 = vmul.f32 %v1772_v51, %v1772_v51  ;;  %v1970_v58 = vsub.f32 %v5324_v1, %v6316_v33  ;;  %1444 = vadd.xlane.f32.xlu1 %v6379_v42  ;;  %3439 = vpow2.f32 %v2327_v41  ;;  %v6380_v51 = vld [vmem:[#allocation79_spill] sm:$0xff]  ;;  %v6381_v1 = vld [vmem:[#allocation84_spill] sm:$0xff] }
 0x270   : > { %v2034_v16 = vmul.f32 %v5274_v23, %v5274_v23  ;;  %v2163_v8 = vadd.f32 %v2099_v2, %v2035_v34  ;;  %v2223_v22 = vmul.f32 -200000.0, %v2159_v4  ;;  %3441 = vpow2.f32 %v2329_v47  ;;  %v6382_v23 = vld [vmem:[#allocation42_spill] sm:$0xff]  ;;  %v1897_v4 = vpop.permute.xlu1 %1896 }
 0x271   : > { %v2164_v0 = vadd.f32 %v2100_v56, %v2036_v39  ;;  %v2224_v54 = vmul.f32 -200000.0, %v2160_v14  ;;  %v2421_v32 = vadd.f32 %v5389_v3, %v5385_v61  ;;  %3443 = vpow2.f32 %v2323_v59 }
 0x272   : > { %v2221_v60 = vmul.f32 -200000.0, %v2157_v29  ;;  %v2222_v53 = vmul.f32 -200000.0, %v2158_v18  ;;  %v2097_v37 = vmul.f32 %v1969_v10, %v1969_v10  ;;  %1441 = vadd.xlane.f32.xlu0 %v6380_v51  ;;  %v5407_v46 = vsub.f32 %v6381_v1, %v4503_v17 }
 0x273   : > { %v1779_v2 = vsub.f32 %v6382_v23, %v4503_v17  ;;  %3445 = vpow2.f32 %v2325_v20  ;;  %v2098_v41 = vmul.f32 %v1970_v58, %v1970_v58  ;;  %2422 = vadd.xlane.f32.xlu1 %v2421_v32  ;;  %v2335_v26 = vmul.f32 1.442695, %v2223_v22  ;;  %v1905_v32 = vpop.permute.xlu0 %1904 }
 0x274   : > { %v1775_v34 = vsub.f32 %v1694_v28, %v4503_v17  ;;  %v1975_v47 = vsub.f32 %v1897_v4, %v4500_v50  ;;  %v2418_v56 = vadd.f32 %v5393_v7, %v5379_v19  ;;  %v5415_v14 = vpop.eup %3431  ;;  %v2227_v59 = vmul.f32 -200000.0, %v2163_v8 }
 0x275   : > { %6383 = vst [vmem:[#allocation81_spill] sm:$0xff] %v5415_v14  ;;  %v2337_v29 = vmul.f32 1.442695, %v2224_v54  ;;  %v1776_v18 = vsub.f32 %v1694_v28, %v4509_v6  ;;  %v1976_v10 = vsub.f32 %v1897_v4, %v6316_v33  ;;  %v5419_v39 = vpop.eup %3433  ;;  %v2228_v20 = vmul.f32 -200000.0, %v2164_v0  ;;  %v6385_v54 = vld [vmem:[#allocation87_spill] sm:$0xff] }
 0x276   : > { %6384 = vst [vmem:[#allocation79_spill] sm:$0xff] %v5419_v39  ;;  %v2331_v58 = vmul.f32 1.442695, %v2221_v60  ;;  %v2333_v42 = vmul.f32 1.442695, %v2222_v53  ;;  %v2161_v22 = vadd.f32 %v2097_v37, %v2033_v40  ;;  %2419 = vadd.xlane.f32.xlu0 %v2418_v56  ;;  %v2162_v51 = vadd.f32 %v2098_v41, %v2034_v16  ;;  %v1901_v41 = vpop.permute.xlu1 %1900 }
 0x277   : > { %v1773_v7 = vsub.f32 %v5344_v9, %v4503_v17  ;;  %v1774_v8 = vsub.f32 %v5344_v9, %v4509_v6  ;;  %v1973_v28 = vsub.f32 %v5371_v45, %v4500_v50  ;;  %1450 = vadd.xlane.f32.xlu1 %v6385_v54  ;;  %3447 = vpow2.f32 %v2335_v26  ;;  %v6386_v26 = vld [vmem:[#allocation21_spill] sm:$0xff] }
 0x278   : > { %v5428_v4 = vpop.eup %3435  ;;  %v1974_v40 = vsub.f32 %v5371_v45, %v6316_v33  ;;  %v2039_v0 = vmul.f32 %v1775_v34, %v1775_v34  ;;  %v2103_v60 = vmul.f32 %v1975_v47, %v1975_v47  ;;  %3449 = vpow2.f32 %v2337_v29 }
 0x279   : > { %v5432_v16 = vpop.eup %3437  ;;  %v2040_v53 = vmul.f32 %v1776_v18, %v1776_v18  ;;  %v2104_v37 = vmul.f32 %v1976_v10, %v1976_v10  ;;  %v2427_v9 = vadd.f32 %v5419_v39, %v5415_v14  ;;  %v2343_v56 = vmul.f32 1.442695, %v2227_v59  ;;  %v6388_v14 = vld [vmem:[#allocation29_spill] sm:$0xff] }
 0x27a   : > { %v1979_v54 = vsub.f32 %v1905_v32, %v4500_v50  ;;  %3451 = vpow2.f32 %v2331_v58  ;;  %v2225_v19 = vmul.f32 -200000.0, %v2161_v22  ;;  %1447 = vadd.xlane.f32.xlu0 %v6386_v26  ;;  %v2226_v45 = vmul.f32 -200000.0, %v2162_v51  ;;  %v6387_v22 = vld [vmem:[#allocation27_spill] sm:$0xff] }
 0x27b   : > { %3453 = vpow2.f32 %v2333_v42  ;;  %v2037_v34 = vmul.f32 %v1773_v7, %v1773_v7  ;;  %v2101_v47 = vmul.f32 %v1973_v28, %v1973_v28  ;;  %2428 = vadd.xlane.f32.xlu1 %v2427_v9  ;;  %v2038_v3 = vmul.f32 %v1774_v8, %v1774_v8  ;;  %v1709_v42 = vpop.permute.xlu1 %1708 }
 0x27c   : > { %v2102_v29 = vmul.f32 %v1974_v40, %v1974_v40  ;;  %v2167_v18 = vadd.f32 %v2103_v60, %v2039_v0  ;;  %v2424_v10 = vadd.f32 %v5432_v16, %v5428_v4  ;;  %v5440_v61 = vpop.eup %3439  ;;  %v2345_v59 = vmul.f32 1.442695, %v2228_v20 }
 0x27d   : > { %v1980_v39 = vsub.f32 %v1905_v32, %v6316_v33  ;;  %v2168_v58 = vadd.f32 %v2104_v37, %v2040_v53  ;;  %v1455_v26 = vadd.f32 %v6388_v14, %v6387_v22  ;;  %v5445_v51 = vpop.eup %3441  ;;  %v1780_v7 = vsub.f32 %v6382_v23, %v4509_v6  ;;  %v6389_v22 = vld [vmem:[#allocation23_spill] sm:$0xff]  ;;  %v6390_v23 = vld [vmem:[#allocation62_spill] sm:$0xff] }
 0x27e   : > { %v2043_v8 = vmul.f32 %v1779_v2, %v1779_v2  ;;  %v2107_v28 = vmul.f32 %v1979_v54, %v1979_v54  ;;  %v2339_v40 = vmul.f32 1.442695, %v2225_v19  ;;  %2425 = vadd.xlane.f32.xlu0 %v2424_v10  ;;  %v5449_v0 = vpop.eup %3443  ;;  %3455 = vpow2.f32 %v2343_v56 }
 0x27f   : > { %v2341_v20 = vmul.f32 1.442695, %v2226_v45  ;;  %v2165_v60 = vadd.f32 %v2101_v47, %v2037_v34  ;;  %v1977_v32 = vsub.f32 %v1901_v41, %v4500_v50  ;;  %1456 = vadd.xlane.f32.xlu1 %v1455_v26  ;;  %v2166_v37 = vadd.f32 %v2102_v29, %v2038_v3  ;;  %v6391_v45 = vld [vmem:[#allocation50_spill] sm:$0xff] }
 0x280   : > { %v5452_v53 = vpop.eup %3445  ;;  %v2231_v9 = vmul.f32 -200000.0, %v2167_v18  ;;  %v1978_v14 = vsub.f32 %v1901_v41, %v6316_v33  ;;  %v1452_v2 = vadd.f32 %v6390_v23, %v6389_v22  ;;  %3457 = vpow2.f32 %v2345_v59  ;;  %v1909_v18 = vpop.permute.xlu1 %1908 }
 0x281   : > { %v2108_v19 = vmul.f32 %v1980_v39, %v1980_v39  ;;  %v2232_v54 = vmul.f32 -200000.0, %v2168_v58  ;;  %v2433_v56 = vadd.f32 %v5445_v51, %v5440_v61  ;;  %v1381_v34 = vmul.f32 1.442695, %v6391_v45 }
 0x282   : > { %v1778_v47 = vsub.f32 %v6381_v1, %v4509_v6  ;;  %v2171_v10 = vadd.f32 %v2107_v28, %v2043_v8  ;;  %3459 = vpow2.f32 %v2339_v40  ;;  %1453 = vadd.xlane.f32.xlu0 %v1452_v2  ;;  %v2044_v3 = vmul.f32 %v1780_v7, %v1780_v7  ;;  %v6392_v40 = vld [vmem:[#allocation35_spill] sm:$0xff] }
 0x283   : > { %3461 = vpow2.f32 %v2341_v20  ;;  %v2229_v41 = vmul.f32 -200000.0, %v2165_v60  ;;  %v2105_v29 = vmul.f32 %v1977_v32, %v1977_v32  ;;  %2434 = vadd.xlane.f32.xlu1 %v2433_v56  ;;  %v2230_v59 = vmul.f32 -200000.0, %v2166_v37  ;;  %v6393_v7 = vld [vmem:[#allocation39_spill] sm:$0xff] }
 0x284   : > { %v2351_v39 = vmul.f32 1.442695, %v2231_v9  ;;  %v2106_v58 = vmul.f32 %v1978_v14, %v1978_v14  ;;  %v2430_v26 = vadd.f32 %v5452_v53, %v5449_v0  ;;  %v5464_v23 = vpop.eup %3447  ;;  %v2041_v1 = vmul.f32 %v5407_v46, %v5407_v46 }
 0x285   : > { %v2172_v8 = vadd.f32 %v2108_v19, %v2044_v3  ;;  %v2353_v28 = vmul.f32 1.442695, %v2232_v54  ;;  %v1461_v20 = vadd.f32 %v6393_v7, %v6392_v40  ;;  %v5470_v60 = vpop.eup %3449  ;;  %v2042_v32 = vmul.f32 %v1778_v47, %v1778_v47  ;;  %v6397_v7 = vld [vmem:[#allocation30_spill] sm:$0xff] }
 0x286   : > { %v2235_v2 = vmul.f32 -200000.0, %v2171_v10  ;;  %v1781_v37 = vsub.f32 %v1709_v42, %v4503_v17  ;;  %2431 = vadd.xlane.f32.xlu0 %v2430_v26  ;;  %v1981_v14 = vsub.f32 %v1909_v18, %v4500_v50  ;;  %v2347_v56 = vmul.f32 1.442695, %v2229_v41  ;;  %v6396_v10 = vld [vmem:[#allocation28_spill] sm:$0xff]  ;;  %v6398_v26 = vld [vmem:[#allocation75_spill] sm:$0xff] }
 0x287   : > { %v5474_v9 = vpop.eup %3451  ;;  %v2169_v45 = vadd.f32 %v2105_v29, %v2041_v1  ;;  %v1782_v46 = vsub.f32 %v1709_v42, %v4509_v6  ;;  %1462 = vadd.xlane.f32.xlu1 %v1461_v20  ;;  %v1982_v19 = vsub.f32 %v1909_v18, %v6316_v33  ;;  %v2349_v3 = vmul.f32 1.442695, %v2230_v59  ;;  %v6399_v29 = vld [vmem:[#allocation43_spill] sm:$0xff]  ;;  %v1394_v18 = vpop.xlane.xlu0 %1393 }
 0x288   : > { %6394 = vst [vmem:[#allocation84_spill] sm:$0xff] %v5474_v9  ;;  %v5478_v54 = vpop.eup %3453  ;;  %3463 = vpow2.f32 %v2351_v39  ;;  %v2170_v47 = vadd.f32 %v2106_v58, %v2042_v32  ;;  %v1458_v17 = vadd.f32 %v6397_v7, %v6396_v10  ;;  %v1383_v40 = vmul.f32 1.442695, %v6398_v26  ;;  %v6401_v32 = vld [vmem:[#allocation49_spill] sm:$0xff] }
 0x289   : > { %6395 = vst [vmem:[#allocation42_spill] sm:$0xff] %v5478_v54  ;;  %v2236_v50 = vmul.f32 -200000.0, %v2172_v8  ;;  %3465 = vpow2.f32 %v2353_v28  ;;  %v2439_v41 = vadd.f32 %v5470_v60, %v5464_v23  ;;  %v1379_v6 = vmul.f32 1.442695, %v6399_v29 }
 0x28a   : > { %3467 = vpow2.f32 %v1381_v34  ;;  %v2045_v42 = vmul.f32 %v1781_v37, %v1781_v37  ;;  %v2109_v33 = vmul.f32 %v1981_v14, %v1981_v14  ;;  %1459 = vadd.xlane.f32.xlu0 %v1458_v17  ;;  %v2233_v59 = vmul.f32 -200000.0, %v2169_v45  ;;  %v6403_v34 = vld [vmem:[#allocation48_spill] sm:$0xff]  ;;  %v6405_v17 = vld [vmem:[#allocation85_spill] sm:$0xff] }
 0x28b   : > { %3469 = vpow2.f32 %v2347_v56  ;;  %v2046_v39 = vmul.f32 %v1782_v46, %v1782_v46  ;;  %v2110_v58 = vmul.f32 %v1982_v19, %v1982_v19  ;;  %2440 = vadd.xlane.f32.xlu1 %v2439_v41  ;;  %v5486_v1 = vpop.eup %3455  ;;  %v2359_v20 = vmul.f32 1.442695, %v2235_v2  ;;  %v6404_v56 = vld [vmem:[#allocation64_spill] sm:$0xff]  ;;  %v6407_v19 = vld [vmem:[#allocation89_spill] sm:$0xff] }
 0x28c   : > { %6400 = vst [vmem:[#allocation87_spill] sm:$0xff] %v5486_v1  ;;  %3471 = vpow2.f32 %v2349_v3  ;;  %v2234_v8 = vmul.f32 -200000.0, %v2170_v47  ;;  %v2436_v28 = vadd.f32 %v5478_v54, %v5474_v9  ;;  %v6402_v26 = vmax.f32 %v6401_v32, 0.0  ;;  %v6410_v32 = vld [vmem:[#allocation52_spill] sm:$0xff] }
 0x28d   : > { %3473 = vpow2.f32 %v1383_v40  ;;  %v2361_v14 = vmul.f32 1.442695, %v2236_v50  ;;  %v1467_v45 = vadd.f32 %v6405_v17, %v6404_v56  ;;  %v5495_v46 = vpop.eup %3457  ;;  %v2173_v41 = vadd.f32 %v2109_v33, %v2045_v42  ;;  %v6412_v17 = vld [vmem:[#allocation41_spill] sm:$0xff]  ;;  %v6413_v56 = vld [vmem:[#allocation40_spill] sm:$0xff]  ;;  %v5507_v42 = vpop.xlane.xlu0 %1396 }
 0x28e   : > { %v1259_v37 = vmul.f32 %v6403_v34, %v6402_v26  ;;  %6406 = vst [vmem:[#allocation21_spill] sm:$0xff] %v5495_v46  ;;  %3475 = vpow2.f32 %v6407_v19  ;;  %2437 = vadd.xlane.f32.xlu0 %v2436_v28  ;;  %v2355_v3 = vmul.f32 1.442695, %v2233_v59  ;;  %v2174_v47 = vadd.f32 %v2110_v58, %v2046_v39  ;;  %v1391_v33 = vpop.xlane.xlu1 %1390  ;;  %v6415_v28 = vld [vmem:[#allocation6_spill] sm:$0xff] }
 0x28f   : > { %v5498_v2 = vpop.eup %3459  ;;  %3477 = vpow2.f32 %v1379_v6  ;;  %1468 = vadd.xlane.f32.xlu1 %v1467_v45  ;;  %v6411_v40 = vmax.f32 %v6410_v32, 0.0  ;;  %v2357_v26 = vmul.f32 1.442695, %v2234_v8  ;;  %v1464_v7 = vadd.f32 %v6413_v56, %v6412_v17 }
 0x290   : > { %6408 = vst [vmem:[#allocation23_spill] sm:$0xff] %v5498_v2  ;;  %v5500_v29 = vpop.eup %3461  ;;  %3479 = vpow2.f32 %v2359_v20  ;;  %v1385_v19 = vmul.f32 1.442695, %v1259_v37  ;;  %v2445_v6 = vadd.f32 %v5495_v46, %v5486_v1  ;;  %v2237_v59 = vmul.f32 -200000.0, %v2173_v41  ;;  %v6463_v46 = vld [vmem:[#allocation16_spill] sm:$0xff] }
 0x291   : > { %6409 = vst [vmem:[#allocation50_spill] sm:$0xff] %v5500_v29  ;;  %v1260_v50 = vmul.f32 %v6403_v34, %v6411_v40  ;;  %3481 = vpow2.f32 %v2361_v14  ;;  %v2238_v39 = vmul.f32 -200000.0, %v2174_v47  ;;  %v2442_v20 = vadd.f32 %v5500_v29, %v5498_v2  ;;  %v6416_v34 = vld [vmem:[#allocation7_spill] sm:$0xff]  ;;  %v6420_v40 = vld [vmem:[#allocation86_spill] sm:$0xff] }
 0x292   : > { %1465 = vadd.xlane.f32.xlu0 %v1464_v7  ;;  %3483 = vrcp.f32 %v1391_v33  ;;  %v1473_v37 = vadd.f32 %v6416_v34, %v6415_v28  ;;  %v2369_v14 = vpop.xlane.xlu1 %2368  ;;  %v2363_v41 = vmul.f32 1.442695, %v2237_v59  ;;  %v6435_v28 = vld [vmem:[#allocation9_spill] sm:$0xff] }
 0x293   : > { %3485 = vpow2.f32 %v2355_v3  ;;  %2446 = vadd.xlane.f32.xlu1 %v2445_v6  ;;  %v1387_v58 = vmul.f32 1.442695, %v1260_v50  ;;  %v1400_v3 = vpop.xlane.xlu0 %1399  ;;  %v2365_v47 = vmul.f32 1.442695, %v2238_v39  ;;  %v6421_v50 = vld [vmem:[#allocation88_spill] sm:$0xff] }
 0x294   : > { %3487 = vpow2.f32 %v2357_v26  ;;  %v1470_v26 = vadd.f32 %v6421_v50, %v6420_v40 }
 0x295   : > { %v5513_v8 = vpop.eup %3463  ;;  %3489 = vpow2.f32 %v1385_v19 }
 0x296   : > { %6414 = vst [vmem:[#allocation75_spill] sm:$0xff] %v5513_v8  ;;  %v5517_v45 = vpop.eup %3465  ;;  %2443 = vadd.xlane.f32.xlu0 %v2442_v20  ;;  %3491 = vrcp.f32 %v2369_v14 }
 0x297   : > { %6417 = vst [vmem:[#allocation43_spill] sm:$0xff] %v5517_v45  ;;  %v5519_v7 = vpop.eup %3467  ;;  %3493 = vrcp.f32 %v1394_v18  ;;  %1474 = vadd.xlane.f32.xlu1 %v1473_v37  ;;  %v2451_v6 = vadd.f32 %v5517_v45, %v5513_v8  ;;  %v6433_v45 = vld [vmem:[#allocation12_spill] sm:$0xff] }
 0x298   : > { %6418 = vst [vmem:[#allocation49_spill] sm:$0xff] %v5519_v7  ;;  %v5521_v32 = vpop.eup %3469  ;;  %3495 = vpow2.f32 %v1387_v58  ;;  %v2372_v18 = vpop.xlane.xlu0 %2371 }
 0x299   : > { %6419 = vst [vmem:[#allocation48_spill] sm:$0xff] %v5521_v32  ;;  %v5525_v19 = vpop.eup %3471  ;;  %3497 = vpow2.f32 %v2363_v41 }
 0x29a   : > { %6422 = vst [vmem:[#allocation89_spill] sm:$0xff] %v5525_v19  ;;  %v5529_v33 = vpop.eup %3473  ;;  %1471 = vadd.xlane.f32.xlu0 %v1470_v26  ;;  %3499 = vpow2.f32 %v2365_v47  ;;  %v2448_v58 = vadd.f32 %v5525_v19, %v5521_v32  ;;  %v6439_v19 = vld [vmem:[#allocation56_spill] sm:$0xff] }
 0x29b   : > { %6423 = vst [vmem:[#allocation52_spill] sm:$0xff] %v5529_v33  ;;  %v5531_v59 = vpop.eup %3475  ;;  %2452 = vadd.xlane.f32.xlu1 %v2451_v6  ;;  %3501 = vrcp.f32 %v2372_v18  ;;  %v1479_v37 = vadd.f32 %v5529_v33, %v5519_v7 }
 0x29c   : > { %6424 = vst [vmem:[#allocation92_spill] sm:$0xff] %v5531_v59  ;;  %v5533_v39 = vpop.eup %3477  ;;  %3503 = vrcp.f32 %v1400_v3 }
 0x29d   : > { %6425 = vst [vmem:[#allocation93_spill] sm:$0xff] %v5533_v39  ;;  %v5537_v20 = vpop.eup %3479  ;;  %v1476_v26 = vadd.f32 %v5533_v39, %v5531_v59  ;;  %v6432_v39 = vld [vmem:[#allocation11_spill] sm:$0xff] }
 0x29e   : > { %6426 = vst [vmem:[#allocation94_spill] sm:$0xff] %v5537_v20  ;;  %v5541_v14 = vpop.eup %3481  ;;  %2449 = vadd.xlane.f32.xlu0 %v2448_v58 }
 0x29f   : > { %6427 = vst [vmem:[#allocation95_spill] sm:$0xff] %v5541_v14  ;;  %v3484_v41 = vpop.eup %3483  ;;  %1480 = vadd.xlane.f32.xlu1 %v1479_v37  ;;  %v2378_v18 = vpop.xlane.xlu0 %2377  ;;  %v2457_v34 = vadd.f32 %v5541_v14, %v5537_v20  ;;  %v6434_v14 = vld [vmem:[#allocation8_spill] sm:$0xff] }
 0x2a0   : > { %v5543_v47 = vpop.eup %3485  ;;  %3505 = vrcp.f32 %v2378_v18  ;;  %v2495_v33 = vmul.f32 0.9, %v3484_v41 }
 0x2a1   : > { %6428 = vst [vmem:[#allocation96_spill] sm:$0xff] %v5543_v47  ;;  %v5547_v6 = vpop.eup %3487  ;;  %3507 = vrcp.f32 %v5507_v42 }
 0x2a2   : > { %6429 = vst [vmem:[#allocation97_spill] sm:$0xff] %v5547_v6  ;;  %v5551_v50 = vpop.eup %3489  ;;  %1477 = vadd.xlane.f32.xlu0 %v1476_v26  ;;  %v2454_v37 = vadd.f32 %v5547_v6, %v5543_v47  ;;  %v2559_v59 = vmul.f32 %v6432_v39, %v2495_v33  ;;  %v2560_v8 = vmul.f32 %v6433_v45, %v2495_v33  ;;  %v6438_v33 = vld [vmem:[#allocation55_spill] sm:$0xff] }
 0x2a3   : > { %6430 = vst [vmem:[#allocation98_spill] sm:$0xff] %v5551_v50  ;;  %v3492_v3 = vpop.eup %3491  ;;  %2458 = vadd.xlane.f32.xlu1 %v2457_v34 }
 0x2a4   : > { %v3494_v58 = vpop.eup %3493  ;;  %v2527_v7 = vmul.f32 0.1, %v3492_v3 }
 0x2a5   : > { %v5555_v40 = vpop.eup %3495  ;;  %v2496_v41 = vmul.f32 0.9, %v3494_v58  ;;  %v6441_v58 = vld [vmem:[#allocation32_spill] sm:$0xff] }
 0x2a6   : > { %6431 = vst [vmem:[#allocation99_spill] sm:$0xff] %v5555_v40  ;;  %2455 = vadd.xlane.f32.xlu0 %v2454_v37  ;;  %v2623_v20 = vmul.f32 %v6434_v14, %v2527_v7  ;;  %v2624_v18 = vmul.f32 %v6435_v28, %v2527_v7  ;;  %v5561_v26 = vpop.eup %3497  ;;  %v1482_v6 = vadd.f32 %v5555_v40, %v5551_v50  ;;  %v6440_v7 = vld [vmem:[#allocation33_spill] sm:$0xff] }
 0x2a7   : > { %6436 = vst [vmem:[#allocation11_spill] sm:$0xff] %v5561_v26  ;;  %v5563_v34 = vpop.eup %3499  ;;  %v2561_v14 = vmul.f32 %v6438_v33, %v2496_v41  ;;  %v2562_v28 = vmul.f32 %v6439_v19, %v2496_v41  ;;  %v6443_v33 = vld [vmem:[#allocation61_spill] sm:$0xff] }
 0x2a8   : > { %6437 = vst [vmem:[#allocation12_spill] sm:$0xff] %v5563_v34  ;;  %v5567_v3 = vadd.f32 %v2623_v20, %v2559_v59  ;;  %v5569_v47 = vadd.f32 %v2624_v18, %v2560_v8  ;;  %v3502_v37 = vpop.eup %3501  ;;  %v2460_v29 = vadd.f32 %v5563_v34, %v5561_v26  ;;  %v6442_v18 = vld [vmem:[#allocation60_spill] sm:$0xff]  ;;  %v6444_v19 = vld [vmem:[#allocation65_spill] sm:$0xff] }
 0x2a9   : > { %v2528_v39 = vmul.f32 0.1, %v3502_v37  ;;  %v3504_v45 = vpop.eup %3503 }
 0x2aa   : > { %1483 = vadd.xlane.f32.xlu0 %v1482_v6  ;;  %v2498_v40 = vmul.f32 0.9, %v3504_v45 }
 0x2ab   : > { %v2625_v32 = vmul.f32 %v6440_v7, %v2528_v39  ;;  %v2626_v56 = vmul.f32 %v6441_v58, %v2528_v39  ;;  %v6445_v7 = vld [vmem:[#allocation38_spill] sm:$0xff] }
 0x2ac   : > { %v2565_v37 = vmul.f32 %v6442_v18, %v2498_v40  ;;  %v2566_v50 = vmul.f32 %v6443_v33, %v2498_v40  ;;  %v1406_v18 = vpop.xlane.xlu0 %1405  ;;  %v6450_v33 = vld [vmem:[#allocation57_spill] sm:$0xff] }
 0x2ad   : > { %v5577_v59 = vadd.f32 %v2625_v32, %v2561_v14  ;;  %v5579_v8 = vadd.f32 %v2626_v56, %v2562_v28  ;;  %v3506_v20 = vpop.eup %3505  ;;  %v6446_v28 = vlaneseq }
 0x2ae   : > { %2461 = vadd.xlane.f32.xlu0 %v2460_v29  ;;  %v2530_v6 = vmul.f32 0.1, %v3506_v20  ;;  %v3508_v14 = vpop.eup %3507  ;;  %v6447_v20 = vmov 0 }
 0x2af   : > { %vm5595_vm0 = vcmp.lt.s32.totalorder %v6446_v28, 256  ;;  %v2497_v42 = vmul.f32 0.9, %v3508_v14 }
 0x2b0   : > { %v2629_v41 = vmul.f32 %v6444_v19, %v2530_v6  ;;  %v2630_v17 = vmul.f32 %v6445_v7, %v2530_v6  ;;  %v6448_v20 = vsel %vm5595_vm0, 4294967295, %v6447_v20 }
 0x2b1   : > { %6449 = vst [vmem:[#allocation8_spill] sm:$0xff] %v6448_v20  ;;  %v2563_v19 = vmul.f32 %v6450_v33, %v2497_v42 }
 0x2b2   : > { %v5585_v39 = vadd.f32 %v2629_v41, %v2565_v37  ;;  %v5587_v58 = vadd.f32 %v2630_v17, %v2566_v50  ;;  %v3651_v17 = vmov 0.0   ;;  %v6451_v41 = vld [vmem:[#allocation58_spill] sm:$0xff] }
 0x2b3   : > { %319 = vst.msk [vmem:[#allocation2] sm:$0x3] %vm5595_vm0, %v3651_v17  ;;  %v2564_v7 = vmul.f32 %v6451_v41, %v2497_v42  ;;  %v6454_v42 = vld [vmem:[#allocation59_spill] sm:$0xff] }
 0x2b9   : > { %v2375_v32 = vpop.xlane.xlu1 %2374 }
 0x2ba   : > { %3509 = vrcp.f32 %v2375_v32  ;;  %v6452_v32 = vld [vmem:[#allocation54_spill] sm:$0xff] }
 0x2bd   : > { %v1403_v45 = vpop.xlane.xlu1 %1402 }
 0x2be   : > { %3511 = vrcp.f32 %v1403_v45 }
 0x2c1   : > { %v2381_v40 = vpop.xlane.xlu1 %2380 }
 0x2c2   : > { %3513 = vrcp.f32 %v2381_v40  ;;  %v6453_v40 = vld [vmem:[#allocation45_spill] sm:$0xff] }
 0x2c6   : > { %v1409_v50 = vpop.xlane.xlu1 %1408 }
 0x2c7   : > { %v3510_v6 = vpop.eup %3509  ;;  %3515 = vrcp.f32 %v1409_v50 }
 0x2c8   : > { %v2529_v37 = vmul.f32 0.1, %v3510_v6  ;;  %3517 = vrcp.f32 %v1406_v18  ;;  %v6456_v18 = vld [vmem:[#allocation74_spill] sm:$0xff] }
 0x2ca   : > { %v2627_v45 = vmul.f32 %v6452_v32, %v2529_v37  ;;  %v2628_v29 = vmul.f32 %v6453_v40, %v2529_v37  ;;  %v6455_v37 = vld [vmem:[#allocation14_spill] sm:$0xff] }
 0x2cb   : > { %v3512_v56 = vpop.eup %3511 }
 0x2cc   : > { %v2691_v28 = vadd.f32 %v2627_v45, %v2563_v19  ;;  %v2692_v34 = vadd.f32 %v2628_v29, %v2564_v7  ;;  %v2387_v20 = vpop.xlane.xlu1 %2386  ;;  %v2499_v6 = vmul.f32 0.9, %v3512_v56  ;;  %v6457_v29 = vld [vmem:[#allocation47_spill] sm:$0xff] }
 0x2cd   : > { %3519 = vrcp.f32 %v2387_v20 }
 0x2ce   : > { %v2752_v14 = vmax.f32 %v5567_v3, %v2691_v28  ;;  %v2789_v17 = vmax.f32 %v5569_v47, %v2692_v34  ;;  %v2567_v41 = vmul.f32 %v6454_v42, %v2499_v6  ;;  %v2568_v32 = vmul.f32 %v6455_v37, %v2499_v6 }
 0x2cf   : > { %v3514_v50 = vpop.eup %3513  ;;  %v2384_v26 = vpop.xlane.xlu0 %2383 }
 0x2d0   : > { %v2531_v33 = vmul.f32 0.1, %v3514_v50  ;;  %v1415_v2 = vpop.xlane.xlu1 %1414  ;;  %3521 = vrcp.f32 %v2384_v26 }
 0x2d1   : > { %3523 = vrcp.f32 %v1415_v2 }
 0x2d2   : > { %v2631_v19 = vmul.f32 %v6456_v18, %v2531_v33  ;;  %v2632_v7 = vmul.f32 %v6457_v29, %v2531_v33  ;;  %v6459_v29 = vld [vmem:[#allocation26_spill] sm:$0xff] }
 0x2d3   : > { %v1412_v20 = vpop.xlane.xlu0 %1411 }
 0x2d4   : > { %v2695_v45 = vadd.f32 %v2631_v19, %v2567_v41  ;;  %v2696_v3 = vadd.f32 %v2632_v7, %v2568_v32  ;;  %v2393_v28 = vpop.xlane.xlu1 %2392  ;;  %3525 = vrcp.f32 %v1412_v20  ;;  %v3516_v47 = vpop.eup %3515  ;;  %v6458_v41 = vld [vmem:[#allocation24_spill] sm:$0xff]  ;;  %v6460_v7 = vld [vmem:[#allocation71_spill] sm:$0xff] }
 0x2d5   : > { %3527 = vrcp.f32 %v2393_v28  ;;  %v3518_v26 = vpop.eup %3517  ;;  %v2501_v40 = vmul.f32 0.9, %v3516_v47  ;;  %v6461_v20 = vld [vmem:[#allocation72_spill] sm:$0xff]  ;;  %v6462_v47 = vld [vmem:[#allocation17_spill] sm:$0xff] }
 0x2d6   : > { %v5611_v34 = vmax.f32 %v2752_v14, %v2695_v45  ;;  %v5613_v56 = vmax.f32 %v2789_v17, %v2696_v3  ;;  %v2500_v42 = vmul.f32 0.9, %v3518_v26 }
 0x2d7   : > { %v2390_v2 = vpop.xlane.xlu0 %2389  ;;  %v2571_v32 = vmul.f32 %v6458_v41, %v2501_v40  ;;  %v2572_v14 = vmul.f32 %v6459_v29, %v2501_v40  ;;  %v6464_v41 = vld [vmem:[#allocation19_spill] sm:$0xff] }
 0x2d8   : > { %v1421_v50 = vpop.xlane.xlu1 %1420  ;;  %3529 = vrcp.f32 %v2390_v2  ;;  %v2569_v2 = vmul.f32 %v6462_v47, %v2500_v42  ;;  %v2570_v1 = vmul.f32 %v6463_v46, %v2500_v42  ;;  %v6466_v46 = vmax.f32 %v5577_v59, %v5585_v39 }
 0x2d9   : > { %3531 = vrcp.f32 %v1421_v50 }
 0x2da   : > { %v3520_v6 = vpop.eup %3519 }
 0x2db   : > { %v2533_v33 = vmul.f32 0.1, %v3520_v6  ;;  %v1418_v37 = vpop.xlane.xlu0 %1417 }
 0x2dc   : > { %v2399_v18 = vpop.xlane.xlu1 %2398  ;;  %3533 = vrcp.f32 %v1418_v37  ;;  %v6465_v37 = vld [vmem:[#allocation83_spill] sm:$0xff] }
 0x2dd   : > { %v3522_v19 = vpop.eup %3521  ;;  %v2635_v17 = vmul.f32 %v6460_v7, %v2533_v33  ;;  %v2636_v45 = vmul.f32 %v6461_v20, %v2533_v33  ;;  %3535 = vrcp.f32 %v2399_v18 }
 0x2de   : > { %v3524_v3 = vpop.eup %3523  ;;  %v2532_v28 = vmul.f32 0.1, %v3522_v19 }
 0x2df   : > { %v2699_v50 = vadd.f32 %v2635_v17, %v2571_v32  ;;  %v2700_v26 = vadd.f32 %v2636_v45, %v2572_v14  ;;  %v2396_v6 = vpop.xlane.xlu0 %2395  ;;  %v2503_v19 = vmul.f32 0.9, %v3524_v3  ;;  %v6467_v45 = vmax.f32 %v5579_v8, %v5587_v58  ;;  %v6469_v3 = vld [vmem:[#allocation36_spill] sm:$0xff] }
 0x2e0   : > { %v2633_v10 = vmul.f32 %v6464_v41, %v2532_v28  ;;  %v2634_v54 = vmul.f32 %v6465_v37, %v2532_v28  ;;  %v5623_v9 = vpop.xlane.xlu1 %1426  ;;  %3537 = vrcp.f32 %v2396_v6 }
 0x2e1   : > { %v3526_v40 = vpop.eup %3525  ;;  %v2756_v33 = vmax.f32 %v5611_v34, %v2699_v50  ;;  %v2793_v18 = vmax.f32 %v5613_v56, %v2700_v26  ;;  %v6468_v50 = vld [vmem:[#allocation63_spill] sm:$0xff]  ;;  %v2576_v26 = vmul.f32 %v6469_v3, %v2503_v19 }
 0x2e2   : > { %v3528_v29 = vpop.eup %3527  ;;  %v2697_v7 = vadd.f32 %v2633_v10, %v2569_v2  ;;  %v2698_v32 = vadd.f32 %v2634_v54, %v2570_v1  ;;  %v2502_v17 = vmul.f32 0.9, %v3526_v40  ;;  %v2575_v56 = vmul.f32 %v6468_v50, %v2503_v19 }
 0x2e3   : > { %v2535_v14 = vmul.f32 0.1, %v3528_v29  ;;  %v1424_v20 = vpop.xlane.xlu0 %1423 }
 0x2e4   : > { %v2755_v42 = vmax.f32 %v6466_v46, %v2697_v7  ;;  %v2792_v28 = vmax.f32 %v6467_v45, %v2698_v32  ;;  %v5633_v47 = vpop.xlane.xlu1 %2404  ;;  %3539 = vrcp.f32 %v1424_v20  ;;  %v2573_v6 = vmul.f32 %v4909_v48, %v2502_v17 }
 0x2e5   : > { %v3530_v34 = vpop.eup %3529  ;;  %v2639_v54 = vmul.f32 %v5217_v24, %v2535_v14  ;;  %v2640_v10 = vmul.f32 %v5226_v31, %v2535_v14  ;;  %v2574_v58 = vmul.f32 %v6362_v63, %v2502_v17 }
 0x2e6   : > { %v3532_v1 = vpop.eup %3531  ;;  %v2534_v2 = vmul.f32 0.1, %v3530_v34 }
 0x2e7   : > { %v2703_v59 = vadd.f32 %v2639_v54, %v2575_v56  ;;  %v2704_v39 = vadd.f32 %v2640_v10, %v2576_v26  ;;  %v2402_v8 = vpop.xlane.xlu0 %2401  ;;  %v2505_v29 = vmul.f32 0.9, %v3532_v1  ;;  %v6470_v54 = vld [vmem:[#allocation20_spill] sm:$0xff] }
 0x2e8   : > { %v2637_v41 = vmul.f32 %v5097_v30, %v2534_v2  ;;  %v2638_v37 = vmul.f32 %v5103_v27, %v2534_v2  ;;  %v1433_v40 = vpop.xlane.xlu1 %1432  ;;  %3541 = vrcp.f32 %v2402_v8  ;;  %v6471_v1 = vld [vmem:[#allocation68_spill] sm:$0xff] }
 0x2e9   : > { %v3534_v19 = vpop.eup %3533  ;;  %v5643_v24 = vmax.f32 %v2756_v33, %v2703_v59  ;;  %v5645_v31 = vmax.f32 %v2793_v18, %v2704_v39  ;;  %v2579_v27 = vmul.f32 %v4985_v55, %v2505_v29  ;;  %v2580_v34 = vmul.f32 %v4994_v13, %v2505_v29 }
 0x2ea   : > { %v3536_v7 = vpop.eup %3535  ;;  %v2701_v32 = vadd.f32 %v2637_v41, %v2573_v6  ;;  %v2702_v14 = vadd.f32 %v2638_v37, %v2574_v58  ;;  %v2504_v63 = vmul.f32 0.9, %v3534_v19  ;;  %3543 = vrcp.f32 %v5633_v47 }
 0x2eb   : > { %v2537_v20 = vmul.f32 0.1, %v3536_v7  ;;  %v1430_v48 = vpop.xlane.xlu0 %1429  ;;  %3545 = vrcp.f32 %v5623_v9 }
 0x2ec   : > { %v2757_v46 = vmax.f32 %v2755_v42, %v2701_v32  ;;  %v2794_v45 = vmax.f32 %v2792_v28, %v2702_v14  ;;  %v2411_v17 = vpop.xlane.xlu1 %2410  ;;  %v2577_v42 = vmul.f32 %v4978_v21, %v2504_v63  ;;  %v2578_v28 = vmul.f32 %v4981_v25, %v2504_v63 }
 0x2ed   : > { %v3538_v30 = vpop.eup %3537  ;;  %v2643_v33 = vmul.f32 %v5244_v35, %v2537_v20  ;;  %v2644_v18 = vmul.f32 %v5251_v57, %v2537_v20  ;;  %3547 = vrcp.f32 %v2411_v17 }
 0x2ee   : > { %v2536_v50 = vmul.f32 0.1, %v3538_v30  ;;  %3549 = vrcp.f32 %v1433_v40 }
 0x2ef   : > { %v5651_v56 = vadd.f32 %v2643_v33, %v2579_v27  ;;  %v5653_v3 = vadd.f32 %v2644_v18, %v2580_v34  ;;  %v2408_v26 = vpop.xlane.xlu0 %2407 }
 0x2f0   : > { %v2641_v10 = vmul.f32 %v6470_v54, %v2536_v50  ;;  %v2642_v55 = vmul.f32 %v6471_v1, %v2536_v50  ;;  %v1439_v2 = vpop.xlane.xlu1 %1438  ;;  %3551 = vrcp.f32 %v2408_v26 }
 0x2f1   : > { %v2760_v13 = vmax.f32 %v5643_v24, %v5651_v56  ;;  %v2797_v35 = vmax.f32 %v5645_v31, %v5653_v3  ;;  %v3540_v39 = vpop.eup %3539  ;;  %3553 = vrcp.f32 %v1430_v48  ;;  %v6483_v31 = vld [vmem:[#allocation10_spill] sm:$0xff] }
 0x2f2   : > { %v2705_v57 = vadd.f32 %v2641_v10, %v2577_v42  ;;  %v2706_v59 = vadd.f32 %v2642_v55, %v2578_v28  ;;  %v2506_v25 = vmul.f32 0.9, %v3540_v39 }
 0x2f3   : > { %v1436_v6 = vpop.xlane.xlu0 %1435 }
 0x2f4   : > { %v5663_v8 = vmax.f32 %v2757_v46, %v2705_v57  ;;  %v5665_v21 = vmax.f32 %v2794_v45, %v2706_v59  ;;  %v2417_v58 = vpop.xlane.xlu1 %2416  ;;  %v2581_v29 = vmul.f32 %v5035_v43, %v2506_v25  ;;  %v2582_v7 = vmul.f32 %v5039_v62, %v2506_v25  ;;  %v6472_v59 = vld [vmem:[#allocation22_spill] sm:$0xff] }
 0x2f5   : > { %v3542_v41 = vpop.eup %3541  ;;  %3555 = vrcp.f32 %v2417_v58  ;;  %v6473_v58 = vld [vmem:[#allocation46_spill] sm:$0xff] }
 0x2f6   : > { %v2538_v37 = vmul.f32 0.1, %v3542_v41  ;;  %3557 = vrcp.f32 %v1439_v2 }
 0x2f7   : > { %v2414_v19 = vpop.xlane.xlu0 %2413  ;;  %v3544_v50 = vpop.eup %3543  ;;  %3559 = vrcp.f32 %v1436_v6 }
 0x2f8   : > { %v2645_v32 = vmul.f32 %v5210_v15, %v2538_v37  ;;  %v2646_v14 = vmul.f32 %v5228_v49, %v2538_v37  ;;  %v1445_v20 = vpop.xlane.xlu1 %1444  ;;  %v3546_v28 = vpop.eup %3545  ;;  %3561 = vrcp.f32 %v2414_v19  ;;  %v2539_v54 = vmul.f32 0.1, %v3544_v50 }
 0x2f9   : > { %v2507_v26 = vmul.f32 0.9, %v3546_v28  ;;  %v6476_v28 = vld [vmem:[#allocation51_spill] sm:$0xff] }
 0x2fa   : > { %v5671_v63 = vadd.f32 %v2645_v32, %v2581_v29  ;;  %v5673_v46 = vadd.f32 %v2646_v14, %v2582_v7  ;;  %v3548_v9 = vpop.eup %3547  ;;  %v2647_v2 = vmul.f32 %v5285_v5, %v2539_v54  ;;  %v2648_v39 = vmul.f32 %v6472_v59, %v2539_v54  ;;  %v6474_v29 = vld [vmem:[#allocation44_spill] sm:$0xff] }
 0x2fb   : > { %v1442_v45 = vpop.xlane.xlu0 %1441  ;;  %v3550_v17 = vpop.eup %3549  ;;  %v2541_v10 = vmul.f32 0.1, %v3548_v9  ;;  %v2583_v41 = vmul.f32 %v6473_v58, %v2507_v26  ;;  %v2584_v7 = vmul.f32 %v6474_v29, %v2507_v26  ;;  %v6477_v9 = vld [vmem:[#allocation34_spill] sm:$0xff]  ;;  %v6480_v29 = vld [vmem:[#allocation69_spill] sm:$0xff] }
 0x2fc   : > { %v2761_v30 = vmax.f32 %v5663_v8, %v5671_v63  ;;  %v2798_v27 = vmax.f32 %v5665_v21, %v5673_v46  ;;  %v2423_v34 = vpop.xlane.xlu1 %2422  ;;  %v2509_v6 = vmul.f32 0.9, %v3550_v17 }
 0x2fd   : > { %3563 = vrcp.f32 %v2423_v34  ;;  %v3552_v40 = vpop.eup %3551  ;;  %v2651_v32 = vmul.f32 %v5320_v44, %v2541_v10  ;;  %v2711_v5 = vadd.f32 %v2647_v2, %v2583_v41  ;;  %v6475_v34 = vld [vmem:[#allocation31_spill] sm:$0xff]  ;;  %v2712_v50 = vadd.f32 %v2648_v39, %v2584_v7  ;;  %v6481_v41 = vld [vmem:[#allocation53_spill] sm:$0xff] }
 0x2fe   : > { %3565 = vrcp.f32 %v1445_v20  ;;  %v3554_v55 = vpop.eup %3553  ;;  %v2540_v25 = vmul.f32 0.1, %v3552_v40  ;;  %v6479_v40 = vld [vmem:[#allocation78_spill] sm:$0xff] }
 0x2ff   : > { %v2420_v43 = vpop.xlane.xlu0 %2419  ;;  %v2508_v14 = vmul.f32 0.9, %v3554_v55  ;;  %v2588_v59 = vmul.f32 %v6479_v40, %v2509_v6 }
 0x300   : > { %v1451_v62 = vpop.xlane.xlu1 %1450  ;;  %3567 = vrcp.f32 %v2420_v43  ;;  %v2652_v43 = vmul.f32 %v6475_v34, %v2541_v10  ;;  %v2649_v54 = vmul.f32 %v6477_v9, %v2540_v25  ;;  %v6482_v34 = vld [vmem:[#allocation66_spill] sm:$0xff] }
 0x301   : > { %v2585_v2 = vmul.f32 %v6480_v29, %v2508_v14  ;;  %v2586_v10 = vmul.f32 %v6481_v41, %v2508_v14 }
 0x302   : > { %v3556_v57 = vpop.eup %3555  ;;  %v2716_v39 = vadd.f32 %v2652_v43, %v2588_v59 }
 0x303   : > { %v1448_v49 = vpop.xlane.xlu0 %1447  ;;  %v3558_v19 = vpop.eup %3557 }
 0x304   : > { %v2429_v15 = vpop.xlane.xlu1 %2428  ;;  %v2511_v58 = vmul.f32 0.9, %v3558_v19  ;;  %v3560_v44 = vpop.eup %3559 }
 0x305   : > { %3569 = vrcp.f32 %v2429_v15  ;;  %v2543_v15 = vmul.f32 0.1, %v3556_v57 }
 0x306   : > { %3571 = vrcp.f32 %v1442_v45  ;;  %v2587_v45 = vmul.f32 %v6476_v28, %v2509_v6  ;;  %v2713_v6 = vadd.f32 %v2649_v54, %v2585_v2  ;;  %v2591_v28 = vmul.f32 %v6482_v34, %v2511_v58  ;;  %v6491_v34 = vld [vmem:[#allocation81_spill] sm:$0xff] }
 0x307   : > { %v2426_v33 = vpop.xlane.xlu0 %2425  ;;  %3573 = vrcp.f32 %v1451_v62  ;;  %v6478_v62 = vld [vmem:[#allocation25_spill] sm:$0xff]  ;;  %v2655_v7 = vmul.f32 %v5334_v52, %v2543_v15  ;;  %v2656_v14 = vmul.f32 %v5348_v38, %v2543_v15  ;;  %v2592_v3 = vmul.f32 %v6483_v31, %v2511_v58  ;;  %v6495_v31 = vld [vmem:[#allocation79_spill] sm:$0xff] }
 0x308   : > { %v1457_v18 = vpop.xlane.xlu1 %1456  ;;  %3575 = vrcp.f32 %v2426_v33  ;;  %v2650_v17 = vmul.f32 %v6478_v62, %v2540_v25  ;;  %v2715_v55 = vadd.f32 %v2651_v32, %v2587_v45  ;;  %v3562_v33 = vpop.eup %3561  ;;  %v2762_v25 = vmax.f32 %v2760_v13, %v2711_v5 }
 0x309   : > { %3577 = vrcp.f32 %v1448_v49  ;;  %v2799_v49 = vmax.f32 %v2797_v35, %v2712_v50  ;;  %v2510_v45 = vmul.f32 0.9, %v3560_v44  ;;  %v2542_v62 = vmul.f32 0.1, %v3562_v33  ;;  %v6488_v33 = vld [vmem:[#allocation76_spill] sm:$0xff] }
 0x30a   : > { %v2714_v19 = vadd.f32 %v2650_v17, %v2586_v10  ;;  %v3564_v32 = vpop.eup %3563  ;;  %3579 = vrcp.f32 %v1457_v18  ;;  %v2764_v9 = vmax.f32 %v2762_v25, %v2715_v55  ;;  %v2719_v35 = vadd.f32 %v2655_v7, %v2591_v28  ;;  %v6489_v25 = vld [vmem:[#allocation37_spill] sm:$0xff] }
 0x30b   : > { %v5681_v42 = vpop.xlane.xlu0 %1453  ;;  %v3566_v52 = vpop.eup %3565  ;;  %v2801_v13 = vmax.f32 %v2799_v49, %v2716_v39  ;;  %v5719_v38 = vmax.f32 %v2761_v30, %v2713_v6  ;;  %v2720_v50 = vadd.f32 %v2656_v14, %v2592_v3  ;;  %v2589_v54 = vmul.f32 %v6373_v36, %v2510_v45  ;;  %v6485_v36 = vld [vmem:[#allocation77_spill] sm:$0xff] }
 0x30c   : > { %v2435_v47 = vpop.xlane.xlu1 %2434  ;;  %v5724_v18 = vmax.f32 %v2798_v27, %v2714_v19  ;;  %v2513_v17 = vmul.f32 0.9, %v3566_v52  ;;  %v2653_v8 = vmul.f32 %v5330_v12, %v2542_v62  ;;  %v2654_v63 = vmul.f32 %v5375_v11, %v2542_v62  ;;  %v6484_v27 = vld [vmem:[#allocation90_spill] sm:$0xff]  ;;  %v6487_v11 = vld [vmem:[#allocation73_spill] sm:$0xff]  ;;  %v6490_v19 = vld [vmem:[#allocation91_spill] sm:$0xff] }
 0x30d   : > { %3581 = vrcp.f32 %v2435_v47  ;;  %v3568_v56 = vpop.eup %3567  ;;  %v2545_v47 = vmul.f32 0.1, %v3564_v32  ;;  %v5731_v46 = vmax.f32 %v2764_v9, %v2719_v35  ;;  %v5737_v12 = vmax.f32 %v2801_v13, %v2720_v50  ;;  %v6492_v52 = vld [vmem:[#allocation67_spill] sm:$0xff]  ;;  %v6493_v62 = vld [vmem:[#allocation70_spill] sm:$0xff] }
 0x30e   : > { %3583 = vrcp.f32 %v5681_v42  ;;  %v2544_v30 = vmul.f32 0.1, %v3568_v56  ;;  %v2595_v2 = vmul.f32 %v6487_v11, %v2513_v17  ;;  %v2596_v39 = vmul.f32 %v6488_v33, %v2513_v17  ;;  %v6494_v56 = vld [vmem:[#allocation18_spill] sm:$0xff]  ;;  %v6498_v11 = vld [vmem:[#allocation13_spill] sm:$0xff] }
 0x30f   : > { %v5683_v48 = vpop.xlane.xlu0 %2431  ;;  %v2659_v44 = vmul.f32 %v6485_v36, %v2545_v47  ;;  %v2717_v7 = vadd.f32 %v2653_v8, %v2589_v54  ;;  %v6497_v36 = vld [vmem:[#allocation80_spill] sm:$0xff] }
 0x310   : > { %v5685_v1 = vpop.xlane.xlu1 %1462  ;;  %3585 = vrcp.f32 %v5683_v48  ;;  %v2590_v48 = vmul.f32 %v6484_v27, %v2510_v45  ;;  %v2657_v49 = vmul.f32 %v6489_v25, %v2544_v30  ;;  %v2658_v32 = vmul.f32 %v6490_v19, %v2544_v30 }
 0x311   : > { %v2723_v14 = vadd.f32 %v2659_v44, %v2595_v2 }
 0x312   : > { %v3570_v5 = vpop.eup %3569 }
 0x313   : > { %v5690_v37 = vpop.xlane.xlu0 %1459  ;;  %v3572_v15 = vpop.eup %3571  ;;  %v2547_v59 = vmul.f32 0.1, %v3570_v5 }
 0x314   : > { %v2441_v20 = vpop.xlane.xlu1 %2440  ;;  %v3574_v40 = vpop.eup %3573  ;;  %v2512_v29 = vmul.f32 0.9, %v3572_v15  ;;  %v2765_v15 = vmax.f32 %v5719_v38, %v2717_v7 }
 0x315   : > { %3587 = vrcp.f32 %v2441_v20  ;;  %v3576_v58 = vpop.eup %3575  ;;  %v6486_v20 = vld [vmem:[#allocation15_spill] sm:$0xff]  ;;  %v2663_v28 = vmul.f32 %v6491_v34, %v2547_v59  ;;  %v2664_v3 = vmul.f32 %v6495_v31, %v2547_v59 }
 0x316   : > { %3589 = vrcp.f32 %v5685_v1  ;;  %v2660_v55 = vmul.f32 %v6486_v20, %v2545_v47  ;;  %v2515_v1 = vmul.f32 0.9, %v3574_v40  ;;  %v3578_v10 = vpop.eup %3577  ;;  %v2593_v9 = vmul.f32 %v6492_v52, %v2512_v29  ;;  %v6496_v40 = vld [vmem:[#allocation82_spill] sm:$0xff] }
 0x317   : > { %v2438_v26 = vpop.xlane.xlu0 %2437  ;;  %v2514_v35 = vmul.f32 0.9, %v3578_v10  ;;  %v3580_v47 = vpop.eup %3579 }
 0x318   : > { %v5701_v57 = vpop.xlane.xlu1 %1468  ;;  %3591 = vrcp.f32 %v2438_v26  ;;  %v2718_v26 = vadd.f32 %v2654_v63, %v2590_v48  ;;  %v2724_v45 = vadd.f32 %v2660_v55, %v2596_v39  ;;  %v2599_v13 = vmul.f32 %v6494_v56, %v2515_v1 }
 0x319   : > { %3593 = vrcp.f32 %v5690_v37  ;;  %v2546_v37 = vmul.f32 0.1, %v3576_v58  ;;  %v2721_v54 = vadd.f32 %v2657_v49, %v2593_v9  ;;  %v2768_v48 = vmax.f32 %v5731_v46, %v2723_v14  ;;  %v6499_v49 = vld [vmem:[#allocation27_spill] sm:$0xff] }
 0x31a   : > { %v2802_v50 = vmax.f32 %v5724_v18, %v2718_v26  ;;  %v3582_v17 = vpop.eup %3581  ;;  %v2727_v63 = vadd.f32 %v2663_v28, %v2599_v13  ;;  %v2805_v59 = vmax.f32 %v5737_v12, %v2724_v45  ;;  %v2517_v44 = vmul.f32 0.9, %v3580_v47 }
 0x31b   : > { %v5712_v43 = vpop.xlane.xlu0 %1465  ;;  %v2661_v30 = vmul.f32 %v5428_v4, %v2546_v37  ;;  %v3584_v27 = vpop.eup %3583  ;;  %v2662_v38 = vmul.f32 %v5432_v16, %v2546_v37  ;;  %v2598_v4 = vmul.f32 %v6498_v11, %v2514_v35  ;;  %v2549_v2 = vmul.f32 0.1, %v3582_v17 }
 0x31c   : > { %v2447_v24 = vpop.xlane.xlu1 %2446  ;;  %v5763_v16 = vmax.f32 %v2768_v48, %v2727_v63  ;;  %v2516_v39 = vmul.f32 0.9, %v3584_v27  ;;  %v2603_v19 = vmul.f32 %v6499_v49, %v2517_v44  ;;  %v6510_v49 = vld [vmem:[#allocation21_spill] sm:$0xff] }
 0x31d   : > { %3595 = vrcp.f32 %v2447_v24  ;;  %v2594_v24 = vmul.f32 %v6493_v62, %v2512_v29  ;;  %v3586_v18 = vpop.eup %3585  ;;  %v5758_v29 = vmax.f32 %v2765_v15, %v2721_v54  ;;  %v2726_v33 = vadd.f32 %v2662_v38, %v2598_v4 }
 0x31e   : > { %3597 = vrcp.f32 %v5701_v57  ;;  %v2548_v7 = vmul.f32 0.1, %v3586_v18  ;;  %v2667_v28 = vmul.f32 %v5440_v61, %v2549_v2  ;;  %v2668_v37 = vmul.f32 %v5445_v51, %v2549_v2  ;;  %v6501_v51 = vld [vmem:[#allocation62_spill] sm:$0xff] }
 0x31f   : > { %v2444_v42 = vpop.xlane.xlu0 %2443  ;;  %v2722_v8 = vadd.f32 %v2658_v32, %v2594_v24  ;;  %v2601_v56 = vmul.f32 %v6389_v22, %v2516_v39 }
 0x320   : > { %v1475_v21 = vpop.xlane.xlu1 %1474  ;;  %3599 = vrcp.f32 %v2444_v42  ;;  %v2600_v42 = vmul.f32 %v6496_v40, %v2515_v1  ;;  %v2665_v13 = vmul.f32 %v5449_v0, %v2548_v7  ;;  %v2666_v61 = vmul.f32 %v5452_v53, %v2548_v7  ;;  %v6503_v0 = vld [vmem:[#allocation84_spill] sm:$0xff]  ;;  %v6504_v53 = vld [vmem:[#allocation42_spill] sm:$0xff] }
 0x321   : > { %3601 = vrcp.f32 %v5712_v43  ;;  %v2597_v43 = vmul.f32 %v6497_v36, %v2514_v35  ;;  %v5761_v12 = vmax.f32 %v2802_v50, %v2722_v8  ;;  %v2731_v50 = vadd.f32 %v2667_v28, %v2603_v19 }
 0x322   : > { %3603 = vrcp.f32 %v1475_v21  ;;  %v2728_v58 = vadd.f32 %v2664_v3, %v2600_v42  ;;  %v3588_v55 = vpop.eup %3587  ;;  %v2602_v3 = vmul.f32 %v6501_v51, %v2516_v39  ;;  %v2729_v48 = vadd.f32 %v2665_v13, %v2601_v56  ;;  %v6514_v56 = vld [vmem:[#allocation50_spill] sm:$0xff] }
 0x323   : > { %v1472_v41 = vpop.xlane.xlu0 %1471  ;;  %v3590_v1 = vpop.eup %3589  ;;  %v5765_v21 = vadd.f32 %v2661_v30, %v2597_v43  ;;  %v2806_v24 = vmax.f32 %v5761_v12, %v2726_v33  ;;  %v6505_v30 = vld [vmem:[#allocation39_spill] sm:$0xff]  ;;  %v6507_v43 = vld [vmem:[#allocation30_spill] sm:$0xff]  ;;  %v2772_v11 = vmax.f32 %v5763_v16, %v2731_v50  ;;  %v6509_v12 = vld [vmem:[#allocation64_spill] sm:$0xff] }
 0x324   : > { %v2453_v6 = vpop.xlane.xlu1 %2452  ;;  %v5767_v25 = vmax.f32 %v2805_v59, %v2728_v58  ;;  %v2519_v14 = vmul.f32 0.9, %v3590_v1  ;;  %v6506_v58 = vld [vmem:[#allocation28_spill] sm:$0xff]  ;;  %v6512_v16 = vld [vmem:[#allocation85_spill] sm:$0xff] }
 0x325   : > { %v3592_v10 = vpop.eup %3591  ;;  %v2769_v52 = vmax.f32 %v5758_v29, %v5765_v21 }
 0x326   : > { %v3594_v26 = vpop.eup %3593  ;;  %v2550_v9 = vmul.f32 0.1, %v3592_v10  ;;  %v2608_v27 = vmul.f32 %v6505_v30, %v2519_v14  ;;  %v6519_v30 = vld [vmem:[#allocation75_spill] sm:$0xff] }
 0x327   : > { %v2450_v5 = vpop.xlane.xlu0 %2449  ;;  %v2771_v7 = vmax.f32 %v2769_v52, %v2729_v48 }
 0x328   : > { %v1481_v57 = vpop.xlane.xlu1 %1480  ;;  %3605 = vrcp.f32 %v2450_v5  ;;  %v2518_v5 = vmul.f32 0.9, %v3594_v26  ;;  %v2669_v8 = vmul.f32 %v6503_v0, %v2550_v9  ;;  %v2670_v63 = vmul.f32 %v6504_v53, %v2550_v9 }
 0x329   : > { %3607 = vrcp.f32 %v2453_v6  ;;  %v2551_v6 = vmul.f32 0.1, %v3588_v55 }
 0x32a   : > { %3609 = vrcp.f32 %v1472_v41  ;;  %v3596_v34 = vpop.eup %3595  ;;  %v6500_v41 = vld [vmem:[#allocation29_spill] sm:$0xff]  ;;  %v2605_v36 = vmul.f32 %v6506_v58, %v2518_v5 }
 0x32b   : > { %v1478_v20 = vpop.xlane.xlu0 %1477  ;;  %v2604_v45 = vmul.f32 %v6500_v41, %v2517_v44  ;;  %v3598_v62 = vpop.eup %3597  ;;  %v2671_v35 = vmul.f32 %v5464_v23, %v2551_v6  ;;  %v2553_v47 = vmul.f32 0.1, %v3596_v34  ;;  %v2672_v22 = vmul.f32 %v5470_v60, %v2551_v6  ;;  %v6511_v6 = vld [vmem:[#allocation23_spill] sm:$0xff] }
 0x32c   : > { %v2459_v46 = vpop.xlane.xlu1 %2458  ;;  %v2521_v42 = vmul.f32 0.9, %v3598_v62  ;;  %v2730_v23 = vadd.f32 %v2666_v61, %v2602_v3  ;;  %v2606_v44 = vmul.f32 %v6507_v43, %v2518_v5  ;;  %v2733_v10 = vadd.f32 %v2669_v8, %v2605_v36  ;;  %v6518_v8 = vld [vmem:[#allocation6_spill] sm:$0xff]  ;;  %v6522_v36 = vld [vmem:[#allocation88_spill] sm:$0xff] }
 0x32d   : > { %3611 = vrcp.f32 %v2459_v46  ;;  %v3600_v31 = vpop.eup %3599  ;;  %v2732_v54 = vadd.f32 %v2668_v37, %v2604_v45  ;;  %v2736_v1 = vadd.f32 %v2672_v22, %v2608_v27  ;;  %v2676_v19 = vmul.f32 %v6510_v49, %v2553_v47  ;;  %v6513_v45 = vld [vmem:[#allocation41_spill] sm:$0xff] }
 0x32e   : > { %3613 = vrcp.f32 %v1478_v20  ;;  %v3602_v40 = vpop.eup %3601  ;;  %v2552_v59 = vmul.f32 0.1, %v3600_v31  ;;  %v6508_v20 = vld [vmem:[#allocation87_spill] sm:$0xff]  ;;  %v2611_v21 = vmul.f32 %v6509_v12, %v2521_v42  ;;  %v2734_v33 = vadd.f32 %v2670_v63, %v2606_v44  ;;  %v6517_v22 = vld [vmem:[#allocation89_spill] sm:$0xff]  ;;  %v6526_v12 = vld [vmem:[#allocation94_spill] sm:$0xff] }
 0x32f   : > { %v2456_v32 = vpop.xlane.xlu0 %2455  ;;  %v3604_v38 = vpop.eup %3603  ;;  %v2675_v55 = vmul.f32 %v6508_v20, %v2553_v47  ;;  %v2809_v4 = vmax.f32 %v5767_v25, %v2732_v54  ;;  %v2520_v2 = vmul.f32 0.9, %v3602_v40  ;;  %v2808_v26 = vmax.f32 %v2806_v24, %v2730_v23  ;;  %v6515_v47 = vld [vmem:[#allocation40_spill] sm:$0xff]  ;;  %v6523_v20 = vld [vmem:[#allocation7_spill] sm:$0xff]  ;;  %v6529_v49 = vld [vmem:[#allocation93_spill] sm:$0xff] }
 0x330   : > { %3615 = vrcp.f32 %v2456_v32  ;;  %v2673_v32 = vmul.f32 %v6511_v6, %v2552_v59  ;;  %v2612_v37 = vmul.f32 %v6512_v16, %v2521_v42  ;;  %v2523_v62 = vmul.f32 0.9, %v3604_v38  ;;  %v6530_v16 = vld [vmem:[#allocation49_spill] sm:$0xff] }
 0x331   : > { %3617 = vrcp.f32 %v1481_v57  ;;  %v6502_v57 = vld [vmem:[#allocation35_spill] sm:$0xff]  ;;  %v2739_v25 = vadd.f32 %v2675_v55, %v2611_v21  ;;  %v2609_v9 = vmul.f32 %v6513_v45, %v2520_v2  ;;  %v2674_v13 = vmul.f32 %v6514_v56, %v2552_v59 }
 0x332   : > { %v2607_v17 = vmul.f32 %v6502_v57, %v2519_v14  ;;  %v2811_v52 = vmax.f32 %v2809_v4, %v2736_v1  ;;  %v2773_v24 = vmax.f32 %v2771_v7, %v2733_v10  ;;  %v2810_v51 = vmax.f32 %v2808_v26, %v2734_v33  ;;  %v6520_v59 = vld [vmem:[#allocation43_spill] sm:$0xff]  ;;  %v6525_v4 = vld [vmem:[#allocation97_spill] sm:$0xff]  ;;  %v6528_v7 = vld [vmem:[#allocation92_spill] sm:$0xff] }
 0x333   : > { %v1484_v15 = vpop.xlane.xlu0 %1483  ;;  %v2740_v5 = vadd.f32 %v2676_v19, %v2612_v37  ;;  %v2737_v50 = vadd.f32 %v2673_v32, %v2609_v9  ;;  %v2615_v53 = vmul.f32 %v6518_v8, %v2523_v62  ;;  %v2616_v55 = vmul.f32 %v6523_v20, %v2523_v62  ;;  %v6527_v10 = vld [vmem:[#allocation95_spill] sm:$0xff] }
 0x334   : > { %3619 = vrcp.f32 %v1484_v15  ;;  %v2735_v18 = vadd.f32 %v2671_v35, %v2607_v17  ;;  %v2610_v15 = vmul.f32 %v6515_v47, %v2520_v2  ;;  %v6516_v17 = vld [vmem:[#allocation48_spill] sm:$0xff]  ;;  %v6534_v47 = vld [vmem:[#allocation11_spill] sm:$0xff] }
 0x335   : > { %v3606_v60 = vpop.eup %3605 }
 0x336   : > { %v3608_v46 = vpop.eup %3607  ;;  %v2774_v28 = vmax.f32 %v2772_v11, %v2735_v18  ;;  %v2554_v14 = vmul.f32 0.1, %v3606_v60  ;;  %v2738_v63 = vadd.f32 %v2674_v13, %v2610_v15  ;;  %v6521_v18 = vld [vmem:[#allocation86_spill] sm:$0xff]  ;;  %v6524_v60 = vld [vmem:[#allocation96_spill] sm:$0xff] }
 0x337   : > { %v2462_v29 = vpop.xlane.xlu0 %2461  ;;  %v3610_v39 = vpop.eup %3609  ;;  %v2555_v61 = vmul.f32 0.1, %v3608_v46 }
 0x338   : > { %3621 = vrcp.f32 %v2462_v29  ;;  %v2522_v3 = vmul.f32 0.9, %v3610_v39  ;;  %v2776_v57 = vmax.f32 %v2774_v28, %v2739_v25  ;;  %v2677_v40 = vmul.f32 %v6516_v17, %v2554_v14  ;;  %v6531_v25 = vld [vmem:[#allocation52_spill] sm:$0xff] }
 0x339   : > { %v2678_v42 = vmul.f32 %v6517_v22, %v2554_v14  ;;  %v2679_v27 = vmul.f32 %v6519_v30, %v2555_v61  ;;  %v2680_v38 = vmul.f32 %v6520_v59, %v2555_v61  ;;  %v2775_v29 = vmax.f32 %v2773_v24, %v2737_v50  ;;  %v6532_v24 = vld [vmem:[#allocation98_spill] sm:$0xff]  ;;  %v6535_v50 = vld [vmem:[#allocation12_spill] sm:$0xff] }
 0x33a   : > { %v3612_v34 = vpop.eup %3611  ;;  %v2613_v58 = vmul.f32 %v6521_v18, %v2522_v3  ;;  %v2614_v43 = vmul.f32 %v6522_v36, %v2522_v3  ;;  %v2812_v39 = vmax.f32 %v2810_v51, %v2738_v63  ;;  %v6533_v3 = vld [vmem:[#allocation99_spill] sm:$0xff]  ;;  %v3652_v59 = vmov 1966171168  }
 0x33b   : > { %v3614_v41 = vpop.eup %3613  ;;  %v2557_v0 = vmul.f32 0.1, %v3612_v34  ;;  %v2743_v34 = vadd.f32 %v2679_v27, %v2615_v53  ;;  %v2744_v28 = vadd.f32 %v2680_v38, %v2616_v55  ;;  %v2830_v38 = vunpack.c.l.s4 %v3652_v59 }
 0x33c   : > { %v2524_v48 = vmul.f32 0.9, %v3614_v41  ;;  %v2741_v46 = vadd.f32 %v2677_v40, %v2613_v58  ;;  %v2742_v1 = vadd.f32 %v2678_v42, %v2614_v43  ;;  %v2813_v41 = vmax.f32 %v2811_v52, %v2740_v5 }
 0x33d   : > { %v3616_v31 = vpop.eup %3615  ;;  %v2683_v21 = vmul.f32 %v6526_v12, %v2557_v0  ;;  %v2684_v33 = vmul.f32 %v6527_v10, %v2557_v0  ;;  %v2778_v17 = vmax.f32 %v2776_v57, %v2743_v34  ;;  %v2831_v57 = vunpack.c.0.s8 %v2830_v38  ;;  %v2751_v12 = vld [vmem:[#allocation2] sm:$0x3] }
 0x33e   : > { %v3618_v35 = vpop.eup %3617  ;;  %v2556_v54 = vmul.f32 0.1, %v3616_v31  ;;  %v2617_v26 = vmul.f32 %v6528_v7, %v2524_v48  ;;  %v2618_v19 = vmul.f32 %v6529_v49, %v2524_v48  ;;  %v2777_v56 = vmax.f32 %v2775_v29, %v2741_v46 }
 0x33f   : > { %v2525_v44 = vmul.f32 0.9, %v3618_v35  ;;  %v2814_v13 = vmax.f32 %v2812_v39, %v2742_v1  ;;  %v2815_v40 = vmax.f32 %v2813_v41, %v2744_v28 }
 0x340   : > { %v2681_v11 = vmul.f32 %v6524_v60, %v2556_v54  ;;  %v2682_v2 = vmul.f32 %v6525_v4, %v2556_v54  ;;  %v6536_v60 = vld [vmem:[#allocation3_spill] sm:$0xff] }
 0x341   : > { %v3620_v23 = vpop.eup %3619  ;;  %v2619_v37 = vmul.f32 %v6530_v16, %v2525_v44  ;;  %v2620_v14 = vmul.f32 %v6531_v25, %v2525_v44 }
 0x342   : > { %v2526_v6 = vmul.f32 0.9, %v3620_v23  ;;  %v2745_v45 = vadd.f32 %v2681_v11, %v2617_v26  ;;  %v2746_v9 = vadd.f32 %v2682_v2, %v2618_v19  ;;  %v2834_v11 = vsub.s32 %v2831_v57, %v6536_v60  ;;  %v6539_v19 = vld [vmem:[#allocation4_spill] sm:$0xff] }
 0x343   : > { %v2747_v61 = vadd.f32 %v2683_v21, %v2619_v37  ;;  %v2748_v31 = vadd.f32 %v2684_v33, %v2620_v14  ;;  %v6537_v33 = vlaneseq }
 0x344   : > { %v2621_v51 = vmul.f32 %v6532_v24, %v2526_v6  ;;  %v2622_v35 = vmul.f32 %v6533_v3, %v2526_v6  ;;  %v2779_v22 = vmax.f32 %v2777_v56, %v2745_v45  ;;  %v2816_v42 = vmax.f32 %v2814_v13, %v2746_v9 }
 0x345   : > { %v3622_v32 = vpop.eup %3621  ;;  %v2780_v0 = vmax.f32 %v2778_v17, %v2747_v61  ;;  %v2817_v8 = vmax.f32 %v2815_v40, %v2748_v31  ;;  %v2854_v39 = vand.u32 127, %v6537_v33 }
 0x346   : > { %v2558_v62 = vmul.f32 0.1, %v3622_v32  ;;  %v6540_v32 = vld [vmem:[#allocation5_spill] sm:$0xff] }
 0x347   : > { %v2855_v26 = vadd.s32 128, %v2854_v39 }
 0x348   : > { %v2685_v15 = vmul.f32 %v6534_v47, %v2558_v62  ;;  %v2686_v54 = vmul.f32 %v6535_v50, %v2558_v62 }
 0x349   : > { %vm2857_vm1 = vcmp.lt.s32.totalorder %v2855_v26, 144 }
 0x34a   : > { %v2749_v52 = vadd.f32 %v2685_v15, %v2621_v51  ;;  %v2750_v5 = vadd.f32 %v2686_v54, %v2622_v35 }
 0x34c   : > { %v2781_v53 = vmax.f32 %v2779_v22, %v2749_v52  ;;  %v2818_v63 = vmax.f32 %v2816_v42, %v2750_v5 }
 0x34e   : > { %v2782_v30 = vmax.f32 %v2780_v0, %v2781_v53  ;;  %v2819_v27 = vmax.f32 %v2817_v8, %v2818_v63 }
 0x350   : > { %v2783_v48 = vrot.slane %v2782_v30, 4  ;;  %v2820_v23 = vrot.slane %v2819_v27, 4 }
 0x352   : > { %v2784_v18 = vmax.f32 %v2782_v30, %v2783_v48  ;;  %v2821_v58 = vmax.f32 %v2819_v27, %v2820_v23 }
 0x354   : > { %v2785_v36 = vrot.slane %v2784_v18, 2  ;;  %v2822_v43 = vrot.slane %v2821_v58, 2 }
 0x356   : > { %v2786_v44 = vmax.f32 %v2784_v18, %v2785_v36  ;;  %v2823_v20 = vmax.f32 %v2821_v58, %v2822_v43 }
 0x358   : > { %v2787_v55 = vrot.slane %v2786_v44, 1  ;;  %v2824_v29 = vrot.slane %v2823_v20, 1 }
 0x35a   : > { %v2788_v4 = vmax.f32 %v2786_v44, %v2787_v55  ;;  %v2825_v2 = vmax.f32 %v2823_v20, %v2824_v29 }
 0x35c   : > { %v2828_v46 = vcombine.low %v2788_v4, %v2825_v2 }
 0x35e   : > { %v2835_v1 = vrot.slane %v2828_v46, %v2834_v11 }
 0x360   : > { %v2842_v21 = vrot.slane %v2835_v1, %v2834_v11 }
 0x362   : > { %v2844_v10 = vmax.f32 %v2751_v12, %v2842_v21 }
 0x364   : > { %2849 = vst.msk [vmem:[#allocation2] sm:$0x3] %vm5595_vm0, %v2844_v10 }
 0x36b   : > { %v2858_v49 = vld [vmem:[#allocation2] sm:$0x3] }
 0x36c   : > { %v2863_v6 = vrot.slane %v2858_v49, %v6539_v19  ;;  %v2867_v34 = vrot.slane %v2858_v49, %v6540_v32 }
 0x36e   : > { %v2871_v28 = vsel %vm2857_vm1, %v2867_v34, 0.0  ;;  %v2873_v16 = vsel %vm2872_vm2, %v2863_v6, 0.0 }
 0x36f   : > { %v2874_v37 = vsel %vm2872_vm2, %v2871_v28, 0.0 }
 0x370   : > { %v2875_v25 = vadd.f32 %v2874_v37, %v2873_v16 }
 0x372   : > { %2876 = vadd.xlane.f32.xlu1 %v2875_v25 }
 0x3fb   : > { %v2877_v14 = vpop.xlane.xlu1 %2876 }
 0x3fc   : > { %v2878_v41 = vrot.slane %v2877_v14, 4 }
 0x3fe   : > { %v2879_v45 = vadd.f32 %v2878_v41, %v2877_v14 }
 0x400   : > { %v2880_v9 = vrot.slane %v2879_v45, 2 }
 0x402   : > { %v2881_v62 = vadd.f32 %v2880_v9, %v2879_v45 }
 0x404   : > { %v2882_v56 = vrot.slane %v2881_v62, 1 }
 0x406   : > { %v2883_v13 = vadd.f32 %v2882_v56, %v2881_v62 }
 0x408   : > { %3064 = vpush %v2883_v13 }
 0x439   : > { %s3065_s13 = spop %3064 }
 0x43a   : > { %s2885_s14 = smul.f32 0.0069444445, %s3065_s13 }
 0x43c   : > { %v2886_v61 = vstv %s2885_s14 }
 0x43d   : > { %3623 = vlog2.f32 %v2886_v61 }
 0x44a   : > { %v3624_v31 = vpop.eup %3623 }
 0x44b   : > { %v2888_v24 = vmul.f32 0.6931472, %v3624_v31 }
 0x44d   : > { %3066 = vpush %v2888_v24 }
 0x47e   : > { %s3067_s16 = spop %3066 }
 0x47f   : > { %v2890_v51 = vstv %s3067_s16 }
 0x480   : > { %v2891_v3 = vsub.f32 0.0, %v2890_v51 }
 0x482   : > { %2892 = vst [vmem:[%s309_s23] sm:$0xff] %v2891_v3 }
 0x483 PF: > { %s15_s20 = sadd.s32 1, %s3647_s20   ;;  %s6541_s18 = smov %s3643_s19 }
 0x484   : > { %p12_p5 = scmp.ge.s32.totalorder %s15_s20, 4   ;;  %s6542_s19 = smov %s6544_s21 }
 0x486   :  { %14 = sbr.rel (!%p12_p5) target bundleno = 2 (0x2), region = 87 }

</bundles_post_ra>
